<compile_context>
chip_gen: v5e
topology: v5e:2x2
jax: 0.10.0
libtpu: 0.0.40
codegen_flags: <defaults>
</compile_context>

<pallas_src>
import jax
import jax.numpy as jnp
from jax import lax
from jax.experimental import pallas as pl
from jax.experimental.pallas import tpu as pltpu


# ----------------------------------------------------------------------------
# Fused Pallas kernel: 3 x (LSTM + ReLU) + Linear
# ----------------------------------------------------------------------------
def _fused_lstmnet_kernel(x_ref,
                          wih1_ref, whh1_ref, b1_ref,
                          wih2_ref, whh2_ref, b2_ref,
                          wih3_ref, whh3_ref, b3_ref,
                          wfc_ref, bfc_ref,
                          out_ref,
                          g1_ref, g2_ref, g3_ref, h1_ref, h2_ref):
    """All refs are whole-array VMEM.

    x_ref:   (L*B, 4)      time-major flattened input (row = t*B + b)
    wihN:    (DinN, 4HN)   transposed weight_ih, gate order [i, f, g, o]
    whhN:    (HN,   4HN)   transposed weight_hh
    bN:      (1,    4HN)   bias_ih + bias_hh folded
    wfc:     (L*H3, 9)     transposed fc1 weight (flatten order t*H3 + k)
    bfc:     (1, 9)
    out_ref: (B, 9)
    gN_ref:  (L*B, 4HN)    hoisted input-projection scratch
    hN_ref:  (L*B, HN)     relu(h) inter-layer activation scratch
    """
    B, n_out = out_ref.shape
    LB = x_ref.shape[0]
    L = LB // B
    H1 = whh1_ref.shape[0]
    H2 = whh2_ref.shape[0]
    H3 = whh3_ref.shape[0]

    # Guard the unroll: full unroll only for short sequences.
    unroll = True if L <= 32 else (4 if L % 4 == 0 else 1)

    def input_proj(src, wih_ref, b_ref, g_ref):
        # Hoisted input projection: one big (L*B, Din) @ (Din, 4H) matmul,
        # bias folded in once (no per-step broadcast / add in the loop).
        g_ref[...] = (jnp.dot(src, wih_ref[...],
                              preferred_element_type=jnp.float32)
                      + b_ref[...])

    def gate_math(gates, c, H):
        # Two full-row EUP passes instead of four sub-vreg nonlinearities.
        sig = jax.nn.sigmoid(gates)      # [i, f, ., o] slices used
        tng = jnp.tanh(gates)            # [., ., g, .] slice used
        c_new = sig[:, H:2 * H] * c + sig[:, :H] * tng[:, 2 * H:3 * H]
        h_new = sig[:, 3 * H:4 * H] * jnp.tanh(c_new)
        return h_new, c_new

    def run_layer(g_ref, whh_ref, hout_ref, H):
        whh = whh_ref[...]

        def step(t, carry):
            h, c = carry
            row = pl.multiple_of(t * B, B)
            gates = g_ref[pl.ds(row, B), :] + jnp.dot(
                h, whh, preferred_element_type=jnp.float32)
            h_new, c_new = gate_math(gates, c, H)
            hout_ref[pl.ds(row, B), :] = jnp.maximum(h_new, 0.0)  # fused ReLU
            return h_new, c_new

        zero = jnp.zeros((B, H), jnp.float32)
        lax.fori_loop(0, L, step, (zero, zero), unroll=unroll)

    def run_last_layer_with_fc(g_ref, whh_ref, H):
        whh = whh_ref[...]

        def step(t, carry):
            h, c, acc = carry
            row = pl.multiple_of(t * B, B)
            gates = g_ref[pl.ds(row, B), :] + jnp.dot(
                h, whh, preferred_element_type=jnp.float32)
            h_new, c_new = gate_math(gates, c, H)
            h_relu = jnp.maximum(h_new, 0.0)                      # fused ReLU
            # Incremental FC: acc += relu(h3_t) @ Wfc[t*H3:(t+1)*H3, :]
            w_row = pl.multiple_of(t * H, H)
            acc = acc + jnp.dot(h_relu, wfc_ref[pl.ds(w_row, H), :],
                                preferred_element_type=jnp.float32)
            return h_new, c_new, acc

        zero = jnp.zeros((B, H), jnp.float32)
        acc0 = jnp.zeros((B, n_out), jnp.float32)
        _, _, acc = lax.fori_loop(0, L, step, (zero, zero, acc0),
                                  unroll=unroll)
        return acc

    # Layer 1
    input_proj(x_ref[...], wih1_ref, b1_ref, g1_ref)
    run_layer(g1_ref, whh1_ref, h1_ref, H1)
    # Layer 2
    input_proj(h1_ref[...], wih2_ref, b2_ref, g2_ref)
    run_layer(g2_ref, whh2_ref, h2_ref, H2)
    # Layer 3 + incremental FC
    input_proj(h2_ref[...], wih3_ref, b3_ref, g3_ref)
    acc = run_last_layer_with_fc(g3_ref, whh3_ref, H3)
    out_ref[...] = acc + bfc_ref[...]


# ----------------------------------------------------------------------------
# Wrapper
# ----------------------------------------------------------------------------
_VMEM_SPEC = pl.BlockSpec(memory_space=pltpu.MemorySpace.VMEM)


def lstmnet_forward(x, params):
    """x: (B, 4, L) — mirrors the PyTorch input for CAT_encode=False."""
    B, _, L = x.shape
    x = x.astype(jnp.float32)
    # permute(0,2,1) -> (B, L, 4), then time-major (L, B, 4) in one transpose.
    x_tm = jnp.transpose(x, (2, 0, 1))

    # Pad batch to the f32 sublane quantum (8) so every per-step op is
    # full-sublane and dynamic row slices are 8-aligned.
    B_pad = ((B + 7) // 8) * 8
    if B_pad != B:
        x_tm = jnp.pad(x_tm, ((0, 0), (0, B_pad - B), (0, 0)))
    x2d = x_tm.reshape(L * B_pad, x_tm.shape[2])     # row = t*B_pad + b

    H1 = params["whh1"].shape[0]
    H2 = params["whh2"].shape[0]
    H3 = params["whh3"].shape[0]
    n_out = params["wfc"].shape[1]
    LB = L * B_pad

    out_pad = pl.pallas_call(
        _fused_lstmnet_kernel,
        out_shape=jax.ShapeDtypeStruct((B_pad, n_out), jnp.float32),
        in_specs=[_VMEM_SPEC] * 12,
        out_specs=_VMEM_SPEC,
        scratch_shapes=[
            pltpu.VMEM((LB, 4 * H1), jnp.float32),   # g1
            pltpu.VMEM((LB, 4 * H2), jnp.float32),   # g2
            pltpu.VMEM((LB, 4 * H3), jnp.float32),   # g3
            pltpu.VMEM((LB, H1), jnp.float32),       # relu(h1)
            pltpu.VMEM((LB, H2), jnp.float32),       # relu(h2)
        ],
        # TODO(synk): for very large L/H, tile the time axis + stream x/out
        # from HBM (v7x has only 64 MiB VMEM); unnecessary at these sizes.
    )(x2d,
      params["wih1"], params["whh1"], params["b1"],
      params["wih2"], params["whh2"], params["b2"],
      params["wih3"], params["whh3"], params["b3"],
      params["wfc"], params["bfc"])

    return out_pad[:B]


# ----------------------------------------------------------------------------
# Pure-JAX reference (for correctness check)
# ----------------------------------------------------------------------------
def _ref_lstm_relu(x_bm, wih, whh, b):
    B, L, _ = x_bm.shape
    H = whh.shape[0]

    def step(carry, x_t):
        h, c = carry
        gates = x_t @ wih + h @ whh + b[0]
        i_g = jax.nn.sigmoid(gates[:, 0 * H:1 * H])
        f_g = jax.nn.sigmoid(gates[:, 1 * H:2 * H])
        g_g = jnp.tanh(gates[:, 2 * H:3 * H])
        o_g = jax.nn.sigmoid(gates[:, 3 * H:4 * H])
        c_new = f_g * c + i_g * g_g
        h_new = o_g * jnp.tanh(c_new)
        return (h_new, c_new), jnp.maximum(h_new, 0.0)

    init = (jnp.zeros((B, H), jnp.float32), jnp.zeros((B, H), jnp.float32))
    _, outs = lax.scan(step, init, jnp.transpose(x_bm, (1, 0, 2)))
    return jnp.transpose(outs, (1, 0, 2))


def _ref_forward(x, p):
    x = jnp.transpose(x.astype(jnp.float32), (0, 2, 1))
    x = _ref_lstm_relu(x, p["wih1"], p["whh1"], p["b1"])
    x = _ref_lstm_relu(x, p["wih2"], p["whh2"], p["b2"])
    x = _ref_lstm_relu(x, p["wih3"], p["whh3"], p["b3"])
    x = x.reshape(x.shape[0], -1)
    return x @ p["wfc"] + p["bfc"][0]


# ----------------------------------------------------------------------------
# Deterministic parameter init (shapes from LSTMNet.__init__, CAT_encode=False)
# ----------------------------------------------------------------------------
def init_params(key, input_len, first_hu, second_hu, third_hu):
    input_col = 4
    ks = jax.random.split(key, 11)

    def unif(k, shape, fan):
        bound = 1.0 / jnp.sqrt(fan)
        return jax.random.uniform(k, shape, jnp.float32, -bound, bound)

    return {
        # LSTM weights stored transposed ((in, 4H)), gate order [i, f, g, o];
        # bias = bias_ih + bias_hh folded into one (1, 4H) vector.
        "wih1": unif(ks[0], (input_col, 4 * first_hu), first_hu),
        "whh1": unif(ks[1], (first_hu, 4 * first_hu), first_hu),
        "b1":   unif(ks[2], (1, 4 * first_hu), first_hu),
        "wih2": unif(ks[3], (first_hu, 4 * second_hu), second_hu),
        "whh2": unif(ks[4], (second_hu, 4 * second_hu), second_hu),
        "b2":   unif(ks[5], (1, 4 * second_hu), second_hu),
        "wih3": unif(ks[6], (second_hu, 4 * third_hu), third_hu),
        "whh3": unif(ks[7], (third_hu, 4 * third_hu), third_hu),
        "b3":   unif(ks[8], (1, 4 * third_hu), third_hu),
        # fc1: Linear(input_len * third_hu, 9), stored transposed.
        "wfc":  unif(ks[9], (input_len * third_hu, 9), input_len * third_hu),
        "bfc":  unif(ks[10], (1, 9), input_len * third_hu),
    }


if __name__ == "__main__":
    B, input_len = 2, 8
    first_hu = second_hu = third_hu = 32

    key = jax.random.PRNGKey(0)
    k_x, k_p = jax.random.split(key)
    x = jax.random.normal(k_x, (B, 4, input_len), jnp.float32)
    params = init_params(k_p, input_len, first_hu, second_hu, third_hu)

    fwd = jax.jit(lstmnet_forward)
    out = jax.block_until_ready(fwd(x, params))
    assert out.shape == (B, 9), out.shape

    ref = jax.block_until_ready(_ref_forward(x, params))
    assert jnp.allclose(out, ref, atol=1e-4, rtol=1e-4), (
        float(jnp.max(jnp.abs(out - ref))))

    print("KERNEL_OK")
</pallas_src>

<mosaic_0001>
module attributes {stable_mosaic.version = 11 : i64} {
  func.func @_fused_lstmnet_kernel(%arg0: memref<64x4xf32, #tpu.memory_space<vmem>>, %arg1: memref<4x128xf32, #tpu.memory_space<vmem>>, %arg2: memref<32x128xf32, #tpu.memory_space<vmem>>, %arg3: memref<1x128xf32, #tpu.memory_space<vmem>>, %arg4: memref<32x128xf32, #tpu.memory_space<vmem>>, %arg5: memref<32x128xf32, #tpu.memory_space<vmem>>, %arg6: memref<1x128xf32, #tpu.memory_space<vmem>>, %arg7: memref<32x128xf32, #tpu.memory_space<vmem>>, %arg8: memref<32x128xf32, #tpu.memory_space<vmem>>, %arg9: memref<1x128xf32, #tpu.memory_space<vmem>>, %arg10: memref<256x9xf32, #tpu.memory_space<vmem>>, %arg11: memref<1x9xf32, #tpu.memory_space<vmem>>, %arg12: memref<8x9xf32, #tpu.memory_space<vmem>>, %arg13: memref<64x128xf32, #tpu.memory_space<vmem>>, %arg14: memref<64x128xf32, #tpu.memory_space<vmem>>, %arg15: memref<64x128xf32, #tpu.memory_space<vmem>>, %arg16: memref<64x32xf32, #tpu.memory_space<vmem>>, %arg17: memref<64x32xf32, #tpu.memory_space<vmem>>) attributes {dimension_semantics = [], scalar_prefetch = 0 : i64, scratch_operands = 5 : i64, tpu.core_type = #tpu.core_type<tc>} {
    %c0 = arith.constant 0 : index
    %c0_0 = arith.constant 0 : index
    %0 = vector.load %arg0[%c0, %c0_0] : memref<64x4xf32, #tpu.memory_space<vmem>>, vector<64x4xf32>
    %c0_1 = arith.constant 0 : index
    %c0_2 = arith.constant 0 : index
    %1 = vector.load %arg1[%c0_1, %c0_2] : memref<4x128xf32, #tpu.memory_space<vmem>>, vector<4x128xf32>
    %cst = arith.constant dense<0.000000e+00> : vector<64x128xf32>
    %2 = tpu.matmul %0, %1, %cst {dimension_numbers = #tpu.dot_dimension_numbers<[1], [0], [0], [1], [0, 0, 1, 1], [], []>} : vector<64x4xf32>, vector<4x128xf32>, vector<64x128xf32> -> vector<64x128xf32>
    %c0_3 = arith.constant 0 : index
    %c0_4 = arith.constant 0 : index
    %3 = vector.load %arg3[%c0_3, %c0_4] : memref<1x128xf32, #tpu.memory_space<vmem>>, vector<1x128xf32>
    %4 = vector.broadcast %3 : vector<1x128xf32> to vector<64x128xf32>
    %5 = arith.addf %2, %4 : vector<64x128xf32>
    %c0_5 = arith.constant 0 : index
    %c0_6 = arith.constant 0 : index
    %6 = vector.load %arg13[%c0_5, %c0_6] : memref<64x128xf32, #tpu.memory_space<vmem>>, vector<64x128xf32>
    tpu.vector_store %arg13[%c0_5, %c0_6], %5 {strides = array<i32>} : memref<64x128xf32, #tpu.memory_space<vmem>>, vector<64x128xf32>,
    %c0_7 = arith.constant 0 : index
    %c0_8 = arith.constant 0 : index
    %7 = vector.load %arg2[%c0_7, %c0_8] : memref<32x128xf32, #tpu.memory_space<vmem>>, vector<32x128xf32>
    %cst_9 = arith.constant 0.000000e+00 : f32
    %8 = vector.broadcast %cst_9 : f32 to vector<8x32xf32>
    %c0_i32 = arith.constant 0 : i32
    %c8_i32 = arith.constant 8 : i32
    %9 = arith.muli %c0_i32, %c8_i32 : i32
    %10 = tpu.assume_multiple %9, 8 : i32
    %11 = arith.index_cast %10 : i32 to index
    %c0_10 = arith.constant 0 : index
    %12 = vector.load %arg13[%11, %c0_10] : memref<64x128xf32, #tpu.memory_space<vmem>>, vector<8x128xf32>
    %cst_11 = arith.constant dense<0.000000e+00> : vector<8x128xf32>
    %13 = tpu.matmul %8, %7, %cst_11 {dimension_numbers = #tpu.dot_dimension_numbers<[1], [0], [0], [1], [0, 0, 1, 1], [], []>} : vector<8x32xf32>, vector<32x128xf32>, vector<8x128xf32> -> vector<8x128xf32>
    %14 = arith.addf %12, %13 : vector<8x128xf32>
    %15 = arith.negf %14 : vector<8x128xf32>
    %16 = math.exp %15 : vector<8x128xf32>
    %cst_12 = arith.constant 1.000000e+00 : f32
    %17 = vector.broadcast %cst_12 : f32 to vector<8x128xf32>
    %18 = arith.addf %17, %16 : vector<8x128xf32>
    %19 = arith.divf %17, %18 : vector<8x128xf32>
    %20 = math.tanh %14 : vector<8x128xf32>
    %21 = vector.extract_strided_slice %19 {offsets = [0, 32], sizes = [8, 32], strides = [1, 1]} : vector<8x128xf32> to vector<8x32xf32>
    %22 = arith.mulf %21, %8 : vector<8x32xf32>
    %23 = vector.extract_strided_slice %19 {offsets = [0, 0], sizes = [8, 32], strides = [1, 1]} : vector<8x128xf32> to vector<8x32xf32>
    %24 = vector.extract_strided_slice %20 {offsets = [0, 64], sizes = [8, 32], strides = [1, 1]} : vector<8x128xf32> to vector<8x32xf32>
    %25 = arith.mulf %23, %24 : vector<8x32xf32>
    %26 = arith.addf %22, %25 : vector<8x32xf32>
    %27 = vector.extract_strided_slice %19 {offsets = [0, 96], sizes = [8, 32], strides = [1, 1]} : vector<8x128xf32> to vector<8x32xf32>
    %28 = math.tanh %26 : vector<8x32xf32>
    %29 = arith.mulf %27, %28 : vector<8x32xf32>
    %cst_13 = arith.constant 0.000000e+00 : f32
    %30 = vector.broadcast %cst_13 : f32 to vector<8x32xf32>
    %31 = arith.maximumf %29, %30 : vector<8x32xf32>
    %32 = arith.index_cast %10 : i32 to index
    %c0_14 = arith.constant 0 : index
    %33 = vector.load %arg16[%32, %c0_14] : memref<64x32xf32, #tpu.memory_space<vmem>>, vector<8x32xf32>
    tpu.vector_store %arg16[%32, %c0_14], %31 {strides = array<i32>} : memref<64x32xf32, #tpu.memory_space<vmem>>, vector<8x32xf32>,
    %c1_i32 = arith.constant 1 : i32
    %c8_i32_15 = arith.constant 8 : i32
    %34 = arith.muli %c1_i32, %c8_i32_15 : i32
    %35 = tpu.assume_multiple %34, 8 : i32
    %36 = arith.index_cast %35 : i32 to index
    %c0_16 = arith.constant 0 : index
    %37 = vector.load %arg13[%36, %c0_16] : memref<64x128xf32, #tpu.memory_space<vmem>>, vector<8x128xf32>
    %cst_17 = arith.constant dense<0.000000e+00> : vector<8x128xf32>
    %38 = tpu.matmul %29, %7, %cst_17 {dimension_numbers = #tpu.dot_dimension_numbers<[1], [0], [0], [1], [0, 0, 1, 1], [], []>} : vector<8x32xf32>, vector<32x128xf32>, vector<8x128xf32> -> vector<8x128xf32>
    %39 = arith.addf %37, %38 : vector<8x128xf32>
    %40 = arith.negf %39 : vector<8x128xf32>
    %41 = math.exp %40 : vector<8x128xf32>
    %cst_18 = arith.constant 1.000000e+00 : f32
    %42 = vector.broadcast %cst_18 : f32 to vector<8x128xf32>
    %43 = arith.addf %42, %41 : vector<8x128xf32>
    %44 = arith.divf %42, %43 : vector<8x128xf32>
    %45 = math.tanh %39 : vector<8x128xf32>
    %46 = vector.extract_strided_slice %44 {offsets = [0, 32], sizes = [8, 32], strides = [1, 1]} : vector<8x128xf32> to vector<8x32xf32>
    %47 = arith.mulf %46, %26 : vector<8x32xf32>
    %48 = vector.extract_strided_slice %44 {offsets = [0, 0], sizes = [8, 32], strides = [1, 1]} : vector<8x128xf32> to vector<8x32xf32>
    %49 = vector.extract_strided_slice %45 {offsets = [0, 64], sizes = [8, 32], strides = [1, 1]} : vector<8x128xf32> to vector<8x32xf32>
    %50 = arith.mulf %48, %49 : vector<8x32xf32>
    %51 = arith.addf %47, %50 : vector<8x32xf32>
    %52 = vector.extract_strided_slice %44 {offsets = [0, 96], sizes = [8, 32], strides = [1, 1]} : vector<8x128xf32> to vector<8x32xf32>
    %53 = math.tanh %51 : vector<8x32xf32>
    %54 = arith.mulf %52, %53 : vector<8x32xf32>
    %cst_19 = arith.constant 0.000000e+00 : f32
    %55 = vector.broadcast %cst_19 : f32 to vector<8x32xf32>
    %56 = arith.maximumf %54, %55 : vector<8x32xf32>
    %57 = arith.index_cast %35 : i32 to index
    %c0_20 = arith.constant 0 : index
    %58 = vector.load %arg16[%57, %c0_20] : memref<64x32xf32, #tpu.memory_space<vmem>>, vector<8x32xf32>
    tpu.vector_store %arg16[%57, %c0_20], %56 {strides = array<i32>} : memref<64x32xf32, #tpu.memory_space<vmem>>, vector<8x32xf32>,
    %c2_i32 = arith.constant 2 : i32
    %c8_i32_21 = arith.constant 8 : i32
    %59 = arith.muli %c2_i32, %c8_i32_21 : i32
    %60 = tpu.assume_multiple %59, 8 : i32
    %61 = arith.index_cast %60 : i32 to index
    %c0_22 = arith.constant 0 : index
    %62 = vector.load %arg13[%61, %c0_22] : memref<64x128xf32, #tpu.memory_space<vmem>>, vector<8x128xf32>
    %cst_23 = arith.constant dense<0.000000e+00> : vector<8x128xf32>
    %63 = tpu.matmul %54, %7, %cst_23 {dimension_numbers = #tpu.dot_dimension_numbers<[1], [0], [0], [1], [0, 0, 1, 1], [], []>} : vector<8x32xf32>, vector<32x128xf32>, vector<8x128xf32> -> vector<8x128xf32>
    %64 = arith.addf %62, %63 : vector<8x128xf32>
    %65 = arith.negf %64 : vector<8x128xf32>
    %66 = math.exp %65 : vector<8x128xf32>
    %cst_24 = arith.constant 1.000000e+00 : f32
    %67 = vector.broadcast %cst_24 : f32 to vector<8x128xf32>
    %68 = arith.addf %67, %66 : vector<8x128xf32>
    %69 = arith.divf %67, %68 : vector<8x128xf32>
    %70 = math.tanh %64 : vector<8x128xf32>
    %71 = vector.extract_strided_slice %69 {offsets = [0, 32], sizes = [8, 32], strides = [1, 1]} : vector<8x128xf32> to vector<8x32xf32>
    %72 = arith.mulf %71, %51 : vector<8x32xf32>
    %73 = vector.extract_strided_slice %69 {offsets = [0, 0], sizes = [8, 32], strides = [1, 1]} : vector<8x128xf32> to vector<8x32xf32>
    %74 = vector.extract_strided_slice %70 {offsets = [0, 64], sizes = [8, 32], strides = [1, 1]} : vector<8x128xf32> to vector<8x32xf32>
    %75 = arith.mulf %73, %74 : vector<8x32xf32>
    %76 = arith.addf %72, %75 : vector<8x32xf32>
    %77 = vector.extract_strided_slice %69 {offsets = [0, 96], sizes = [8, 32], strides = [1, 1]} : vector<8x128xf32> to vector<8x32xf32>
    %78 = math.tanh %76 : vector<8x32xf32>
    %79 = arith.mulf %77, %78 : vector<8x32xf32>
    %cst_25 = arith.constant 0.000000e+00 : f32
    %80 = vector.broadcast %cst_25 : f32 to vector<8x32xf32>
    %81 = arith.maximumf %79, %80 : vector<8x32xf32>
    %82 = arith.index_cast %60 : i32 to index
    %c0_26 = arith.constant 0 : index
    %83 = vector.load %arg16[%82, %c0_26] : memref<64x32xf32, #tpu.memory_space<vmem>>, vector<8x32xf32>
    tpu.vector_store %arg16[%82, %c0_26], %81 {strides = array<i32>} : memref<64x32xf32, #tpu.memory_space<vmem>>, vector<8x32xf32>,
    %c3_i32 = arith.constant 3 : i32
    %c8_i32_27 = arith.constant 8 : i32
    %84 = arith.muli %c3_i32, %c8_i32_27 : i32
    %85 = tpu.assume_multiple %84, 8 : i32
    %86 = arith.index_cast %85 : i32 to index
    %c0_28 = arith.constant 0 : index
    %87 = vector.load %arg13[%86, %c0_28] : memref<64x128xf32, #tpu.memory_space<vmem>>, vector<8x128xf32>
    %cst_29 = arith.constant dense<0.000000e+00> : vector<8x128xf32>
    %88 = tpu.matmul %79, %7, %cst_29 {dimension_numbers = #tpu.dot_dimension_numbers<[1], [0], [0], [1], [0, 0, 1, 1], [], []>} : vector<8x32xf32>, vector<32x128xf32>, vector<8x128xf32> -> vector<8x128xf32>
    %89 = arith.addf %87, %88 : vector<8x128xf32>
    %90 = arith.negf %89 : vector<8x128xf32>
    %91 = math.exp %90 : vector<8x128xf32>
    %cst_30 = arith.constant 1.000000e+00 : f32
    %92 = vector.broadcast %cst_30 : f32 to vector<8x128xf32>
    %93 = arith.addf %92, %91 : vector<8x128xf32>
    %94 = arith.divf %92, %93 : vector<8x128xf32>
    %95 = math.tanh %89 : vector<8x128xf32>
    %96 = vector.extract_strided_slice %94 {offsets = [0, 32], sizes = [8, 32], strides = [1, 1]} : vector<8x128xf32> to vector<8x32xf32>
    %97 = arith.mulf %96, %76 : vector<8x32xf32>
    %98 = vector.extract_strided_slice %94 {offsets = [0, 0], sizes = [8, 32], strides = [1, 1]} : vector<8x128xf32> to vector<8x32xf32>
    %99 = vector.extract_strided_slice %95 {offsets = [0, 64], sizes = [8, 32], strides = [1, 1]} : vector<8x128xf32> to vector<8x32xf32>
    %100 = arith.mulf %98, %99 : vector<8x32xf32>
    %101 = arith.addf %97, %100 : vector<8x32xf32>
    %102 = vector.extract_strided_slice %94 {offsets = [0, 96], sizes = [8, 32], strides = [1, 1]} : vector<8x128xf32> to vector<8x32xf32>
    %103 = math.tanh %101 : vector<8x32xf32>
    %104 = arith.mulf %102, %103 : vector<8x32xf32>
    %cst_31 = arith.constant 0.000000e+00 : f32
    %105 = vector.broadcast %cst_31 : f32 to vector<8x32xf32>
    %106 = arith.maximumf %104, %105 : vector<8x32xf32>
    %107 = arith.index_cast %85 : i32 to index
    %c0_32 = arith.constant 0 : index
    %108 = vector.load %arg16[%107, %c0_32] : memref<64x32xf32, #tpu.memory_space<vmem>>, vector<8x32xf32>
    tpu.vector_store %arg16[%107, %c0_32], %106 {strides = array<i32>} : memref<64x32xf32, #tpu.memory_space<vmem>>, vector<8x32xf32>,
    %c4_i32 = arith.constant 4 : i32
    %c8_i32_33 = arith.constant 8 : i32
    %109 = arith.muli %c4_i32, %c8_i32_33 : i32
    %110 = tpu.assume_multiple %109, 8 : i32
    %111 = arith.index_cast %110 : i32 to index
    %c0_34 = arith.constant 0 : index
    %112 = vector.load %arg13[%111, %c0_34] : memref<64x128xf32, #tpu.memory_space<vmem>>, vector<8x128xf32>
    %cst_35 = arith.constant dense<0.000000e+00> : vector<8x128xf32>
    %113 = tpu.matmul %104, %7, %cst_35 {dimension_numbers = #tpu.dot_dimension_numbers<[1], [0], [0], [1], [0, 0, 1, 1], [], []>} : vector<8x32xf32>, vector<32x128xf32>, vector<8x128xf32> -> vector<8x128xf32>
    %114 = arith.addf %112, %113 : vector<8x128xf32>
    %115 = arith.negf %114 : vector<8x128xf32>
    %116 = math.exp %115 : vector<8x128xf32>
    %cst_36 = arith.constant 1.000000e+00 : f32
    %117 = vector.broadcast %cst_36 : f32 to vector<8x128xf32>
    %118 = arith.addf %117, %116 : vector<8x128xf32>
    %119 = arith.divf %117, %118 : vector<8x128xf32>
    %120 = math.tanh %114 : vector<8x128xf32>
    %121 = vector.extract_strided_slice %119 {offsets = [0, 32], sizes = [8, 32], strides = [1, 1]} : vector<8x128xf32> to vector<8x32xf32>
    %122 = arith.mulf %121, %101 : vector<8x32xf32>
    %123 = vector.extract_strided_slice %119 {offsets = [0, 0], sizes = [8, 32], strides = [1, 1]} : vector<8x128xf32> to vector<8x32xf32>
    %124 = vector.extract_strided_slice %120 {offsets = [0, 64], sizes = [8, 32], strides = [1, 1]} : vector<8x128xf32> to vector<8x32xf32>
    %125 = arith.mulf %123, %124 : vector<8x32xf32>
    %126 = arith.addf %122, %125 : vector<8x32xf32>
    %127 = vector.extract_strided_slice %119 {offsets = [0, 96], sizes = [8, 32], strides = [1, 1]} : vector<8x128xf32> to vector<8x32xf32>
    %128 = math.tanh %126 : vector<8x32xf32>
    %129 = arith.mulf %127, %128 : vector<8x32xf32>
    %cst_37 = arith.constant 0.000000e+00 : f32
    %130 = vector.broadcast %cst_37 : f32 to vector<8x32xf32>
    %131 = arith.maximumf %129, %130 : vector<8x32xf32>
    %132 = arith.index_cast %110 : i32 to index
    %c0_38 = arith.constant 0 : index
    %133 = vector.load %arg16[%132, %c0_38] : memref<64x32xf32, #tpu.memory_space<vmem>>, vector<8x32xf32>
    tpu.vector_store %arg16[%132, %c0_38], %131 {strides = array<i32>} : memref<64x32xf32, #tpu.memory_space<vmem>>, vector<8x32xf32>,
    %c5_i32 = arith.constant 5 : i32
    %c8_i32_39 = arith.constant 8 : i32
    %134 = arith.muli %c5_i32, %c8_i32_39 : i32
    %135 = tpu.assume_multiple %134, 8 : i32
    %136 = arith.index_cast %135 : i32 to index
    %c0_40 = arith.constant 0 : index
    %137 = vector.load %arg13[%136, %c0_40] : memref<64x128xf32, #tpu.memory_space<vmem>>, vector<8x128xf32>
    %cst_41 = arith.constant dense<0.000000e+00> : vector<8x128xf32>
    %138 = tpu.matmul %129, %7, %cst_41 {dimension_numbers = #tpu.dot_dimension_numbers<[1], [0], [0], [1], [0, 0, 1, 1], [], []>} : vector<8x32xf32>, vector<32x128xf32>, vector<8x128xf32> -> vector<8x128xf32>
    %139 = arith.addf %137, %138 : vector<8x128xf32>
    %140 = arith.negf %139 : vector<8x128xf32>
    %141 = math.exp %140 : vector<8x128xf32>
    %cst_42 = arith.constant 1.000000e+00 : f32
    %142 = vector.broadcast %cst_42 : f32 to vector<8x128xf32>
    %143 = arith.addf %142, %141 : vector<8x128xf32>
    %144 = arith.divf %142, %143 : vector<8x128xf32>
    %145 = math.tanh %139 : vector<8x128xf32>
    %146 = vector.extract_strided_slice %144 {offsets = [0, 32], sizes = [8, 32], strides = [1, 1]} : vector<8x128xf32> to vector<8x32xf32>
    %147 = arith.mulf %146, %126 : vector<8x32xf32>
    %148 = vector.extract_strided_slice %144 {offsets = [0, 0], sizes = [8, 32], strides = [1, 1]} : vector<8x128xf32> to vector<8x32xf32>
    %149 = vector.extract_strided_slice %145 {offsets = [0, 64], sizes = [8, 32], strides = [1, 1]} : vector<8x128xf32> to vector<8x32xf32>
    %150 = arith.mulf %148, %149 : vector<8x32xf32>
    %151 = arith.addf %147, %150 : vector<8x32xf32>
    %152 = vector.extract_strided_slice %144 {offsets = [0, 96], sizes = [8, 32], strides = [1, 1]} : vector<8x128xf32> to vector<8x32xf32>
    %153 = math.tanh %151 : vector<8x32xf32>
    %154 = arith.mulf %152, %153 : vector<8x32xf32>
    %cst_43 = arith.constant 0.000000e+00 : f32
    %155 = vector.broadcast %cst_43 : f32 to vector<8x32xf32>
    %156 = arith.maximumf %154, %155 : vector<8x32xf32>
    %157 = arith.index_cast %135 : i32 to index
    %c0_44 = arith.constant 0 : index
    %158 = vector.load %arg16[%157, %c0_44] : memref<64x32xf32, #tpu.memory_space<vmem>>, vector<8x32xf32>
    tpu.vector_store %arg16[%157, %c0_44], %156 {strides = array<i32>} : memref<64x32xf32, #tpu.memory_space<vmem>>, vector<8x32xf32>,
    %c6_i32 = arith.constant 6 : i32
    %c8_i32_45 = arith.constant 8 : i32
    %159 = arith.muli %c6_i32, %c8_i32_45 : i32
    %160 = tpu.assume_multiple %159, 8 : i32
    %161 = arith.index_cast %160 : i32 to index
    %c0_46 = arith.constant 0 : index
    %162 = vector.load %arg13[%161, %c0_46] : memref<64x128xf32, #tpu.memory_space<vmem>>, vector<8x128xf32>
    %cst_47 = arith.constant dense<0.000000e+00> : vector<8x128xf32>
    %163 = tpu.matmul %154, %7, %cst_47 {dimension_numbers = #tpu.dot_dimension_numbers<[1], [0], [0], [1], [0, 0, 1, 1], [], []>} : vector<8x32xf32>, vector<32x128xf32>, vector<8x128xf32> -> vector<8x128xf32>
    %164 = arith.addf %162, %163 : vector<8x128xf32>
    %165 = arith.negf %164 : vector<8x128xf32>
    %166 = math.exp %165 : vector<8x128xf32>
    %cst_48 = arith.constant 1.000000e+00 : f32
    %167 = vector.broadcast %cst_48 : f32 to vector<8x128xf32>
    %168 = arith.addf %167, %166 : vector<8x128xf32>
    %169 = arith.divf %167, %168 : vector<8x128xf32>
    %170 = math.tanh %164 : vector<8x128xf32>
    %171 = vector.extract_strided_slice %169 {offsets = [0, 32], sizes = [8, 32], strides = [1, 1]} : vector<8x128xf32> to vector<8x32xf32>
    %172 = arith.mulf %171, %151 : vector<8x32xf32>
    %173 = vector.extract_strided_slice %169 {offsets = [0, 0], sizes = [8, 32], strides = [1, 1]} : vector<8x128xf32> to vector<8x32xf32>
    %174 = vector.extract_strided_slice %170 {offsets = [0, 64], sizes = [8, 32], strides = [1, 1]} : vector<8x128xf32> to vector<8x32xf32>
    %175 = arith.mulf %173, %174 : vector<8x32xf32>
    %176 = arith.addf %172, %175 : vector<8x32xf32>
    %177 = vector.extract_strided_slice %169 {offsets = [0, 96], sizes = [8, 32], strides = [1, 1]} : vector<8x128xf32> to vector<8x32xf32>
    %178 = math.tanh %176 : vector<8x32xf32>
    %179 = arith.mulf %177, %178 : vector<8x32xf32>
    %cst_49 = arith.constant 0.000000e+00 : f32
    %180 = vector.broadcast %cst_49 : f32 to vector<8x32xf32>
    %181 = arith.maximumf %179, %180 : vector<8x32xf32>
    %182 = arith.index_cast %160 : i32 to index
    %c0_50 = arith.constant 0 : index
    %183 = vector.load %arg16[%182, %c0_50] : memref<64x32xf32, #tpu.memory_space<vmem>>, vector<8x32xf32>
    tpu.vector_store %arg16[%182, %c0_50], %181 {strides = array<i32>} : memref<64x32xf32, #tpu.memory_space<vmem>>, vector<8x32xf32>,
    %c7_i32 = arith.constant 7 : i32
    %c8_i32_51 = arith.constant 8 : i32
    %184 = arith.muli %c7_i32, %c8_i32_51 : i32
    %185 = tpu.assume_multiple %184, 8 : i32
    %186 = arith.index_cast %185 : i32 to index
    %c0_52 = arith.constant 0 : index
    %187 = vector.load %arg13[%186, %c0_52] : memref<64x128xf32, #tpu.memory_space<vmem>>, vector<8x128xf32>
    %cst_53 = arith.constant dense<0.000000e+00> : vector<8x128xf32>
    %188 = tpu.matmul %179, %7, %cst_53 {dimension_numbers = #tpu.dot_dimension_numbers<[1], [0], [0], [1], [0, 0, 1, 1], [], []>} : vector<8x32xf32>, vector<32x128xf32>, vector<8x128xf32> -> vector<8x128xf32>
    %189 = arith.addf %187, %188 : vector<8x128xf32>
    %190 = arith.negf %189 : vector<8x128xf32>
    %191 = math.exp %190 : vector<8x128xf32>
    %cst_54 = arith.constant 1.000000e+00 : f32
    %192 = vector.broadcast %cst_54 : f32 to vector<8x128xf32>
    %193 = arith.addf %192, %191 : vector<8x128xf32>
    %194 = arith.divf %192, %193 : vector<8x128xf32>
    %195 = math.tanh %189 : vector<8x128xf32>
    %196 = vector.extract_strided_slice %194 {offsets = [0, 32], sizes = [8, 32], strides = [1, 1]} : vector<8x128xf32> to vector<8x32xf32>
    %197 = arith.mulf %196, %176 : vector<8x32xf32>
    %198 = vector.extract_strided_slice %194 {offsets = [0, 0], sizes = [8, 32], strides = [1, 1]} : vector<8x128xf32> to vector<8x32xf32>
    %199 = vector.extract_strided_slice %195 {offsets = [0, 64], sizes = [8, 32], strides = [1, 1]} : vector<8x128xf32> to vector<8x32xf32>
    %200 = arith.mulf %198, %199 : vector<8x32xf32>
    %201 = arith.addf %197, %200 : vector<8x32xf32>
    %202 = vector.extract_strided_slice %194 {offsets = [0, 96], sizes = [8, 32], strides = [1, 1]} : vector<8x128xf32> to vector<8x32xf32>
    %203 = math.tanh %201 : vector<8x32xf32>
    %204 = arith.mulf %202, %203 : vector<8x32xf32>
    %cst_55 = arith.constant 0.000000e+00 : f32
    %205 = vector.broadcast %cst_55 : f32 to vector<8x32xf32>
    %206 = arith.maximumf %204, %205 : vector<8x32xf32>
    %207 = arith.index_cast %185 : i32 to index
    %c0_56 = arith.constant 0 : index
    %208 = vector.load %arg16[%207, %c0_56] : memref<64x32xf32, #tpu.memory_space<vmem>>, vector<8x32xf32>
    tpu.vector_store %arg16[%207, %c0_56], %206 {strides = array<i32>} : memref<64x32xf32, #tpu.memory_space<vmem>>, vector<8x32xf32>,
    %c8_i32_57 = arith.constant 8 : i32
    %c0_58 = arith.constant 0 : index
    %c0_59 = arith.constant 0 : index
    %209 = vector.load %arg16[%c0_58, %c0_59] : memref<64x32xf32, #tpu.memory_space<vmem>>, vector<64x32xf32>
    %c0_60 = arith.constant 0 : index
    %c0_61 = arith.constant 0 : index
    %210 = vector.load %arg4[%c0_60, %c0_61] : memref<32x128xf32, #tpu.memory_space<vmem>>, vector<32x128xf32>
    %cst_62 = arith.constant dense<0.000000e+00> : vector<64x128xf32>
    %211 = tpu.matmul %209, %210, %cst_62 {dimension_numbers = #tpu.dot_dimension_numbers<[1], [0], [0], [1], [0, 0, 1, 1], [], []>} : vector<64x32xf32>, vector<32x128xf32>, vector<64x128xf32> -> vector<64x128xf32>
    %c0_63 = arith.constant 0 : index
    %c0_64 = arith.constant 0 : index
    %212 = vector.load %arg6[%c0_63, %c0_64] : memref<1x128xf32, #tpu.memory_space<vmem>>, vector<1x128xf32>
    %213 = vector.broadcast %212 : vector<1x128xf32> to vector<64x128xf32>
    %214 = arith.addf %211, %213 : vector<64x128xf32>
    %c0_65 = arith.constant 0 : index
    %c0_66 = arith.constant 0 : index
    %215 = vector.load %arg14[%c0_65, %c0_66] : memref<64x128xf32, #tpu.memory_space<vmem>>, vector<64x128xf32>
    tpu.vector_store %arg14[%c0_65, %c0_66], %214 {strides = array<i32>} : memref<64x128xf32, #tpu.memory_space<vmem>>, vector<64x128xf32>,
    %c0_67 = arith.constant 0 : index
    %c0_68 = arith.constant 0 : index
    %216 = vector.load %arg5[%c0_67, %c0_68] : memref<32x128xf32, #tpu.memory_space<vmem>>, vector<32x128xf32>
    %cst_69 = arith.constant 0.000000e+00 : f32
    %217 = vector.broadcast %cst_69 : f32 to vector<8x32xf32>
    %c0_i32_70 = arith.constant 0 : i32
    %c8_i32_71 = arith.constant 8 : i32
    %218 = arith.muli %c0_i32_70, %c8_i32_71 : i32
    %219 = tpu.assume_multiple %218, 8 : i32
    %220 = arith.index_cast %219 : i32 to index
    %c0_72 = arith.constant 0 : index
    %221 = vector.load %arg14[%220, %c0_72] : memref<64x128xf32, #tpu.memory_space<vmem>>, vector<8x128xf32>
    %cst_73 = arith.constant dense<0.000000e+00> : vector<8x128xf32>
    %222 = tpu.matmul %217, %216, %cst_73 {dimension_numbers = #tpu.dot_dimension_numbers<[1], [0], [0], [1], [0, 0, 1, 1], [], []>} : vector<8x32xf32>, vector<32x128xf32>, vector<8x128xf32> -> vector<8x128xf32>
    %223 = arith.addf %221, %222 : vector<8x128xf32>
    %224 = arith.negf %223 : vector<8x128xf32>
    %225 = math.exp %224 : vector<8x128xf32>
    %cst_74 = arith.constant 1.000000e+00 : f32
    %226 = vector.broadcast %cst_74 : f32 to vector<8x128xf32>
    %227 = arith.addf %226, %225 : vector<8x128xf32>
    %228 = arith.divf %226, %227 : vector<8x128xf32>
    %229 = math.tanh %223 : vector<8x128xf32>
    %230 = vector.extract_strided_slice %228 {offsets = [0, 32], sizes = [8, 32], strides = [1, 1]} : vector<8x128xf32> to vector<8x32xf32>
    %231 = arith.mulf %230, %217 : vector<8x32xf32>
    %232 = vector.extract_strided_slice %228 {offsets = [0, 0], sizes = [8, 32], strides = [1, 1]} : vector<8x128xf32> to vector<8x32xf32>
    %233 = vector.extract_strided_slice %229 {offsets = [0, 64], sizes = [8, 32], strides = [1, 1]} : vector<8x128xf32> to vector<8x32xf32>
    %234 = arith.mulf %232, %233 : vector<8x32xf32>
    %235 = arith.addf %231, %234 : vector<8x32xf32>
    %236 = vector.extract_strided_slice %228 {offsets = [0, 96], sizes = [8, 32], strides = [1, 1]} : vector<8x128xf32> to vector<8x32xf32>
    %237 = math.tanh %235 : vector<8x32xf32>
    %238 = arith.mulf %236, %237 : vector<8x32xf32>
    %cst_75 = arith.constant 0.000000e+00 : f32
    %239 = vector.broadcast %cst_75 : f32 to vector<8x32xf32>
    %240 = arith.maximumf %238, %239 : vector<8x32xf32>
    %241 = arith.index_cast %219 : i32 to index
    %c0_76 = arith.constant 0 : index
    %242 = vector.load %arg17[%241, %c0_76] : memref<64x32xf32, #tpu.memory_space<vmem>>, vector<8x32xf32>
    tpu.vector_store %arg17[%241, %c0_76], %240 {strides = array<i32>} : memref<64x32xf32, #tpu.memory_space<vmem>>, vector<8x32xf32>,
    %c1_i32_77 = arith.constant 1 : i32
    %c8_i32_78 = arith.constant 8 : i32
    %243 = arith.muli %c1_i32_77, %c8_i32_78 : i32
    %244 = tpu.assume_multiple %243, 8 : i32
    %245 = arith.index_cast %244 : i32 to index
    %c0_79 = arith.constant 0 : index
    %246 = vector.load %arg14[%245, %c0_79] : memref<64x128xf32, #tpu.memory_space<vmem>>, vector<8x128xf32>
    %cst_80 = arith.constant dense<0.000000e+00> : vector<8x128xf32>
    %247 = tpu.matmul %238, %216, %cst_80 {dimension_numbers = #tpu.dot_dimension_numbers<[1], [0], [0], [1], [0, 0, 1, 1], [], []>} : vector<8x32xf32>, vector<32x128xf32>, vector<8x128xf32> -> vector<8x128xf32>
    %248 = arith.addf %246, %247 : vector<8x128xf32>
    %249 = arith.negf %248 : vector<8x128xf32>
    %250 = math.exp %249 : vector<8x128xf32>
    %cst_81 = arith.constant 1.000000e+00 : f32
    %251 = vector.broadcast %cst_81 : f32 to vector<8x128xf32>
    %252 = arith.addf %251, %250 : vector<8x128xf32>
    %253 = arith.divf %251, %252 : vector<8x128xf32>
    %254 = math.tanh %248 : vector<8x128xf32>
    %255 = vector.extract_strided_slice %253 {offsets = [0, 32], sizes = [8, 32], strides = [1, 1]} : vector<8x128xf32> to vector<8x32xf32>
    %256 = arith.mulf %255, %235 : vector<8x32xf32>
    %257 = vector.extract_strided_slice %253 {offsets = [0, 0], sizes = [8, 32], strides = [1, 1]} : vector<8x128xf32> to vector<8x32xf32>
    %258 = vector.extract_strided_slice %254 {offsets = [0, 64], sizes = [8, 32], strides = [1, 1]} : vector<8x128xf32> to vector<8x32xf32>
    %259 = arith.mulf %257, %258 : vector<8x32xf32>
    %260 = arith.addf %256, %259 : vector<8x32xf32>
    %261 = vector.extract_strided_slice %253 {offsets = [0, 96], sizes = [8, 32], strides = [1, 1]} : vector<8x128xf32> to vector<8x32xf32>
    %262 = math.tanh %260 : vector<8x32xf32>
    %263 = arith.mulf %261, %262 : vector<8x32xf32>
    %cst_82 = arith.constant 0.000000e+00 : f32
    %264 = vector.broadcast %cst_82 : f32 to vector<8x32xf32>
    %265 = arith.maximumf %263, %264 : vector<8x32xf32>
    %266 = arith.index_cast %244 : i32 to index
    %c0_83 = arith.constant 0 : index
    %267 = vector.load %arg17[%266, %c0_83] : memref<64x32xf32, #tpu.memory_space<vmem>>, vector<8x32xf32>
    tpu.vector_store %arg17[%266, %c0_83], %265 {strides = array<i32>} : memref<64x32xf32, #tpu.memory_space<vmem>>, vector<8x32xf32>,
    %c2_i32_84 = arith.constant 2 : i32
    %c8_i32_85 = arith.constant 8 : i32
    %268 = arith.muli %c2_i32_84, %c8_i32_85 : i32
    %269 = tpu.assume_multiple %268, 8 : i32
    %270 = arith.index_cast %269 : i32 to index
    %c0_86 = arith.constant 0 : index
    %271 = vector.load %arg14[%270, %c0_86] : memref<64x128xf32, #tpu.memory_space<vmem>>, vector<8x128xf32>
    %cst_87 = arith.constant dense<0.000000e+00> : vector<8x128xf32>
    %272 = tpu.matmul %263, %216, %cst_87 {dimension_numbers = #tpu.dot_dimension_numbers<[1], [0], [0], [1], [0, 0, 1, 1], [], []>} : vector<8x32xf32>, vector<32x128xf32>, vector<8x128xf32> -> vector<8x128xf32>
    %273 = arith.addf %271, %272 : vector<8x128xf32>
    %274 = arith.negf %273 : vector<8x128xf32>
    %275 = math.exp %274 : vector<8x128xf32>
    %cst_88 = arith.constant 1.000000e+00 : f32
    %276 = vector.broadcast %cst_88 : f32 to vector<8x128xf32>
    %277 = arith.addf %276, %275 : vector<8x128xf32>
    %278 = arith.divf %276, %277 : vector<8x128xf32>
    %279 = math.tanh %273 : vector<8x128xf32>
    %280 = vector.extract_strided_slice %278 {offsets = [0, 32], sizes = [8, 32], strides = [1, 1]} : vector<8x128xf32> to vector<8x32xf32>
    %281 = arith.mulf %280, %260 : vector<8x32xf32>
    %282 = vector.extract_strided_slice %278 {offsets = [0, 0], sizes = [8, 32], strides = [1, 1]} : vector<8x128xf32> to vector<8x32xf32>
    %283 = vector.extract_strided_slice %279 {offsets = [0, 64], sizes = [8, 32], strides = [1, 1]} : vector<8x128xf32> to vector<8x32xf32>
    %284 = arith.mulf %282, %283 : vector<8x32xf32>
    %285 = arith.addf %281, %284 : vector<8x32xf32>
    %286 = vector.extract_strided_slice %278 {offsets = [0, 96], sizes = [8, 32], strides = [1, 1]} : vector<8x128xf32> to vector<8x32xf32>
    %287 = math.tanh %285 : vector<8x32xf32>
    %288 = arith.mulf %286, %287 : vector<8x32xf32>
    %cst_89 = arith.constant 0.000000e+00 : f32
    %289 = vector.broadcast %cst_89 : f32 to vector<8x32xf32>
    %290 = arith.maximumf %288, %289 : vector<8x32xf32>
    %291 = arith.index_cast %269 : i32 to index
    %c0_90 = arith.constant 0 : index
    %292 = vector.load %arg17[%291, %c0_90] : memref<64x32xf32, #tpu.memory_space<vmem>>, vector<8x32xf32>
    tpu.vector_store %arg17[%291, %c0_90], %290 {strides = array<i32>} : memref<64x32xf32, #tpu.memory_space<vmem>>, vector<8x32xf32>,
    %c3_i32_91 = arith.constant 3 : i32
    %c8_i32_92 = arith.constant 8 : i32
    %293 = arith.muli %c3_i32_91, %c8_i32_92 : i32
    %294 = tpu.assume_multiple %293, 8 : i32
    %295 = arith.index_cast %294 : i32 to index
    %c0_93 = arith.constant 0 : index
    %296 = vector.load %arg14[%295, %c0_93] : memref<64x128xf32, #tpu.memory_space<vmem>>, vector<8x128xf32>
    %cst_94 = arith.constant dense<0.000000e+00> : vector<8x128xf32>
    %297 = tpu.matmul %288, %216, %cst_94 {dimension_numbers = #tpu.dot_dimension_numbers<[1], [0], [0], [1], [0, 0, 1, 1], [], []>} : vector<8x32xf32>, vector<32x128xf32>, vector<8x128xf32> -> vector<8x128xf32>
    %298 = arith.addf %296, %297 : vector<8x128xf32>
    %299 = arith.negf %298 : vector<8x128xf32>
    %300 = math.exp %299 : vector<8x128xf32>
    %cst_95 = arith.constant 1.000000e+00 : f32
    %301 = vector.broadcast %cst_95 : f32 to vector<8x128xf32>
    %302 = arith.addf %301, %300 : vector<8x128xf32>
    %303 = arith.divf %301, %302 : vector<8x128xf32>
    %304 = math.tanh %298 : vector<8x128xf32>
    %305 = vector.extract_strided_slice %303 {offsets = [0, 32], sizes = [8, 32], strides = [1, 1]} : vector<8x128xf32> to vector<8x32xf32>
    %306 = arith.mulf %305, %285 : vector<8x32xf32>
    %307 = vector.extract_strided_slice %303 {offsets = [0, 0], sizes = [8, 32], strides = [1, 1]} : vector<8x128xf32> to vector<8x32xf32>
    %308 = vector.extract_strided_slice %304 {offsets = [0, 64], sizes = [8, 32], strides = [1, 1]} : vector<8x128xf32> to vector<8x32xf32>
    %309 = arith.mulf %307, %308 : vector<8x32xf32>
    %310 = arith.addf %306, %309 : vector<8x32xf32>
    %311 = vector.extract_strided_slice %303 {offsets = [0, 96], sizes = [8, 32], strides = [1, 1]} : vector<8x128xf32> to vector<8x32xf32>
    %312 = math.tanh %310 : vector<8x32xf32>
    %313 = arith.mulf %311, %312 : vector<8x32xf32>
    %cst_96 = arith.constant 0.000000e+00 : f32
    %314 = vector.broadcast %cst_96 : f32 to vector<8x32xf32>
    %315 = arith.maximumf %313, %314 : vector<8x32xf32>
    %316 = arith.index_cast %294 : i32 to index
    %c0_97 = arith.constant 0 : index
    %317 = vector.load %arg17[%316, %c0_97] : memref<64x32xf32, #tpu.memory_space<vmem>>, vector<8x32xf32>
    tpu.vector_store %arg17[%316, %c0_97], %315 {strides = array<i32>} : memref<64x32xf32, #tpu.memory_space<vmem>>, vector<8x32xf32>,
    %c4_i32_98 = arith.constant 4 : i32
    %c8_i32_99 = arith.constant 8 : i32
    %318 = arith.muli %c4_i32_98, %c8_i32_99 : i32
    %319 = tpu.assume_multiple %318, 8 : i32
    %320 = arith.index_cast %319 : i32 to index
    %c0_100 = arith.constant 0 : index
    %321 = vector.load %arg14[%320, %c0_100] : memref<64x128xf32, #tpu.memory_space<vmem>>, vector<8x128xf32>
    %cst_101 = arith.constant dense<0.000000e+00> : vector<8x128xf32>
    %322 = tpu.matmul %313, %216, %cst_101 {dimension_numbers = #tpu.dot_dimension_numbers<[1], [0], [0], [1], [0, 0, 1, 1], [], []>} : vector<8x32xf32>, vector<32x128xf32>, vector<8x128xf32> -> vector<8x128xf32>
    %323 = arith.addf %321, %322 : vector<8x128xf32>
    %324 = arith.negf %323 : vector<8x128xf32>
    %325 = math.exp %324 : vector<8x128xf32>
    %cst_102 = arith.constant 1.000000e+00 : f32
    %326 = vector.broadcast %cst_102 : f32 to vector<8x128xf32>
    %327 = arith.addf %326, %325 : vector<8x128xf32>
    %328 = arith.divf %326, %327 : vector<8x128xf32>
    %329 = math.tanh %323 : vector<8x128xf32>
    %330 = vector.extract_strided_slice %328 {offsets = [0, 32], sizes = [8, 32], strides = [1, 1]} : vector<8x128xf32> to vector<8x32xf32>
    %331 = arith.mulf %330, %310 : vector<8x32xf32>
    %332 = vector.extract_strided_slice %328 {offsets = [0, 0], sizes = [8, 32], strides = [1, 1]} : vector<8x128xf32> to vector<8x32xf32>
    %333 = vector.extract_strided_slice %329 {offsets = [0, 64], sizes = [8, 32], strides = [1, 1]} : vector<8x128xf32> to vector<8x32xf32>
    %334 = arith.mulf %332, %333 : vector<8x32xf32>
    %335 = arith.addf %331, %334 : vector<8x32xf32>
    %336 = vector.extract_strided_slice %328 {offsets = [0, 96], sizes = [8, 32], strides = [1, 1]} : vector<8x128xf32> to vector<8x32xf32>
    %337 = math.tanh %335 : vector<8x32xf32>
    %338 = arith.mulf %336, %337 : vector<8x32xf32>
    %cst_103 = arith.constant 0.000000e+00 : f32
    %339 = vector.broadcast %cst_103 : f32 to vector<8x32xf32>
    %340 = arith.maximumf %338, %339 : vector<8x32xf32>
    %341 = arith.index_cast %319 : i32 to index
    %c0_104 = arith.constant 0 : index
    %342 = vector.load %arg17[%341, %c0_104] : memref<64x32xf32, #tpu.memory_space<vmem>>, vector<8x32xf32>
    tpu.vector_store %arg17[%341, %c0_104], %340 {strides = array<i32>} : memref<64x32xf32, #tpu.memory_space<vmem>>, vector<8x32xf32>,
    %c5_i32_105 = arith.constant 5 : i32
    %c8_i32_106 = arith.constant 8 : i32
    %343 = arith.muli %c5_i32_105, %c8_i32_106 : i32
    %344 = tpu.assume_multiple %343, 8 : i32
    %345 = arith.index_cast %344 : i32 to index
    %c0_107 = arith.constant 0 : index
    %346 = vector.load %arg14[%345, %c0_107] : memref<64x128xf32, #tpu.memory_space<vmem>>, vector<8x128xf32>
    %cst_108 = arith.constant dense<0.000000e+00> : vector<8x128xf32>
    %347 = tpu.matmul %338, %216, %cst_108 {dimension_numbers = #tpu.dot_dimension_numbers<[1], [0], [0], [1], [0, 0, 1, 1], [], []>} : vector<8x32xf32>, vector<32x128xf32>, vector<8x128xf32> -> vector<8x128xf32>
    %348 = arith.addf %346, %347 : vector<8x128xf32>
    %349 = arith.negf %348 : vector<8x128xf32>
    %350 = math.exp %349 : vector<8x128xf32>
    %cst_109 = arith.constant 1.000000e+00 : f32
    %351 = vector.broadcast %cst_109 : f32 to vector<8x128xf32>
    %352 = arith.addf %351, %350 : vector<8x128xf32>
    %353 = arith.divf %351, %352 : vector<8x128xf32>
    %354 = math.tanh %348 : vector<8x128xf32>
    %355 = vector.extract_strided_slice %353 {offsets = [0, 32], sizes = [8, 32], strides = [1, 1]} : vector<8x128xf32> to vector<8x32xf32>
    %356 = arith.mulf %355, %335 : vector<8x32xf32>
    %357 = vector.extract_strided_slice %353 {offsets = [0, 0], sizes = [8, 32], strides = [1, 1]} : vector<8x128xf32> to vector<8x32xf32>
    %358 = vector.extract_strided_slice %354 {offsets = [0, 64], sizes = [8, 32], strides = [1, 1]} : vector<8x128xf32> to vector<8x32xf32>
    %359 = arith.mulf %357, %358 : vector<8x32xf32>
    %360 = arith.addf %356, %359 : vector<8x32xf32>
    %361 = vector.extract_strided_slice %353 {offsets = [0, 96], sizes = [8, 32], strides = [1, 1]} : vector<8x128xf32> to vector<8x32xf32>
    %362 = math.tanh %360 : vector<8x32xf32>
    %363 = arith.mulf %361, %362 : vector<8x32xf32>
    %cst_110 = arith.constant 0.000000e+00 : f32
    %364 = vector.broadcast %cst_110 : f32 to vector<8x32xf32>
    %365 = arith.maximumf %363, %364 : vector<8x32xf32>
    %366 = arith.index_cast %344 : i32 to index
    %c0_111 = arith.constant 0 : index
    %367 = vector.load %arg17[%366, %c0_111] : memref<64x32xf32, #tpu.memory_space<vmem>>, vector<8x32xf32>
    tpu.vector_store %arg17[%366, %c0_111], %365 {strides = array<i32>} : memref<64x32xf32, #tpu.memory_space<vmem>>, vector<8x32xf32>,
    %c6_i32_112 = arith.constant 6 : i32
    %c8_i32_113 = arith.constant 8 : i32
    %368 = arith.muli %c6_i32_112, %c8_i32_113 : i32
    %369 = tpu.assume_multiple %368, 8 : i32
    %370 = arith.index_cast %369 : i32 to index
    %c0_114 = arith.constant 0 : index
    %371 = vector.load %arg14[%370, %c0_114] : memref<64x128xf32, #tpu.memory_space<vmem>>, vector<8x128xf32>
    %cst_115 = arith.constant dense<0.000000e+00> : vector<8x128xf32>
    %372 = tpu.matmul %363, %216, %cst_115 {dimension_numbers = #tpu.dot_dimension_numbers<[1], [0], [0], [1], [0, 0, 1, 1], [], []>} : vector<8x32xf32>, vector<32x128xf32>, vector<8x128xf32> -> vector<8x128xf32>
    %373 = arith.addf %371, %372 : vector<8x128xf32>
    %374 = arith.negf %373 : vector<8x128xf32>
    %375 = math.exp %374 : vector<8x128xf32>
    %cst_116 = arith.constant 1.000000e+00 : f32
    %376 = vector.broadcast %cst_116 : f32 to vector<8x128xf32>
    %377 = arith.addf %376, %375 : vector<8x128xf32>
    %378 = arith.divf %376, %377 : vector<8x128xf32>
    %379 = math.tanh %373 : vector<8x128xf32>
    %380 = vector.extract_strided_slice %378 {offsets = [0, 32], sizes = [8, 32], strides = [1, 1]} : vector<8x128xf32> to vector<8x32xf32>
    %381 = arith.mulf %380, %360 : vector<8x32xf32>
    %382 = vector.extract_strided_slice %378 {offsets = [0, 0], sizes = [8, 32], strides = [1, 1]} : vector<8x128xf32> to vector<8x32xf32>
    %383 = vector.extract_strided_slice %379 {offsets = [0, 64], sizes = [8, 32], strides = [1, 1]} : vector<8x128xf32> to vector<8x32xf32>
    %384 = arith.mulf %382, %383 : vector<8x32xf32>
    %385 = arith.addf %381, %384 : vector<8x32xf32>
    %386 = vector.extract_strided_slice %378 {offsets = [0, 96], sizes = [8, 32], strides = [1, 1]} : vector<8x128xf32> to vector<8x32xf32>
    %387 = math.tanh %385 : vector<8x32xf32>
    %388 = arith.mulf %386, %387 : vector<8x32xf32>
    %cst_117 = arith.constant 0.000000e+00 : f32
    %389 = vector.broadcast %cst_117 : f32 to vector<8x32xf32>
    %390 = arith.maximumf %388, %389 : vector<8x32xf32>
    %391 = arith.index_cast %369 : i32 to index
    %c0_118 = arith.constant 0 : index
    %392 = vector.load %arg17[%391, %c0_118] : memref<64x32xf32, #tpu.memory_space<vmem>>, vector<8x32xf32>
    tpu.vector_store %arg17[%391, %c0_118], %390 {strides = array<i32>} : memref<64x32xf32, #tpu.memory_space<vmem>>, vector<8x32xf32>,
    %c7_i32_119 = arith.constant 7 : i32
    %c8_i32_120 = arith.constant 8 : i32
    %393 = arith.muli %c7_i32_119, %c8_i32_120 : i32
    %394 = tpu.assume_multiple %393, 8 : i32
    %395 = arith.index_cast %394 : i32 to index
    %c0_121 = arith.constant 0 : index
    %396 = vector.load %arg14[%395, %c0_121] : memref<64x128xf32, #tpu.memory_space<vmem>>, vector<8x128xf32>
    %cst_122 = arith.constant dense<0.000000e+00> : vector<8x128xf32>
    %397 = tpu.matmul %388, %216, %cst_122 {dimension_numbers = #tpu.dot_dimension_numbers<[1], [0], [0], [1], [0, 0, 1, 1], [], []>} : vector<8x32xf32>, vector<32x128xf32>, vector<8x128xf32> -> vector<8x128xf32>
    %398 = arith.addf %396, %397 : vector<8x128xf32>
    %399 = arith.negf %398 : vector<8x128xf32>
    %400 = math.exp %399 : vector<8x128xf32>
    %cst_123 = arith.constant 1.000000e+00 : f32
    %401 = vector.broadcast %cst_123 : f32 to vector<8x128xf32>
    %402 = arith.addf %401, %400 : vector<8x128xf32>
    %403 = arith.divf %401, %402 : vector<8x128xf32>
    %404 = math.tanh %398 : vector<8x128xf32>
    %405 = vector.extract_strided_slice %403 {offsets = [0, 32], sizes = [8, 32], strides = [1, 1]} : vector<8x128xf32> to vector<8x32xf32>
    %406 = arith.mulf %405, %385 : vector<8x32xf32>
    %407 = vector.extract_strided_slice %403 {offsets = [0, 0], sizes = [8, 32], strides = [1, 1]} : vector<8x128xf32> to vector<8x32xf32>
    %408 = vector.extract_strided_slice %404 {offsets = [0, 64], sizes = [8, 32], strides = [1, 1]} : vector<8x128xf32> to vector<8x32xf32>
    %409 = arith.mulf %407, %408 : vector<8x32xf32>
    %410 = arith.addf %406, %409 : vector<8x32xf32>
    %411 = vector.extract_strided_slice %403 {offsets = [0, 96], sizes = [8, 32], strides = [1, 1]} : vector<8x128xf32> to vector<8x32xf32>
    %412 = math.tanh %410 : vector<8x32xf32>
    %413 = arith.mulf %411, %412 : vector<8x32xf32>
    %cst_124 = arith.constant 0.000000e+00 : f32
    %414 = vector.broadcast %cst_124 : f32 to vector<8x32xf32>
    %415 = arith.maximumf %413, %414 : vector<8x32xf32>
    %416 = arith.index_cast %394 : i32 to index
    %c0_125 = arith.constant 0 : index
    %417 = vector.load %arg17[%416, %c0_125] : memref<64x32xf32, #tpu.memory_space<vmem>>, vector<8x32xf32>
    tpu.vector_store %arg17[%416, %c0_125], %415 {strides = array<i32>} : memref<64x32xf32, #tpu.memory_space<vmem>>, vector<8x32xf32>,
    %c8_i32_126 = arith.constant 8 : i32
    %c0_127 = arith.constant 0 : index
    %c0_128 = arith.constant 0 : index
    %418 = vector.load %arg17[%c0_127, %c0_128] : memref<64x32xf32, #tpu.memory_space<vmem>>, vector<64x32xf32>
    %c0_129 = arith.constant 0 : index
    %c0_130 = arith.constant 0 : index
    %419 = vector.load %arg7[%c0_129, %c0_130] : memref<32x128xf32, #tpu.memory_space<vmem>>, vector<32x128xf32>
    %cst_131 = arith.constant dense<0.000000e+00> : vector<64x128xf32>
    %420 = tpu.matmul %418, %419, %cst_131 {dimension_numbers = #tpu.dot_dimension_numbers<[1], [0], [0], [1], [0, 0, 1, 1], [], []>} : vector<64x32xf32>, vector<32x128xf32>, vector<64x128xf32> -> vector<64x128xf32>
    %c0_132 = arith.constant 0 : index
    %c0_133 = arith.constant 0 : index
    %421 = vector.load %arg9[%c0_132, %c0_133] : memref<1x128xf32, #tpu.memory_space<vmem>>, vector<1x128xf32>
    %422 = vector.broadcast %421 : vector<1x128xf32> to vector<64x128xf32>
    %423 = arith.addf %420, %422 : vector<64x128xf32>
    %c0_134 = arith.constant 0 : index
    %c0_135 = arith.constant 0 : index
    %424 = vector.load %arg15[%c0_134, %c0_135] : memref<64x128xf32, #tpu.memory_space<vmem>>, vector<64x128xf32>
    tpu.vector_store %arg15[%c0_134, %c0_135], %423 {strides = array<i32>} : memref<64x128xf32, #tpu.memory_space<vmem>>, vector<64x128xf32>,
    %c0_136 = arith.constant 0 : index
    %c0_137 = arith.constant 0 : index
    %425 = vector.load %arg8[%c0_136, %c0_137] : memref<32x128xf32, #tpu.memory_space<vmem>>, vector<32x128xf32>
    %cst_138 = arith.constant 0.000000e+00 : f32
    %426 = vector.broadcast %cst_138 : f32 to vector<8x32xf32>
    %cst_139 = arith.constant 0.000000e+00 : f32
    %427 = vector.broadcast %cst_139 : f32 to vector<8x9xf32>
    %c0_i32_140 = arith.constant 0 : i32
    %c8_i32_141 = arith.constant 8 : i32
    %428 = arith.muli %c0_i32_140, %c8_i32_141 : i32
    %429 = tpu.assume_multiple %428, 8 : i32
    %430 = arith.index_cast %429 : i32 to index
    %c0_142 = arith.constant 0 : index
    %431 = vector.load %arg15[%430, %c0_142] : memref<64x128xf32, #tpu.memory_space<vmem>>, vector<8x128xf32>
    %cst_143 = arith.constant dense<0.000000e+00> : vector<8x128xf32>
    %432 = tpu.matmul %426, %425, %cst_143 {dimension_numbers = #tpu.dot_dimension_numbers<[1], [0], [0], [1], [0, 0, 1, 1], [], []>} : vector<8x32xf32>, vector<32x128xf32>, vector<8x128xf32> -> vector<8x128xf32>
    %433 = arith.addf %431, %432 : vector<8x128xf32>
    %434 = arith.negf %433 : vector<8x128xf32>
    %435 = math.exp %434 : vector<8x128xf32>
    %cst_144 = arith.constant 1.000000e+00 : f32
    %436 = vector.broadcast %cst_144 : f32 to vector<8x128xf32>
    %437 = arith.addf %436, %435 : vector<8x128xf32>
    %438 = arith.divf %436, %437 : vector<8x128xf32>
    %439 = math.tanh %433 : vector<8x128xf32>
    %440 = vector.extract_strided_slice %438 {offsets = [0, 32], sizes = [8, 32], strides = [1, 1]} : vector<8x128xf32> to vector<8x32xf32>
    %441 = arith.mulf %440, %426 : vector<8x32xf32>
    %442 = vector.extract_strided_slice %438 {offsets = [0, 0], sizes = [8, 32], strides = [1, 1]} : vector<8x128xf32> to vector<8x32xf32>
    %443 = vector.extract_strided_slice %439 {offsets = [0, 64], sizes = [8, 32], strides = [1, 1]} : vector<8x128xf32> to vector<8x32xf32>
    %444 = arith.mulf %442, %443 : vector<8x32xf32>
    %445 = arith.addf %441, %444 : vector<8x32xf32>
    %446 = vector.extract_strided_slice %438 {offsets = [0, 96], sizes = [8, 32], strides = [1, 1]} : vector<8x128xf32> to vector<8x32xf32>
    %447 = math.tanh %445 : vector<8x32xf32>
    %448 = arith.mulf %446, %447 : vector<8x32xf32>
    %cst_145 = arith.constant 0.000000e+00 : f32
    %449 = vector.broadcast %cst_145 : f32 to vector<8x32xf32>
    %450 = arith.maximumf %448, %449 : vector<8x32xf32>
    %c32_i32 = arith.constant 32 : i32
    %451 = arith.muli %c0_i32_140, %c32_i32 : i32
    %452 = tpu.assume_multiple %451, 32 : i32
    %453 = arith.index_cast %452 : i32 to index
    %c0_146 = arith.constant 0 : index
    %454 = vector.load %arg10[%453, %c0_146] : memref<256x9xf32, #tpu.memory_space<vmem>>, vector<32x9xf32>
    %cst_147 = arith.constant dense<0.000000e+00> : vector<8x9xf32>
    %455 = tpu.matmul %450, %454, %cst_147 {dimension_numbers = #tpu.dot_dimension_numbers<[1], [0], [0], [1], [0, 0, 1, 1], [], []>} : vector<8x32xf32>, vector<32x9xf32>, vector<8x9xf32> -> vector<8x9xf32>
    %456 = arith.addf %427, %455 : vector<8x9xf32>
    %c1_i32_148 = arith.constant 1 : i32
    %c8_i32_149 = arith.constant 8 : i32
    %457 = arith.muli %c1_i32_148, %c8_i32_149 : i32
    %458 = tpu.assume_multiple %457, 8 : i32
    %459 = arith.index_cast %458 : i32 to index
    %c0_150 = arith.constant 0 : index
    %460 = vector.load %arg15[%459, %c0_150] : memref<64x128xf32, #tpu.memory_space<vmem>>, vector<8x128xf32>
    %cst_151 = arith.constant dense<0.000000e+00> : vector<8x128xf32>
    %461 = tpu.matmul %448, %425, %cst_151 {dimension_numbers = #tpu.dot_dimension_numbers<[1], [0], [0], [1], [0, 0, 1, 1], [], []>} : vector<8x32xf32>, vector<32x128xf32>, vector<8x128xf32> -> vector<8x128xf32>
    %462 = arith.addf %460, %461 : vector<8x128xf32>
    %463 = arith.negf %462 : vector<8x128xf32>
    %464 = math.exp %463 : vector<8x128xf32>
    %cst_152 = arith.constant 1.000000e+00 : f32
    %465 = vector.broadcast %cst_152 : f32 to vector<8x128xf32>
    %466 = arith.addf %465, %464 : vector<8x128xf32>
    %467 = arith.divf %465, %466 : vector<8x128xf32>
    %468 = math.tanh %462 : vector<8x128xf32>
    %469 = vector.extract_strided_slice %467 {offsets = [0, 32], sizes = [8, 32], strides = [1, 1]} : vector<8x128xf32> to vector<8x32xf32>
    %470 = arith.mulf %469, %445 : vector<8x32xf32>
    %471 = vector.extract_strided_slice %467 {offsets = [0, 0], sizes = [8, 32], strides = [1, 1]} : vector<8x128xf32> to vector<8x32xf32>
    %472 = vector.extract_strided_slice %468 {offsets = [0, 64], sizes = [8, 32], strides = [1, 1]} : vector<8x128xf32> to vector<8x32xf32>
    %473 = arith.mulf %471, %472 : vector<8x32xf32>
    %474 = arith.addf %470, %473 : vector<8x32xf32>
    %475 = vector.extract_strided_slice %467 {offsets = [0, 96], sizes = [8, 32], strides = [1, 1]} : vector<8x128xf32> to vector<8x32xf32>
    %476 = math.tanh %474 : vector<8x32xf32>
    %477 = arith.mulf %475, %476 : vector<8x32xf32>
    %cst_153 = arith.constant 0.000000e+00 : f32
    %478 = vector.broadcast %cst_153 : f32 to vector<8x32xf32>
    %479 = arith.maximumf %477, %478 : vector<8x32xf32>
    %c32_i32_154 = arith.constant 32 : i32
    %480 = arith.muli %c1_i32_148, %c32_i32_154 : i32
    %481 = tpu.assume_multiple %480, 32 : i32
    %482 = arith.index_cast %481 : i32 to index
    %c0_155 = arith.constant 0 : index
    %483 = vector.load %arg10[%482, %c0_155] : memref<256x9xf32, #tpu.memory_space<vmem>>, vector<32x9xf32>
    %cst_156 = arith.constant dense<0.000000e+00> : vector<8x9xf32>
    %484 = tpu.matmul %479, %483, %cst_156 {dimension_numbers = #tpu.dot_dimension_numbers<[1], [0], [0], [1], [0, 0, 1, 1], [], []>} : vector<8x32xf32>, vector<32x9xf32>, vector<8x9xf32> -> vector<8x9xf32>
    %485 = arith.addf %456, %484 : vector<8x9xf32>
    %c2_i32_157 = arith.constant 2 : i32
    %c8_i32_158 = arith.constant 8 : i32
    %486 = arith.muli %c2_i32_157, %c8_i32_158 : i32
    %487 = tpu.assume_multiple %486, 8 : i32
    %488 = arith.index_cast %487 : i32 to index
    %c0_159 = arith.constant 0 : index
    %489 = vector.load %arg15[%488, %c0_159] : memref<64x128xf32, #tpu.memory_space<vmem>>, vector<8x128xf32>
    %cst_160 = arith.constant dense<0.000000e+00> : vector<8x128xf32>
    %490 = tpu.matmul %477, %425, %cst_160 {dimension_numbers = #tpu.dot_dimension_numbers<[1], [0], [0], [1], [0, 0, 1, 1], [], []>} : vector<8x32xf32>, vector<32x128xf32>, vector<8x128xf32> -> vector<8x128xf32>
    %491 = arith.addf %489, %490 : vector<8x128xf32>
    %492 = arith.negf %491 : vector<8x128xf32>
    %493 = math.exp %492 : vector<8x128xf32>
    %cst_161 = arith.constant 1.000000e+00 : f32
    %494 = vector.broadcast %cst_161 : f32 to vector<8x128xf32>
    %495 = arith.addf %494, %493 : vector<8x128xf32>
    %496 = arith.divf %494, %495 : vector<8x128xf32>
    %497 = math.tanh %491 : vector<8x128xf32>
    %498 = vector.extract_strided_slice %496 {offsets = [0, 32], sizes = [8, 32], strides = [1, 1]} : vector<8x128xf32> to vector<8x32xf32>
    %499 = arith.mulf %498, %474 : vector<8x32xf32>
    %500 = vector.extract_strided_slice %496 {offsets = [0, 0], sizes = [8, 32], strides = [1, 1]} : vector<8x128xf32> to vector<8x32xf32>
    %501 = vector.extract_strided_slice %497 {offsets = [0, 64], sizes = [8, 32], strides = [1, 1]} : vector<8x128xf32> to vector<8x32xf32>
    %502 = arith.mulf %500, %501 : vector<8x32xf32>
    %503 = arith.addf %499, %502 : vector<8x32xf32>
    %504 = vector.extract_strided_slice %496 {offsets = [0, 96], sizes = [8, 32], strides = [1, 1]} : vector<8x128xf32> to vector<8x32xf32>
    %505 = math.tanh %503 : vector<8x32xf32>
    %506 = arith.mulf %504, %505 : vector<8x32xf32>
    %cst_162 = arith.constant 0.000000e+00 : f32
    %507 = vector.broadcast %cst_162 : f32 to vector<8x32xf32>
    %508 = arith.maximumf %506, %507 : vector<8x32xf32>
    %c32_i32_163 = arith.constant 32 : i32
    %509 = arith.muli %c2_i32_157, %c32_i32_163 : i32
    %510 = tpu.assume_multiple %509, 32 : i32
    %511 = arith.index_cast %510 : i32 to index
    %c0_164 = arith.constant 0 : index
    %512 = vector.load %arg10[%511, %c0_164] : memref<256x9xf32, #tpu.memory_space<vmem>>, vector<32x9xf32>
    %cst_165 = arith.constant dense<0.000000e+00> : vector<8x9xf32>
    %513 = tpu.matmul %508, %512, %cst_165 {dimension_numbers = #tpu.dot_dimension_numbers<[1], [0], [0], [1], [0, 0, 1, 1], [], []>} : vector<8x32xf32>, vector<32x9xf32>, vector<8x9xf32> -> vector<8x9xf32>
    %514 = arith.addf %485, %513 : vector<8x9xf32>
    %c3_i32_166 = arith.constant 3 : i32
    %c8_i32_167 = arith.constant 8 : i32
    %515 = arith.muli %c3_i32_166, %c8_i32_167 : i32
    %516 = tpu.assume_multiple %515, 8 : i32
    %517 = arith.index_cast %516 : i32 to index
    %c0_168 = arith.constant 0 : index
    %518 = vector.load %arg15[%517, %c0_168] : memref<64x128xf32, #tpu.memory_space<vmem>>, vector<8x128xf32>
    %cst_169 = arith.constant dense<0.000000e+00> : vector<8x128xf32>
    %519 = tpu.matmul %506, %425, %cst_169 {dimension_numbers = #tpu.dot_dimension_numbers<[1], [0], [0], [1], [0, 0, 1, 1], [], []>} : vector<8x32xf32>, vector<32x128xf32>, vector<8x128xf32> -> vector<8x128xf32>
    %520 = arith.addf %518, %519 : vector<8x128xf32>
    %521 = arith.negf %520 : vector<8x128xf32>
    %522 = math.exp %521 : vector<8x128xf32>
    %cst_170 = arith.constant 1.000000e+00 : f32
    %523 = vector.broadcast %cst_170 : f32 to vector<8x128xf32>
    %524 = arith.addf %523, %522 : vector<8x128xf32>
    %525 = arith.divf %523, %524 : vector<8x128xf32>
    %526 = math.tanh %520 : vector<8x128xf32>
    %527 = vector.extract_strided_slice %525 {offsets = [0, 32], sizes = [8, 32], strides = [1, 1]} : vector<8x128xf32> to vector<8x32xf32>
    %528 = arith.mulf %527, %503 : vector<8x32xf32>
    %529 = vector.extract_strided_slice %525 {offsets = [0, 0], sizes = [8, 32], strides = [1, 1]} : vector<8x128xf32> to vector<8x32xf32>
    %530 = vector.extract_strided_slice %526 {offsets = [0, 64], sizes = [8, 32], strides = [1, 1]} : vector<8x128xf32> to vector<8x32xf32>
    %531 = arith.mulf %529, %530 : vector<8x32xf32>
    %532 = arith.addf %528, %531 : vector<8x32xf32>
    %533 = vector.extract_strided_slice %525 {offsets = [0, 96], sizes = [8, 32], strides = [1, 1]} : vector<8x128xf32> to vector<8x32xf32>
    %534 = math.tanh %532 : vector<8x32xf32>
    %535 = arith.mulf %533, %534 : vector<8x32xf32>
    %cst_171 = arith.constant 0.000000e+00 : f32
    %536 = vector.broadcast %cst_171 : f32 to vector<8x32xf32>
    %537 = arith.maximumf %535, %536 : vector<8x32xf32>
    %c32_i32_172 = arith.constant 32 : i32
    %538 = arith.muli %c3_i32_166, %c32_i32_172 : i32
    %539 = tpu.assume_multiple %538, 32 : i32
    %540 = arith.index_cast %539 : i32 to index
    %c0_173 = arith.constant 0 : index
    %541 = vector.load %arg10[%540, %c0_173] : memref<256x9xf32, #tpu.memory_space<vmem>>, vector<32x9xf32>
    %cst_174 = arith.constant dense<0.000000e+00> : vector<8x9xf32>
    %542 = tpu.matmul %537, %541, %cst_174 {dimension_numbers = #tpu.dot_dimension_numbers<[1], [0], [0], [1], [0, 0, 1, 1], [], []>} : vector<8x32xf32>, vector<32x9xf32>, vector<8x9xf32> -> vector<8x9xf32>
    %543 = arith.addf %514, %542 : vector<8x9xf32>
    %c4_i32_175 = arith.constant 4 : i32
    %c8_i32_176 = arith.constant 8 : i32
    %544 = arith.muli %c4_i32_175, %c8_i32_176 : i32
    %545 = tpu.assume_multiple %544, 8 : i32
    %546 = arith.index_cast %545 : i32 to index
    %c0_177 = arith.constant 0 : index
    %547 = vector.load %arg15[%546, %c0_177] : memref<64x128xf32, #tpu.memory_space<vmem>>, vector<8x128xf32>
    %cst_178 = arith.constant dense<0.000000e+00> : vector<8x128xf32>
    %548 = tpu.matmul %535, %425, %cst_178 {dimension_numbers = #tpu.dot_dimension_numbers<[1], [0], [0], [1], [0, 0, 1, 1], [], []>} : vector<8x32xf32>, vector<32x128xf32>, vector<8x128xf32> -> vector<8x128xf32>
    %549 = arith.addf %547, %548 : vector<8x128xf32>
    %550 = arith.negf %549 : vector<8x128xf32>
    %551 = math.exp %550 : vector<8x128xf32>
    %cst_179 = arith.constant 1.000000e+00 : f32
    %552 = vector.broadcast %cst_179 : f32 to vector<8x128xf32>
    %553 = arith.addf %552, %551 : vector<8x128xf32>
    %554 = arith.divf %552, %553 : vector<8x128xf32>
    %555 = math.tanh %549 : vector<8x128xf32>
    %556 = vector.extract_strided_slice %554 {offsets = [0, 32], sizes = [8, 32], strides = [1, 1]} : vector<8x128xf32> to vector<8x32xf32>
    %557 = arith.mulf %556, %532 : vector<8x32xf32>
    %558 = vector.extract_strided_slice %554 {offsets = [0, 0], sizes = [8, 32], strides = [1, 1]} : vector<8x128xf32> to vector<8x32xf32>
    %559 = vector.extract_strided_slice %555 {offsets = [0, 64], sizes = [8, 32], strides = [1, 1]} : vector<8x128xf32> to vector<8x32xf32>
    %560 = arith.mulf %558, %559 : vector<8x32xf32>
    %561 = arith.addf %557, %560 : vector<8x32xf32>
    %562 = vector.extract_strided_slice %554 {offsets = [0, 96], sizes = [8, 32], strides = [1, 1]} : vector<8x128xf32> to vector<8x32xf32>
    %563 = math.tanh %561 : vector<8x32xf32>
    %564 = arith.mulf %562, %563 : vector<8x32xf32>
    %cst_180 = arith.constant 0.000000e+00 : f32
    %565 = vector.broadcast %cst_180 : f32 to vector<8x32xf32>
    %566 = arith.maximumf %564, %565 : vector<8x32xf32>
    %c32_i32_181 = arith.constant 32 : i32
    %567 = arith.muli %c4_i32_175, %c32_i32_181 : i32
    %568 = tpu.assume_multiple %567, 32 : i32
    %569 = arith.index_cast %568 : i32 to index
    %c0_182 = arith.constant 0 : index
    %570 = vector.load %arg10[%569, %c0_182] : memref<256x9xf32, #tpu.memory_space<vmem>>, vector<32x9xf32>
    %cst_183 = arith.constant dense<0.000000e+00> : vector<8x9xf32>
    %571 = tpu.matmul %566, %570, %cst_183 {dimension_numbers = #tpu.dot_dimension_numbers<[1], [0], [0], [1], [0, 0, 1, 1], [], []>} : vector<8x32xf32>, vector<32x9xf32>, vector<8x9xf32> -> vector<8x9xf32>
    %572 = arith.addf %543, %571 : vector<8x9xf32>
    %c5_i32_184 = arith.constant 5 : i32
    %c8_i32_185 = arith.constant 8 : i32
    %573 = arith.muli %c5_i32_184, %c8_i32_185 : i32
    %574 = tpu.assume_multiple %573, 8 : i32
    %575 = arith.index_cast %574 : i32 to index
    %c0_186 = arith.constant 0 : index
    %576 = vector.load %arg15[%575, %c0_186] : memref<64x128xf32, #tpu.memory_space<vmem>>, vector<8x128xf32>
    %cst_187 = arith.constant dense<0.000000e+00> : vector<8x128xf32>
    %577 = tpu.matmul %564, %425, %cst_187 {dimension_numbers = #tpu.dot_dimension_numbers<[1], [0], [0], [1], [0, 0, 1, 1], [], []>} : vector<8x32xf32>, vector<32x128xf32>, vector<8x128xf32> -> vector<8x128xf32>
    %578 = arith.addf %576, %577 : vector<8x128xf32>
    %579 = arith.negf %578 : vector<8x128xf32>
    %580 = math.exp %579 : vector<8x128xf32>
    %cst_188 = arith.constant 1.000000e+00 : f32
    %581 = vector.broadcast %cst_188 : f32 to vector<8x128xf32>
    %582 = arith.addf %581, %580 : vector<8x128xf32>
    %583 = arith.divf %581, %582 : vector<8x128xf32>
    %584 = math.tanh %578 : vector<8x128xf32>
    %585 = vector.extract_strided_slice %583 {offsets = [0, 32], sizes = [8, 32], strides = [1, 1]} : vector<8x128xf32> to vector<8x32xf32>
    %586 = arith.mulf %585, %561 : vector<8x32xf32>
    %587 = vector.extract_strided_slice %583 {offsets = [0, 0], sizes = [8, 32], strides = [1, 1]} : vector<8x128xf32> to vector<8x32xf32>
    %588 = vector.extract_strided_slice %584 {offsets = [0, 64], sizes = [8, 32], strides = [1, 1]} : vector<8x128xf32> to vector<8x32xf32>
    %589 = arith.mulf %587, %588 : vector<8x32xf32>
    %590 = arith.addf %586, %589 : vector<8x32xf32>
    %591 = vector.extract_strided_slice %583 {offsets = [0, 96], sizes = [8, 32], strides = [1, 1]} : vector<8x128xf32> to vector<8x32xf32>
    %592 = math.tanh %590 : vector<8x32xf32>
    %593 = arith.mulf %591, %592 : vector<8x32xf32>
    %cst_189 = arith.constant 0.000000e+00 : f32
    %594 = vector.broadcast %cst_189 : f32 to vector<8x32xf32>
    %595 = arith.maximumf %593, %594 : vector<8x32xf32>
    %c32_i32_190 = arith.constant 32 : i32
    %596 = arith.muli %c5_i32_184, %c32_i32_190 : i32
    %597 = tpu.assume_multiple %596, 32 : i32
    %598 = arith.index_cast %597 : i32 to index
    %c0_191 = arith.constant 0 : index
    %599 = vector.load %arg10[%598, %c0_191] : memref<256x9xf32, #tpu.memory_space<vmem>>, vector<32x9xf32>
    %cst_192 = arith.constant dense<0.000000e+00> : vector<8x9xf32>
    %600 = tpu.matmul %595, %599, %cst_192 {dimension_numbers = #tpu.dot_dimension_numbers<[1], [0], [0], [1], [0, 0, 1, 1], [], []>} : vector<8x32xf32>, vector<32x9xf32>, vector<8x9xf32> -> vector<8x9xf32>
    %601 = arith.addf %572, %600 : vector<8x9xf32>
    %c6_i32_193 = arith.constant 6 : i32
    %c8_i32_194 = arith.constant 8 : i32
    %602 = arith.muli %c6_i32_193, %c8_i32_194 : i32
    %603 = tpu.assume_multiple %602, 8 : i32
    %604 = arith.index_cast %603 : i32 to index
    %c0_195 = arith.constant 0 : index
    %605 = vector.load %arg15[%604, %c0_195] : memref<64x128xf32, #tpu.memory_space<vmem>>, vector<8x128xf32>
    %cst_196 = arith.constant dense<0.000000e+00> : vector<8x128xf32>
    %606 = tpu.matmul %593, %425, %cst_196 {dimension_numbers = #tpu.dot_dimension_numbers<[1], [0], [0], [1], [0, 0, 1, 1], [], []>} : vector<8x32xf32>, vector<32x128xf32>, vector<8x128xf32> -> vector<8x128xf32>
    %607 = arith.addf %605, %606 : vector<8x128xf32>
    %608 = arith.negf %607 : vector<8x128xf32>
    %609 = math.exp %608 : vector<8x128xf32>
    %cst_197 = arith.constant 1.000000e+00 : f32
    %610 = vector.broadcast %cst_197 : f32 to vector<8x128xf32>
    %611 = arith.addf %610, %609 : vector<8x128xf32>
    %612 = arith.divf %610, %611 : vector<8x128xf32>
    %613 = math.tanh %607 : vector<8x128xf32>
    %614 = vector.extract_strided_slice %612 {offsets = [0, 32], sizes = [8, 32], strides = [1, 1]} : vector<8x128xf32> to vector<8x32xf32>
    %615 = arith.mulf %614, %590 : vector<8x32xf32>
    %616 = vector.extract_strided_slice %612 {offsets = [0, 0], sizes = [8, 32], strides = [1, 1]} : vector<8x128xf32> to vector<8x32xf32>
    %617 = vector.extract_strided_slice %613 {offsets = [0, 64], sizes = [8, 32], strides = [1, 1]} : vector<8x128xf32> to vector<8x32xf32>
    %618 = arith.mulf %616, %617 : vector<8x32xf32>
    %619 = arith.addf %615, %618 : vector<8x32xf32>
    %620 = vector.extract_strided_slice %612 {offsets = [0, 96], sizes = [8, 32], strides = [1, 1]} : vector<8x128xf32> to vector<8x32xf32>
    %621 = math.tanh %619 : vector<8x32xf32>
    %622 = arith.mulf %620, %621 : vector<8x32xf32>
    %cst_198 = arith.constant 0.000000e+00 : f32
    %623 = vector.broadcast %cst_198 : f32 to vector<8x32xf32>
    %624 = arith.maximumf %622, %623 : vector<8x32xf32>
    %c32_i32_199 = arith.constant 32 : i32
    %625 = arith.muli %c6_i32_193, %c32_i32_199 : i32
    %626 = tpu.assume_multiple %625, 32 : i32
    %627 = arith.index_cast %626 : i32 to index
    %c0_200 = arith.constant 0 : index
    %628 = vector.load %arg10[%627, %c0_200] : memref<256x9xf32, #tpu.memory_space<vmem>>, vector<32x9xf32>
    %cst_201 = arith.constant dense<0.000000e+00> : vector<8x9xf32>
    %629 = tpu.matmul %624, %628, %cst_201 {dimension_numbers = #tpu.dot_dimension_numbers<[1], [0], [0], [1], [0, 0, 1, 1], [], []>} : vector<8x32xf32>, vector<32x9xf32>, vector<8x9xf32> -> vector<8x9xf32>
    %630 = arith.addf %601, %629 : vector<8x9xf32>
    %c7_i32_202 = arith.constant 7 : i32
    %c8_i32_203 = arith.constant 8 : i32
    %631 = arith.muli %c7_i32_202, %c8_i32_203 : i32
    %632 = tpu.assume_multiple %631, 8 : i32
    %633 = arith.index_cast %632 : i32 to index
    %c0_204 = arith.constant 0 : index
    %634 = vector.load %arg15[%633, %c0_204] : memref<64x128xf32, #tpu.memory_space<vmem>>, vector<8x128xf32>
    %cst_205 = arith.constant dense<0.000000e+00> : vector<8x128xf32>
    %635 = tpu.matmul %622, %425, %cst_205 {dimension_numbers = #tpu.dot_dimension_numbers<[1], [0], [0], [1], [0, 0, 1, 1], [], []>} : vector<8x32xf32>, vector<32x128xf32>, vector<8x128xf32> -> vector<8x128xf32>
    %636 = arith.addf %634, %635 : vector<8x128xf32>
    %637 = arith.negf %636 : vector<8x128xf32>
    %638 = math.exp %637 : vector<8x128xf32>
    %cst_206 = arith.constant 1.000000e+00 : f32
    %639 = vector.broadcast %cst_206 : f32 to vector<8x128xf32>
    %640 = arith.addf %639, %638 : vector<8x128xf32>
    %641 = arith.divf %639, %640 : vector<8x128xf32>
    %642 = math.tanh %636 : vector<8x128xf32>
    %643 = vector.extract_strided_slice %641 {offsets = [0, 32], sizes = [8, 32], strides = [1, 1]} : vector<8x128xf32> to vector<8x32xf32>
    %644 = arith.mulf %643, %619 : vector<8x32xf32>
    %645 = vector.extract_strided_slice %641 {offsets = [0, 0], sizes = [8, 32], strides = [1, 1]} : vector<8x128xf32> to vector<8x32xf32>
    %646 = vector.extract_strided_slice %642 {offsets = [0, 64], sizes = [8, 32], strides = [1, 1]} : vector<8x128xf32> to vector<8x32xf32>
    %647 = arith.mulf %645, %646 : vector<8x32xf32>
    %648 = arith.addf %644, %647 : vector<8x32xf32>
    %649 = vector.extract_strided_slice %641 {offsets = [0, 96], sizes = [8, 32], strides = [1, 1]} : vector<8x128xf32> to vector<8x32xf32>
    %650 = math.tanh %648 : vector<8x32xf32>
    %651 = arith.mulf %649, %650 : vector<8x32xf32>
    %cst_207 = arith.constant 0.000000e+00 : f32
    %652 = vector.broadcast %cst_207 : f32 to vector<8x32xf32>
    %653 = arith.maximumf %651, %652 : vector<8x32xf32>
    %c32_i32_208 = arith.constant 32 : i32
    %654 = arith.muli %c7_i32_202, %c32_i32_208 : i32
    %655 = tpu.assume_multiple %654, 32 : i32
    %656 = arith.index_cast %655 : i32 to index
    %c0_209 = arith.constant 0 : index
    %657 = vector.load %arg10[%656, %c0_209] : memref<256x9xf32, #tpu.memory_space<vmem>>, vector<32x9xf32>
    %cst_210 = arith.constant dense<0.000000e+00> : vector<8x9xf32>
    %658 = tpu.matmul %653, %657, %cst_210 {dimension_numbers = #tpu.dot_dimension_numbers<[1], [0], [0], [1], [0, 0, 1, 1], [], []>} : vector<8x32xf32>, vector<32x9xf32>, vector<8x9xf32> -> vector<8x9xf32>
    %659 = arith.addf %630, %658 : vector<8x9xf32>
    %c8_i32_211 = arith.constant 8 : i32
    %c0_212 = arith.constant 0 : index
    %c0_213 = arith.constant 0 : index
    %660 = vector.load %arg11[%c0_212, %c0_213] : memref<1x9xf32, #tpu.memory_space<vmem>>, vector<1x9xf32>
    %661 = vector.broadcast %660 : vector<1x9xf32> to vector<8x9xf32>
    %662 = arith.addf %659, %661 : vector<8x9xf32>
    %c0_214 = arith.constant 0 : index
    %c0_215 = arith.constant 0 : index
    %663 = vector.load %arg12[%c0_214, %c0_215] : memref<8x9xf32, #tpu.memory_space<vmem>>, vector<8x9xf32>
    tpu.vector_store %arg12[%c0_214, %c0_215], %662 {strides = array<i32>} : memref<8x9xf32, #tpu.memory_space<vmem>>, vector<8x9xf32>,
    return
  }
}

</mosaic_0001>

<bundles_post_ra>
// kernel: lstmnet_forward.1
= control target key start
LH: loop header
LB: loop body
LE: loop exit
PB: predicated region body
PF: predicated region fallthrough
CT: control target
= control target key end

     0   :  { %vm79_vm0 = vcmask 1043456   ;;  %vm54_vm1 = vcmask 31744   ;;  %v2549_v6 = vmov 0.0   ;;  %s2550_s15 = smov 64   ;;  %s2551_s16 = smov 32   ;;  %vm137_vm6 = vcmask 261120   ;;  %s3281_s2 = inlined_call_operand.vmem [shape: f32[32,128], index: 2, kind: input, shape index: {}]   ;;  %s3282_s1 = inlined_call_operand.vmem [shape: f32[4,128], index: 1, kind: input, shape index: {}]   ;;  %s3283_s0 = inlined_call_operand.vmem [shape: f32[64,4], index: 0, kind: input, shape index: {}]   ;;  %s3284_s3 = inlined_call_operand.vmem [shape: f32[1,128], index: 3, kind: input, shape index: {}]   ;;  %s3285_s4 = inlined_call_operand.vmem [shape: f32[32,128], index: 4, kind: input, shape index: {}]   ;;  %s3286_s6 = inlined_call_operand.vmem [shape: f32[1,128], index: 6, kind: input, shape index: {}]   ;;  %s3287_s5 = inlined_call_operand.vmem [shape: f32[32,128], index: 5, kind: input, shape index: {}]   ;;  %s3288_s7 = inlined_call_operand.vmem [shape: f32[32,128], index: 7, kind: input, shape index: {}]   ;;  %s3289_s9 = inlined_call_operand.vmem [shape: f32[1,128], index: 9, kind: input, shape index: {}]   ;;  %s3290_s8 = inlined_call_operand.vmem [shape: f32[32,128], index: 8, kind: input, shape index: {}]   ;;  %s3291_s10 = inlined_call_operand.vmem [shape: f32[256,9], index: 10, kind: input, shape index: {}]   ;;  %s3292_s11 = inlined_call_operand.vmem [shape: f32[1,9], index: 11, kind: input, shape index: {}]   ;;  %s3293_s12 = inlined_call_operand.vmem [shape: f32[8,9], index: 12, kind: output, shape index: {}]  }
   0x1   :  { %v2620_v0 = vld [vmem:[%s3281_s2 + $0x18] sm:$0xff]  ;;  %v2625_v1 = vld [vmem:[%s3281_s2 + $0x10] sm:$0xff]  ;;  %v49_v2 = vld [vmem:[%s3282_s1] sm:$0xf] }
   0x2   :  { %153 = vmatpush.msra.mxu3 %v2620_v0  ;;  %v41_v3 = vld [vmem:[%s3283_s0] sm:$0xff]  ;;  %224 = vmatpush.msra.mxu2 %v2620_v0  ;;  %v2638_v4 = vld [vmem:[%s3281_s2 + $0x8] sm:$0xff]  ;;  %v43_v62 = vld [vmem:[%s3283_s0 + $0x10] sm:$0xff] }
   0x3   :  { %2242 = vmatpush.msk.msra.mxu0 %vm79_vm0, %v49_v2  ;;  %368 = vmatpush.msra.mxu1 %v2620_v0  ;;  %v2646_v5 = vld [vmem:[%s3281_s2] sm:$0xff]  ;;  %v42_v34 = vld [vmem:[%s3283_s0 + $0x8] sm:$0xff] }
   0x4   :  { %154 = vmatpush.msra.mxu3 %v2625_v1  ;;  %2243 = vmatmul.msk.f32.vlgmr.msra.gmra.mxu0 %vm54_vm1, %v41_v3  ;;  %v2676_v7 = vld [vmem:[%s3284_s3] ss:$0 sm:$0xff] }
   0x5   :  { %225 = vmatpush.msra.mxu2 %v2625_v1  ;;  %369 = vmatpush.msra.mxu1 %v2625_v1 }
   0x6   :  { %155 = vmatpush.msra.mxu3 %v2638_v4 }
   0x7   :  { %226 = vmatpush.msra.mxu2 %v2638_v4  ;;  %370 = vmatpush.msra.mxu1 %v2638_v4 }
   0x8   :  { %156 = vmatpush.msra.mxu3 %v2646_v5 }
   0x9   :  { %157 = vmatmul.f32.vlgmr.msra.gmra.mxu3 %v2549_v6  ;;  %227 = vmatpush.msra.mxu2 %v2646_v5 }
   0xa   :  { %296 = vmatpush.msrb.mxu3 %v2620_v0  ;;  %371 = vmatpush.msra.mxu1 %v2646_v5 }
   0xb   :  { %440 = vmatpush.msrb.mxu2 %v2620_v0 }
   0xc   :  { %584 = vmatpush.msrb.mxu1 %v2620_v0  ;;  %297 = vmatpush.msrb.mxu3 %v2625_v1 }
   0xd   :  { %441 = vmatpush.msrb.mxu2 %v2625_v1  ;;  %2244 = vmatmul.msk.f32.gmra.mxu0 %vm54_vm1, %v42_v34 }
   0xe   :  { %585 = vmatpush.msrb.mxu1 %v2625_v1  ;;  %298 = vmatpush.msrb.mxu3 %v2638_v4 }
   0xf   :  { %442 = vmatpush.msrb.mxu2 %v2638_v4 }
  0x10   :  { %586 = vmatpush.msrb.mxu1 %v2638_v4  ;;  %299 = vmatpush.msrb.mxu3 %v2646_v5 }
  0x11   :  { %443 = vmatpush.msrb.mxu2 %v2646_v5 }
  0x12   :  { %512 = vmatpush.msra.mxu3 %v2620_v0  ;;  %587 = vmatpush.msrb.mxu1 %v2646_v5 }
  0x14   :  { %513 = vmatpush.msra.mxu3 %v2625_v1 }
  0x15   :  { %2245 = vmatmul.msk.f32.gmra.mxu0 %vm54_vm1, %v43_v62 }
  0x16   :  { %514 = vmatpush.msra.mxu3 %v2638_v4 }
  0x18   :  { %515 = vmatpush.msra.mxu3 %v2646_v5 }
  0x81   :  { %v100_v8 = vpop.f32.mrf.mxu0 }
  0x82   :  { %v101_v9 = vadd.f32 %v2676_v7, %v100_v8 }
  0x8a   :  { %v103_v36 = vpop.f32.mrf.mxu0 }
  0x8b   :  { %v104_v37 = vadd.f32 %v2676_v7, %v103_v36 }
  0x8c   :  { %v158_v10 = vpop.f32.mrf.mxu3 }
  0x8d   :  { %v161_v11 = vadd.f32 %v158_v10, %v101_v9 }
  0x8f   :  { %2355 = vtanh.f32 %v161_v11  ;;  %v2251_v13 = vmul.f32 -1.442695, %v161_v11 }
  0x91   :  { %2357 = vpow2.f32 %v2251_v13 }
  0x95   :  { %v2356_v12 = vpop.eup %2355 }
  0x96   :  { %184 = vrot.lane.b32.xlu0 %v2356_v12, %s2550_s15 }
  0x97   :  { %v2358_v14 = vpop.eup %2357 }
  0x98   :  { %v165_v15 = vadd.f32 1.0, %v2358_v14 }
  0x9a   :  { %2359 = vrcp.f32 %v165_v15  ;;  %v177_v21 = vand.u32 2147483648, %v165_v15  ;;  %vm171_vm3 = vweird.f32 %v165_v15  ;;  %v175_v22 = vand.u32 2147483647, %v165_v15 }
  0x9c   :  { %v178_v24 = vor.u32 1.1754944e-38, %v177_v21  ;;  %vm176_vm5 = vcmp.eq.f32.partialorder %v175_v22, 8.507059e+37 }
  0xa0   :  { %v2360_v16 = vpop.eup %2359 }
  0xa1   :  { %v167_v17 = vmul.f32 %v2360_v16, %v165_v15  ;;  %vm172_vm2 = vweird.f32 %v2360_v16 }
  0xa2   :  { %vm173_vm4 = vmor %vm171_vm3, %vm172_vm2 }
  0xa3   :  { %v168_v18 = vsub.f32 1.0, %v167_v17 }
  0xa5   :  { %v169_v19 = vmul.f32 %v2360_v16, %v168_v18 }
  0xa7   :  { %v170_v20 = vadd.f32 %v2360_v16, %v169_v19 }
  0xa9   :  { %v174_v23 = vsel %vm173_vm4, %v2360_v16, %v170_v20 }
  0xaa   :  { %v179_v26 = vsel %vm176_vm5, %v178_v24, %v174_v23 }
  0xab   :  { %v182_v28 = vmul.f32 0.0, %v179_v26 }
 0x108   :  { %v185_v25 = vpop.permute.xlu0 %184 }
 0x109   :  { %v187_v27 = vmul.f32 %v185_v25, %v179_v26 }
 0x10b   :  { %189 = vrot.lane.b32.xlu0 %v187_v27, %s2551_s16 }
 0x17d   :  { %v190_v29 = vpop.permute.xlu0 %189 }
 0x17e   :  { %v192_v30 = vadd.f32 %v190_v29, %v182_v28 }
 0x180   :  { %2361 = vtanh.f32 %v192_v30 }
 0x186   :  { %v2362_v31 = vpop.eup %2361 }
 0x187   :  { %195 = vrot.lane.b32.xlu1 %v2362_v31, %s2550_s15 }
 0x1f9   :  { %v196_v32 = vpop.permute.xlu1 %195 }
 0x1fa   :  { %v2682_v33 = vmul.f32 %v196_v32, %v179_v26  ;;  %v44_v26 = vld [vmem:[%s3283_s0 + $0x18] sm:$0xff] }
 0x1fb   :  { %2246 = vmatmul.msk.f32.gmra.mxu0 %vm54_vm1, %v44_v26 }
 0x1fc   :  { %208 = vrot.lane.b32.xlu1 %v2682_v33, %s2551_s16 }
 0x26e   :  { %v209_v35 = vpop.permute.xlu1 %208 }
 0x26f   :  { %2252 = vmatmul.msk.f32.vlgmr.msra.gmra.mxu2 %vm137_vm6, %v209_v35 }
 0x270   :  { %656 = vmatpush.msra.mxu2 %v2620_v0  ;;  %v106_v0 = vpop.f32.mrf.mxu0 }
 0x272   :  { %657 = vmatpush.msra.mxu2 %v2625_v1  ;;  %v107_v1 = vadd.f32 %v2676_v7, %v106_v0 }
 0x274   :  { %658 = vmatpush.msra.mxu2 %v2638_v4 }
 0x276   :  { %659 = vmatpush.msra.mxu2 %v2646_v5 }
 0x2f2   :  { %v229_v38 = vpop.f32.mrf.mxu2 }
 0x2f3   :  { %v232_v39 = vadd.f32 %v229_v38, %v104_v37 }
 0x2f5   :  { %2363 = vtanh.f32 %v232_v39  ;;  %v2253_v41 = vmul.f32 -1.442695, %v232_v39 }
 0x2f7   :  { %2365 = vpow2.f32 %v2253_v41 }
 0x2fb   :  { %v2364_v40 = vpop.eup %2363 }
 0x2fc   :  { %255 = vrot.lane.b32.xlu2 %v2364_v40, %s2550_s15 }
 0x2fd   :  { %v2366_v42 = vpop.eup %2365 }
 0x2fe   :  { %v236_v43 = vadd.f32 1.0, %v2366_v42 }
 0x300   :  { %2367 = vrcp.f32 %v236_v43  ;;  %v248_v49 = vand.u32 2147483648, %v236_v43  ;;  %vm242_vm8 = vweird.f32 %v236_v43  ;;  %v246_v50 = vand.u32 2147483647, %v236_v43 }
 0x302   :  { %v249_v52 = vor.u32 1.1754944e-38, %v248_v49  ;;  %vm247_vm10 = vcmp.eq.f32.partialorder %v246_v50, 8.507059e+37 }
 0x306   :  { %v2368_v44 = vpop.eup %2367 }
 0x307   :  { %v238_v45 = vmul.f32 %v2368_v44, %v236_v43  ;;  %vm243_vm7 = vweird.f32 %v2368_v44 }
 0x308   :  { %vm244_vm9 = vmor %vm242_vm8, %vm243_vm7 }
 0x309   :  { %v239_v46 = vsub.f32 1.0, %v238_v45 }
 0x30b   :  { %v240_v47 = vmul.f32 %v2368_v44, %v239_v46 }
 0x30d   :  { %v241_v48 = vadd.f32 %v2368_v44, %v240_v47 }
 0x30f   :  { %v245_v51 = vsel %vm244_vm9, %v2368_v44, %v241_v48 }
 0x310   :  { %v250_v54 = vsel %vm247_vm10, %v249_v52, %v245_v51 }
 0x311   :  { %v253_v56 = vmul.f32 %v250_v54, %v192_v30  ;;  %v109_v30 = vpop.f32.mrf.mxu0 }
 0x312   :  { %v110_v31 = vadd.f32 %v2676_v7, %v109_v30 }
 0x356   :  { %v256_v53 = vpop.permute.xlu2 %255 }
 0x357   :  { %v258_v55 = vmul.f32 %v256_v53, %v250_v54 }
 0x359   :  { %260 = vrot.lane.b32.xlu2 %v258_v55, %s2551_s16 }
 0x3b3   :  { %v261_v57 = vpop.permute.xlu2 %260 }
 0x3b4   :  { %v263_v58 = vadd.f32 %v261_v57, %v253_v56  ;;  %v45_v57 = vld [vmem:[%s3283_s0 + $0x20] sm:$0xff] }
 0x3b5   :  { %2247 = vmatmul.msk.f32.gmra.mxu0 %vm54_vm1, %v45_v57 }
 0x3b6   :  { %2369 = vtanh.f32 %v263_v58 }
 0x3bc   :  { %v2370_v59 = vpop.eup %2369 }
 0x3bd   :  { %266 = vrot.lane.b32.xlu0 %v2370_v59, %s2550_s15 }
 0x42f   :  { %v267_v60 = vpop.permute.xlu0 %266 }
 0x430   :  { %v2699_v61 = vmul.f32 %v267_v60, %v250_v54 }
 0x432   :  { %280 = vrot.lane.b32.xlu1 %v2699_v61, %s2551_s16  ;;  %v112_v59 = vpop.f32.mrf.mxu0 }
 0x433   :  { %v113_v60 = vadd.f32 %v2676_v7, %v112_v59  ;;  %v47_v59 = vld [vmem:[%s3283_s0 + $0x30] sm:$0xff] }
 0x4a4   :  { %v281_v63 = vpop.permute.xlu1 %280 }
 0x4a5   :  { %2254 = vmatmul.msk.f32.vlgmr.msrb.gmra.mxu3 %vm137_vm6, %v281_v63 }
 0x528   :  { %v301_v2 = vpop.f32.mrf.mxu3 }
 0x529   :  { %v304_v3 = vadd.f32 %v301_v2, %v107_v1 }
 0x52b   :  { %2371 = vtanh.f32 %v304_v3  ;;  %v2255_v5 = vmul.f32 -1.442695, %v304_v3 }
 0x52d   :  { %2373 = vpow2.f32 %v2255_v5 }
 0x531   :  { %v2372_v4 = vpop.eup %2371 }
 0x532   :  { %327 = vrot.lane.b32.xlu2 %v2372_v4, %s2550_s15 }
 0x533   :  { %v2374_v8 = vpop.eup %2373 }
 0x534   :  { %v308_v9 = vadd.f32 1.0, %v2374_v8 }
 0x536   :  { %2375 = vrcp.f32 %v308_v9  ;;  %v320_v15 = vand.u32 2147483648, %v308_v9  ;;  %vm314_vm12 = vweird.f32 %v308_v9  ;;  %v318_v16 = vand.u32 2147483647, %v308_v9 }
 0x538   :  { %v321_v18 = vor.u32 1.1754944e-38, %v320_v15  ;;  %vm319_vm14 = vcmp.eq.f32.partialorder %v318_v16, 8.507059e+37 }
 0x53c   :  { %v2376_v10 = vpop.eup %2375 }
 0x53d   :  { %v310_v11 = vmul.f32 %v2376_v10, %v308_v9  ;;  %vm315_vm11 = vweird.f32 %v2376_v10 }
 0x53e   :  { %vm316_vm13 = vmor %vm314_vm12, %vm315_vm11 }
 0x53f   :  { %v311_v12 = vsub.f32 1.0, %v310_v11 }
 0x541   :  { %v312_v13 = vmul.f32 %v2376_v10, %v311_v12 }
 0x543   :  { %v313_v14 = vadd.f32 %v2376_v10, %v312_v13 }
 0x545   :  { %v317_v17 = vsel %vm316_vm13, %v2376_v10, %v313_v14 }
 0x546   :  { %v322_v20 = vsel %vm319_vm14, %v321_v18, %v317_v17 }
 0x547   :  { %v325_v22 = vmul.f32 %v322_v20, %v263_v58 }
 0x58c   :  { %v328_v19 = vpop.permute.xlu2 %327 }
 0x58d   :  { %v330_v21 = vmul.f32 %v328_v19, %v322_v20 }
 0x58f   :  { %332 = vrot.lane.b32.xlu0 %v330_v21, %s2551_s16 }
 0x601   :  { %v333_v23 = vpop.permute.xlu0 %332 }
 0x602   :  { %v335_v24 = vadd.f32 %v333_v23, %v325_v22 }
 0x604   :  { %2377 = vtanh.f32 %v335_v24 }
 0x60a   :  { %v2378_v25 = vpop.eup %2377 }
 0x60b   :  { %338 = vrot.lane.b32.xlu1 %v2378_v25, %s2550_s15 }
 0x67d   :  { %v339_v27 = vpop.permute.xlu1 %338 }
 0x67e   :  { %v2716_v28 = vmul.f32 %v339_v27, %v322_v20 }
 0x680   :  { %352 = vrot.lane.b32.xlu2 %v2716_v28, %s2551_s16 }
 0x6da   :  { %v353_v29 = vpop.permute.xlu2 %352 }
 0x6db   :  { %2256 = vmatmul.msk.f32.vlgmr.msra.gmra.mxu1 %vm137_vm6, %v353_v29 }
 0x758   :  { %v373_v32 = vpop.f32.mrf.mxu1 }
 0x759   :  { %v376_v34 = vadd.f32 %v373_v32, %v110_v31  ;;  %v199_v32 = vmax.f32 %v2682_v33, 0.0  ;;  %v718_v33 = vld [vmem:[%s3285_s4 + $0x8] sm:$0xff] }
 0x75b   :  { %2379 = vtanh.f32 %v376_v34  ;;  %v2257_v36 = vmul.f32 -1.442695, %v376_v34 }
 0x75d   :  { %2381 = vpow2.f32 %v2257_v36 }
 0x761   :  { %v2380_v35 = vpop.eup %2379 }
 0x762   :  { %399 = vrot.lane.b32.xlu0 %v2380_v35, %s2550_s15 }
 0x763   :  { %v2382_v37 = vpop.eup %2381 }
 0x764   :  { %v380_v38 = vadd.f32 1.0, %v2382_v37  ;;  %v720_v37 = vld [vmem:[%s3285_s4 + $0x18] sm:$0xff] }
 0x765   :  { %761 = vmatpush.msrb.mxu3 %v720_v37 }
 0x766   :  { %2383 = vrcp.f32 %v380_v38  ;;  %v392_v44 = vand.u32 2147483648, %v380_v38  ;;  %vm386_vm0 = vweird.f32 %v380_v38  ;;  %v390_v45 = vand.u32 2147483647, %v380_v38 }
 0x768   :  { %v393_v47 = vor.u32 1.1754944e-38, %v392_v44  ;;  %vm391_vm3 = vcmp.eq.f32.partialorder %v390_v45, 8.507059e+37 }
 0x76c   :  { %v2384_v39 = vpop.eup %2383 }
 0x76d   :  { %v382_v40 = vmul.f32 %v2384_v39, %v380_v38  ;;  %vm387_vm15 = vweird.f32 %v2384_v39  ;;  %v719_v38 = vld [vmem:[%s3285_s4 + $0x10] sm:$0xff] }
 0x76e   :  { %vm388_vm2 = vmor %vm386_vm0, %vm387_vm15  ;;  %762 = vmatpush.msrb.mxu3 %v719_v38 }
 0x76f   :  { %v383_v41 = vsub.f32 1.0, %v382_v40 }
 0x770   :  { %763 = vmatpush.msrb.mxu3 %v718_v33 }
 0x771   :  { %v384_v42 = vmul.f32 %v2384_v39, %v383_v41  ;;  %v717_v41 = vld [vmem:[%s3285_s4] sm:$0xff] }
 0x772   :  { %764 = vmatpush.msrb.mxu3 %v717_v41 }
 0x773   :  { %v385_v43 = vadd.f32 %v2384_v39, %v384_v42 }
 0x775   :  { %v389_v46 = vsel %vm388_vm2, %v2384_v39, %v385_v43 }
 0x776   :  { %v394_v49 = vsel %vm391_vm3, %v393_v47, %v389_v46 }
 0x777   :  { %v397_v51 = vmul.f32 %v394_v49, %v335_v24  ;;  %v46_v24 = vld [vmem:[%s3283_s0 + $0x28] sm:$0xff] }
 0x778   :  { %2248 = vmatmul.msk.f32.gmra.mxu0 %vm54_vm1, %v46_v24 }
 0x780   :  { %2249 = vmatmul.msk.f32.gmra.mxu0 %vm54_vm1, %v47_v59 }
 0x7d4   :  { %v400_v48 = vpop.permute.xlu0 %399 }
 0x7d5   :  { %v402_v50 = vmul.f32 %v400_v48, %v394_v49 }
 0x7d7   :  { %404 = vrot.lane.b32.xlu1 %v402_v50, %s2551_s16 }
 0x7f5   :  { %v115_v26 = vpop.f32.mrf.mxu0 }
 0x7f6   :  { %v116_v27 = vadd.f32 %v2676_v7, %v115_v26 }
 0x849   :  { %v405_v52 = vpop.permute.xlu1 %404 }
 0x84a   :  { %v407_v53 = vadd.f32 %v405_v52, %v397_v51 }
 0x84c   :  { %2385 = vtanh.f32 %v407_v53 }
 0x852   :  { %v2386_v54 = vpop.eup %2385 }
 0x853   :  { %410 = vrot.lane.b32.xlu2 %v2386_v54, %s2550_s15 }
 0x8ad   :  { %v411_v55 = vpop.permute.xlu2 %410 }
 0x8ae   :  { %v2725_v56 = vmul.f32 %v411_v55, %v394_v49 }
 0x8b0   :  { %424 = vrot.lane.b32.xlu0 %v2725_v56, %s2551_s16 }
 0x922   :  { %v425_v58 = vpop.permute.xlu0 %424 }
 0x923   :  { %2258 = vmatmul.msk.f32.vlgmr.msrb.gmra.mxu2 %vm137_vm6, %v425_v58 }
 0x9a6   :  { %v445_v62 = vpop.f32.mrf.mxu2 }
 0x9a7   :  { %v448_v63 = vadd.f32 %v445_v62, %v113_v60 }
 0x9a9   :  { %2387 = vtanh.f32 %v448_v63  ;;  %v2259_v1 = vmul.f32 -1.442695, %v448_v63  ;;  %v2781_v63 = vld [vmem:[%s3287_s5 + $0x18] sm:$0xff] }
 0x9aa   :  { %815 = vmatpush.msra.mxu1 %v2781_v63  ;;  %886 = vmatpush.msrb.mxu2 %v2781_v63 }
 0x9ab   :  { %2389 = vpow2.f32 %v2259_v1  ;;  %v2793_v1 = vld [vmem:[%s3287_s5 + $0x8] sm:$0xff] }
 0x9af   :  { %v2388_v0 = vpop.eup %2387 }
 0x9b0   :  { %471 = vrot.lane.b32.xlu1 %v2388_v0, %s2550_s15  ;;  %v2786_v0 = vld [vmem:[%s3287_s5 + $0x10] sm:$0xff] }
 0x9b1   :  { %v2390_v2 = vpop.eup %2389  ;;  %816 = vmatpush.msra.mxu1 %v2786_v0  ;;  %887 = vmatpush.msrb.mxu2 %v2786_v0 }
 0x9b2   :  { %v452_v3 = vadd.f32 1.0, %v2390_v2  ;;  %v2800_v2 = vld [vmem:[%s3287_s5] sm:$0xff] }
 0x9b3   :  { %817 = vmatpush.msra.mxu1 %v2793_v1  ;;  %888 = vmatpush.msrb.mxu2 %v2793_v1 }
 0x9b4   :  { %2391 = vrcp.f32 %v452_v3  ;;  %v464_v11 = vand.u32 2147483648, %v452_v3  ;;  %vm458_vm5 = vweird.f32 %v452_v3  ;;  %v462_v12 = vand.u32 2147483647, %v452_v3 }
 0x9b5   :  { %818 = vmatpush.msra.mxu1 %v2800_v2  ;;  %889 = vmatpush.msrb.mxu2 %v2800_v2 }
 0x9b6   :  { %v465_v14 = vor.u32 1.1754944e-38, %v464_v11  ;;  %vm463_vm8 = vcmp.eq.f32.partialorder %v462_v12, 8.507059e+37 }
 0x9ba   :  { %v2392_v4 = vpop.eup %2391 }
 0x9bb   :  { %v454_v5 = vmul.f32 %v2392_v4, %v452_v3  ;;  %vm459_vm4 = vweird.f32 %v2392_v4 }
 0x9bc   :  { %vm460_vm7 = vmor %vm458_vm5, %vm459_vm4 }
 0x9bd   :  { %v455_v8 = vsub.f32 1.0, %v454_v5 }
 0x9bf   :  { %v456_v9 = vmul.f32 %v2392_v4, %v455_v8 }
 0x9c1   :  { %v457_v10 = vadd.f32 %v2392_v4, %v456_v9 }
 0x9c3   :  { %v461_v13 = vsel %vm460_vm7, %v2392_v4, %v457_v10  ;;  %v118_v4 = vpop.f32.mrf.mxu0  ;;  %v2820_v10 = vld [vmem:[%s3286_s6] ss:$0 sm:$0xff] }
 0x9c4   :  { %v466_v16 = vsel %vm463_vm8, %v465_v14, %v461_v13  ;;  %v119_v5 = vadd.f32 %v2676_v7, %v118_v4 }
 0x9c5   :  { %v469_v18 = vmul.f32 %v466_v16, %v407_v53 }
 0xa22   :  { %v472_v15 = vpop.permute.xlu1 %471 }
 0xa23   :  { %v474_v17 = vmul.f32 %v472_v15, %v466_v16 }
 0xa25   :  { %476 = vrot.lane.b32.xlu2 %v474_v17, %s2551_s16 }
 0xa7f   :  { %v477_v19 = vpop.permute.xlu2 %476 }
 0xa80   :  { %v479_v20 = vadd.f32 %v477_v19, %v469_v18 }
 0xa82   :  { %2393 = vtanh.f32 %v479_v20 }
 0xa88   :  { %v2394_v21 = vpop.eup %2393 }
 0xa89   :  { %482 = vrot.lane.b32.xlu0 %v2394_v21, %s2550_s15 }
 0xafb   :  { %v483_v22 = vpop.permute.xlu0 %482 }
 0xafc   :  { %v2738_v23 = vmul.f32 %v483_v22, %v466_v16 }
 0xafe   :  { %496 = vrot.lane.b32.xlu1 %v2738_v23, %s2551_s16 }
 0xb70   :  { %v497_v25 = vpop.permute.xlu1 %496 }
 0xb71   :  { %2260 = vmatmul.msk.f32.vlgmr.msra.gmra.mxu3 %vm137_vm6, %v497_v25 }
 0xbf4   :  { %v517_v29 = vpop.f32.mrf.mxu3 }
 0xbf5   :  { %v520_v30 = vadd.f32 %v517_v29, %v116_v27 }
 0xbf7   :  { %2395 = vtanh.f32 %v520_v30  ;;  %v2261_v34 = vmul.f32 -1.442695, %v520_v30 }
 0xbf9   :  { %2397 = vpow2.f32 %v2261_v34 }
 0xbfd   :  { %v2396_v31 = vpop.eup %2395 }
 0xbfe   :  { %543 = vrot.lane.b32.xlu2 %v2396_v31, %s2550_s15 }
 0xbff   :  { %v2398_v35 = vpop.eup %2397 }
 0xc00   :  { %v524_v36 = vadd.f32 1.0, %v2398_v35 }
 0xc02   :  { %2399 = vrcp.f32 %v524_v36  ;;  %v536_v45 = vand.u32 2147483648, %v524_v36  ;;  %vm530_vm10 = vweird.f32 %v524_v36  ;;  %v534_v46 = vand.u32 2147483647, %v524_v36 }
 0xc04   :  { %v537_v48 = vor.u32 1.1754944e-38, %v536_v45  ;;  %vm535_vm12 = vcmp.eq.f32.partialorder %v534_v46, 8.507059e+37 }
 0xc06   :  { %201 = vrot.lane.b32.xlu2 %v199_v32, %s2551_s16 }
 0xc08   :  { %v2400_v39 = vpop.eup %2399 }
 0xc09   :  { %v526_v40 = vmul.f32 %v2400_v39, %v524_v36  ;;  %vm531_vm9 = vweird.f32 %v2400_v39 }
 0xc0a   :  { %vm532_vm11 = vmor %vm530_vm10, %vm531_vm9 }
 0xc0b   :  { %v527_v42 = vsub.f32 1.0, %v526_v40  ;;  %v270_v40 = vmax.f32 %v2699_v61, 0.0 }
 0xc0d   :  { %v528_v43 = vmul.f32 %v2400_v39, %v527_v42 }
 0xc0f   :  { %v529_v44 = vadd.f32 %v2400_v39, %v528_v43 }
 0xc11   :  { %v533_v47 = vsel %vm532_vm11, %v2400_v39, %v529_v44 }
 0xc12   :  { %v538_v50 = vsel %vm535_vm12, %v537_v48, %v533_v47 }
 0xc13   :  { %v541_v54 = vmul.f32 %v538_v50, %v479_v20 }
 0xc58   :  { %v544_v49 = vpop.permute.xlu2 %543 }
 0xc59   :  { %v546_v51 = vmul.f32 %v544_v49, %v538_v50 }
 0xc5b   :  { %548 = vrot.lane.b32.xlu0 %v546_v51, %s2551_s16 }
 0xc60   :  { %v202_v52 = vpop.permute.xlu2 %201 }
 0xc61   :  { %204 = vst.msk [vmem:[#allocation5] sm:$0xff] %vm137_vm6, %v202_v52 }
 0xc68   :  { %v709_v53 = vld [vmem:[#allocation5] sm:$0xff] }
 0xc69   :  { %2266 = vmatmul.msk.f32.vlgmr.msrb.gmra.mxu3 %vm137_vm6, %v709_v53 }
 0xccd   :  { %v549_v55 = vpop.permute.xlu0 %548 }
 0xcce   :  { %v2766_v57 = vadd.f32 %v549_v55, %v541_v54 }
 0xcd0   :  { %2401 = vtanh.f32 %v2766_v57 }
 0xcd6   :  { %v2402_v58 = vpop.eup %2401 }
 0xcd7   :  { %554 = vrot.lane.b32.xlu1 %v2402_v58, %s2550_s15 }
 0xcec   :  { %v766_v11 = vpop.f32.mrf.mxu3 }
 0xced   :  { %v767_v12 = vadd.f32 %v2820_v10, %v766_v11 }
 0xd49   :  { %v555_v60 = vpop.permute.xlu1 %554 }
 0xd4a   :  { %v2774_v62 = vmul.f32 %v555_v60, %v538_v50 }
 0xd4c   :  { %568 = vrot.lane.b32.xlu0 %v2774_v62, %s2551_s16 }
 0xdbe   :  { %v569_v3 = vpop.permute.xlu0 %568 }
 0xdbf   :  { %2262 = vmatmul.msk.f32.vlgmr.msrb.gmra.mxu1 %vm137_vm6, %v569_v3 }
 0xdc0   :  { %958 = vmatpush.msrb.mxu1 %v2781_v63 }
 0xdc2   :  { %959 = vmatpush.msrb.mxu1 %v2786_v0 }
 0xdc4   :  { %960 = vmatpush.msrb.mxu1 %v2793_v1 }
 0xdc6   :  { %961 = vmatpush.msrb.mxu1 %v2800_v2 }
 0xdc7   :  { %819 = vmatmul.f32.vlgmr.msra.gmra.mxu1 %v2549_v6 }
 0xdc8   :  { %1102 = vmatpush.msra.mxu1 %v2781_v63 }
 0xdca   :  { %1103 = vmatpush.msra.mxu1 %v2786_v0 }
 0xdcc   :  { %1104 = vmatpush.msra.mxu1 %v2793_v1 }
 0xdce   :  { %1105 = vmatpush.msra.mxu1 %v2800_v2 }
 0xe3c   :  { %v589_v8 = vpop.f32.mrf.mxu1 }
 0xe3d   :  { %v592_v9 = vadd.f32 %v589_v8, %v119_v5 }
 0xe3f   :  { %2403 = vtanh.f32 %v592_v9  ;;  %v2263_v19 = vmul.f32 -1.442695, %v592_v9 }
 0xe44   :  { %v820_v13 = vpop.f32.mrf.mxu1 }
 0xe45   :  { %v2404_v14 = vpop.eup %2403  ;;  %v823_v15 = vadd.f32 %v820_v13, %v767_v12 }
 0xe46   :  { %615 = vrot.lane.b32.xlu1 %v2404_v14, %s2550_s15 }
 0xe47   :  { %2405 = vtanh.f32 %v823_v15  ;;  %v2274_v7 = vmul.f32 -1.442695, %v823_v15 }
 0xe49   :  { %2407 = vpow2.f32 %v2274_v7  ;;  %v342_v7 = vmax.f32 %v2716_v28, 0.0 }
 0xe4d   :  { %v2406_v16 = vpop.eup %2405 }
 0xe4e   :  { %846 = vrot.lane.b32.xlu2 %v2406_v16, %s2550_s15 }
 0xe4f   :  { %v2408_v17 = vpop.eup %2407 }
 0xe50   :  { %v827_v18 = vadd.f32 1.0, %v2408_v17 }
 0xe52   :  { %2409 = vrcp.f32 %v827_v18  ;;  %v839_v30 = vand.u32 2147483648, %v827_v18  ;;  %vm833_vm14 = vweird.f32 %v827_v18  ;;  %v837_v31 = vand.u32 2147483647, %v827_v18 }
 0xe53   :  { %2411 = vpow2.f32 %v2263_v19 }
 0xe54   :  { %v840_v35 = vor.u32 1.1754944e-38, %v839_v30  ;;  %vm838_vm0 = vcmp.eq.f32.partialorder %v837_v31, 8.507059e+37 }
 0xe58   :  { %v2410_v20 = vpop.eup %2409 }
 0xe59   :  { %v2412_v21 = vpop.eup %2411  ;;  %v829_v22 = vmul.f32 %v2410_v20, %v827_v18  ;;  %vm834_vm13 = vweird.f32 %v2410_v20 }
 0xe5a   :  { %v596_v24 = vadd.f32 1.0, %v2412_v21  ;;  %vm835_vm15 = vmor %vm833_vm14, %vm834_vm13 }
 0xe5b   :  { %v830_v25 = vsub.f32 1.0, %v829_v22 }
 0xe5c   :  { %2413 = vrcp.f32 %v596_v24  ;;  %v608_v42 = vand.u32 2147483648, %v596_v24  ;;  %vm602_vm3 = vweird.f32 %v596_v24  ;;  %v606_v43 = vand.u32 2147483647, %v596_v24 }
 0xe5d   :  { %v831_v26 = vmul.f32 %v2410_v20, %v830_v25 }
 0xe5e   :  { %v609_v45 = vor.u32 1.1754944e-38, %v608_v42  ;;  %vm607_vm5 = vcmp.eq.f32.partialorder %v606_v43, 8.507059e+37 }
 0xe5f   :  { %v832_v27 = vadd.f32 %v2410_v20, %v831_v26 }
 0xe61   :  { %v836_v32 = vsel %vm835_vm15, %v2410_v20, %v832_v27 }
 0xe62   :  { %v2414_v29 = vpop.eup %2413  ;;  %v841_v37 = vsel %vm838_vm0, %v840_v35, %v836_v32 }
 0xe63   :  { %v598_v34 = vmul.f32 %v2414_v29, %v596_v24  ;;  %vm603_vm2 = vweird.f32 %v2414_v29  ;;  %v844_v49 = vmul.f32 0.0, %v841_v37 }
 0xe64   :  { %vm604_vm4 = vmor %vm602_vm3, %vm603_vm2 }
 0xe65   :  { %v599_v39 = vsub.f32 1.0, %v598_v34 }
 0xe67   :  { %v600_v33 = vmul.f32 %v2414_v29, %v599_v39 }
 0xe69   :  { %v601_v41 = vadd.f32 %v2414_v29, %v600_v33 }
 0xe6b   :  { %v605_v44 = vsel %vm604_vm4, %v2414_v29, %v601_v41 }
 0xe6c   :  { %v610_v47 = vsel %vm607_vm5, %v609_v45, %v605_v44 }
 0xe6d   :  { %v613_v53 = vmul.f32 %v610_v47, %v2766_v57  ;;  %v48_v57 = vld [vmem:[%s3283_s0 + $0x38] sm:$0xff] }
 0xe6e   :  { %2250 = vmatmul.msk.f32.gmra.mxu0 %vm54_vm1, %v48_v57 }
 0xea8   :  { %v847_v36 = vpop.permute.xlu2 %846 }
 0xea9   :  { %v849_v38 = vmul.f32 %v847_v36, %v841_v37 }
 0xeab   :  { %851 = vrot.lane.b32.xlu1 %v849_v38, %s2551_s16 }
 0xeb3   :  { %272 = vrot.lane.b32.xlu1 %v270_v40, %s2551_s16 }
 0xeb8   :  { %v616_v46 = vpop.permute.xlu1 %615 }
 0xeb9   :  { %v618_v48 = vmul.f32 %v616_v46, %v610_v47 }
 0xebb   :  { %620 = vrot.lane.b32.xlu0 %v618_v48, %s2551_s16 }
 0xf1d   :  { %v852_v50 = vpop.permute.xlu1 %851 }
 0xf1e   :  { %v2829_v51 = vadd.f32 %v852_v50, %v844_v49 }
 0xf20   :  { %2415 = vtanh.f32 %v2829_v51 }
 0xf25   :  { %v273_v61 = vpop.permute.xlu1 %272 }
 0xf26   :  { %v2416_v52 = vpop.eup %2415  ;;  %276 = vst.msk [vmem:[#allocation5 + $0x8] sm:$0xff] %vm137_vm6, %v273_v61 }
 0xf27   :  { %857 = vrot.lane.b32.xlu0 %v2416_v52, %s2550_s15 }
 0xf2d   :  { %v621_v54 = vpop.permute.xlu0 %620  ;;  %v710_v55 = vld [vmem:[#allocation5 + $0x8] sm:$0xff] }
 0xf2e   :  { %v2835_v58 = vadd.f32 %v621_v54, %v613_v53  ;;  %2267 = vmatmul.msk.f32.gmra.mxu3 %vm137_vm6, %v710_v55 }
 0xf30   :  { %2417 = vtanh.f32 %v2835_v58 }
 0xf36   :  { %v2418_v59 = vpop.eup %2417 }
 0xf37   :  { %626 = vrot.lane.b32.xlu2 %v2418_v59, %s2550_s15 }
 0xf91   :  { %v627_v60 = vpop.permute.xlu2 %626 }
 0xf92   :  { %v2840_v3 = vmul.f32 %v627_v60, %v610_v47  ;;  %v414_v47 = vmax.f32 %v2725_v56, 0.0 }
 0xf94   :  { %640 = vrot.lane.b32.xlu2 %v2840_v3, %s2551_s16 }
 0xf99   :  { %v858_v4 = vpop.permute.xlu0 %857 }
 0xf9a   :  { %v2844_v5 = vmul.f32 %v858_v4, %v841_v37 }
 0xf9c   :  { %870 = vrot.lane.b32.xlu0 %v2844_v5, %s2551_s16 }
 0xfb1   :  { %v769_v12 = vpop.f32.mrf.mxu3 }
 0xfb2   :  { %v770_v13 = vadd.f32 %v2820_v10, %v769_v12 }
 0xfee   :  { %v641_v8 = vpop.permute.xlu2 %640 }
 0xfef   :  { %2264 = vmatmul.msk.f32.vlgmr.msra.gmra.mxu2 %vm137_vm6, %v641_v8 }
 0xff0   :  { %1030 = vmatpush.msra.mxu2 %v2781_v63 }
 0xff2   :  { %1031 = vmatpush.msra.mxu2 %v2786_v0 }
 0xff4   :  { %1032 = vmatpush.msra.mxu2 %v2793_v1 }
 0xff6   :  { %1033 = vmatpush.msra.mxu2 %v2800_v2 }
0x100e   :  { %v871_v9 = vpop.permute.xlu0 %870 }
0x100f   :  { %2275 = vmatmul.msk.f32.vlgmr.msrb.gmra.mxu2 %vm137_vm6, %v871_v9 }
0x1010   :  { %1174 = vmatpush.msrb.mxu2 %v2781_v63 }
0x1012   :  { %1175 = vmatpush.msrb.mxu2 %v2786_v0 }
0x1014   :  { %1176 = vmatpush.msrb.mxu2 %v2793_v1 }
0x1016   :  { %1177 = vmatpush.msrb.mxu2 %v2800_v2 }
0x1072   :  { %v2862_v11 = vpop.f32.mrf.mxu2 }
0x1092   :  { %v891_v14 = vpop.f32.mrf.mxu2 }
0x1093   :  { %v894_v15 = vadd.f32 %v891_v14, %v770_v13 }
0x1095   :  { %2419 = vtanh.f32 %v894_v15  ;;  %v2276_v17 = vmul.f32 -1.442695, %v894_v15 }
0x1097   :  { %2421 = vpow2.f32 %v2276_v17 }
0x109b   :  { %v2420_v16 = vpop.eup %2419 }
0x109c   :  { %917 = vrot.lane.b32.xlu1 %v2420_v16, %s2550_s15 }
0x109d   :  { %v2422_v18 = vpop.eup %2421 }
0x109e   :  { %v898_v19 = vadd.f32 1.0, %v2422_v18 }
0x10a0   :  { %2423 = vrcp.f32 %v898_v19  ;;  %v910_v26 = vand.u32 2147483648, %v898_v19  ;;  %vm904_vm7 = vweird.f32 %v898_v19  ;;  %v908_v27 = vand.u32 2147483647, %v898_v19 }
0x10a2   :  { %v911_v30 = vor.u32 1.1754944e-38, %v910_v26  ;;  %vm909_vm9 = vcmp.eq.f32.partialorder %v908_v27, 8.507059e+37 }
0x10a4   :  { %344 = vrot.lane.b32.xlu1 %v342_v7, %s2551_s16 }
0x10a6   :  { %v2424_v20 = vpop.eup %2423 }
0x10a7   :  { %v900_v21 = vmul.f32 %v2424_v20, %v898_v19  ;;  %vm905_vm1 = vweird.f32 %v2424_v20 }
0x10a8   :  { %vm906_vm8 = vmor %vm904_vm7, %vm905_vm1 }
0x10a9   :  { %v901_v22 = vsub.f32 1.0, %v900_v21 }
0x10ab   :  { %v902_v24 = vmul.f32 %v2424_v20, %v901_v22 }
0x10ad   :  { %v903_v25 = vadd.f32 %v2424_v20, %v902_v24 }
0x10af   :  { %v907_v29 = vsel %vm906_vm8, %v2424_v20, %v903_v25  ;;  %v486_v25 = vmax.f32 %v2738_v23, 0.0 }
0x10b0   :  { %v912_v31 = vsel %vm909_vm9, %v911_v30, %v907_v29 }
0x10b1   :  { %v915_v36 = vmul.f32 %v912_v31, %v2829_v51 }
0x110e   :  { %v918_v28 = vpop.permute.xlu1 %917 }
0x110f   :  { %v920_v32 = vmul.f32 %v918_v28, %v912_v31 }
0x1111   :  { %922 = vrot.lane.b32.xlu2 %v920_v32, %s2551_s16 }
0x1116   :  { %v345_v34 = vpop.permute.xlu1 %344 }
0x1117   :  { %348 = vst.msk [vmem:[#allocation5 + $0x10] sm:$0xff] %vm137_vm6, %v345_v34 }
0x111e   :  { %v711_v35 = vld [vmem:[#allocation5 + $0x10] sm:$0xff] }
0x111f   :  { %2268 = vmatmul.msk.f32.gmra.mxu3 %vm137_vm6, %v711_v35 }
0x116b   :  { %v923_v37 = vpop.permute.xlu2 %922 }
0x116c   :  { %v925_v38 = vadd.f32 %v923_v37, %v915_v36 }
0x116e   :  { %2425 = vtanh.f32 %v925_v38 }
0x1174   :  { %v2426_v39 = vpop.eup %2425 }
0x1175   :  { %928 = vrot.lane.b32.xlu0 %v2426_v39, %s2550_s15 }
0x11a2   :  { %v772_v42 = vpop.f32.mrf.mxu3 }
0x11a3   :  { %v773_v43 = vadd.f32 %v2820_v10, %v772_v42 }
0x11e7   :  { %v929_v33 = vpop.permute.xlu0 %928 }
0x11e8   :  { %v2873_v40 = vmul.f32 %v929_v33, %v912_v31 }
0x11ea   :  { %942 = vrot.lane.b32.xlu2 %v2873_v40, %s2551_s16 }
0x1244   :  { %v943_v41 = vpop.permute.xlu2 %942 }
0x1245   :  { %2277 = vmatmul.msk.f32.vlgmr.msrb.gmra.mxu1 %vm137_vm6, %v943_v41 }
0x1246   :  { %1246 = vmatpush.msrb.mxu1 %v2781_v63 }
0x1248   :  { %1247 = vmatpush.msrb.mxu1 %v2786_v0 }
0x124a   :  { %1248 = vmatpush.msrb.mxu1 %v2793_v1 }
0x124c   :  { %1249 = vmatpush.msrb.mxu1 %v2800_v2 }
0x12c2   :  { %v963_v44 = vpop.f32.mrf.mxu1 }
0x12c3   :  { %v966_v45 = vadd.f32 %v963_v44, %v773_v43 }
0x12c5   :  { %2427 = vtanh.f32 %v966_v45  ;;  %v2278_v48 = vmul.f32 -1.442695, %v966_v45 }
0x12c7   :  { %2429 = vpow2.f32 %v2278_v48 }
0x12cb   :  { %v2428_v46 = vpop.eup %2427 }
0x12cc   :  { %989 = vrot.lane.b32.xlu0 %v2428_v46, %s2550_s15 }
0x12cd   :  { %v2430_v49 = vpop.eup %2429 }
0x12ce   :  { %v970_v50 = vadd.f32 1.0, %v2430_v49 }
0x12d0   :  { %2431 = vrcp.f32 %v970_v50  ;;  %v982_v55 = vand.u32 2147483648, %v970_v50  ;;  %vm976_vm11 = vweird.f32 %v970_v50  ;;  %v980_v59 = vand.u32 2147483647, %v970_v50 }
0x12d2   :  { %v983_v4 = vor.u32 1.1754944e-38, %v982_v55  ;;  %vm981_vm13 = vcmp.eq.f32.partialorder %v980_v59, 8.507059e+37 }
0x12d4   :  { %416 = vrot.lane.b32.xlu0 %v414_v47, %s2551_s16 }
0x12d6   :  { %v2432_v51 = vpop.eup %2431 }
0x12d7   :  { %v972_v61 = vmul.f32 %v2432_v51, %v970_v50  ;;  %vm977_vm10 = vweird.f32 %v2432_v51 }
0x12d8   :  { %vm978_vm12 = vmor %vm976_vm11, %vm977_vm10 }
0x12d9   :  { %v973_v52 = vsub.f32 1.0, %v972_v61 }
0x12db   :  { %v974_v53 = vmul.f32 %v2432_v51, %v973_v52 }
0x12dd   :  { %v975_v54 = vadd.f32 %v2432_v51, %v974_v53 }
0x12df   :  { %v979_v60 = vsel %vm978_vm12, %v2432_v51, %v975_v54  ;;  %v558_v51 = vmax.f32 %v2774_v62, 0.0 }
0x12e0   :  { %v984_v57 = vsel %vm981_vm13, %v983_v4, %v979_v60 }
0x12e1   :  { %v987_v13 = vmul.f32 %v984_v57, %v925_v38 }
0x133e   :  { %v990_v56 = vpop.permute.xlu0 %989 }
0x133f   :  { %v992_v8 = vmul.f32 %v990_v56, %v984_v57 }
0x1341   :  { %994 = vrot.lane.b32.xlu1 %v992_v8, %s2551_s16 }
0x1346   :  { %v417_v9 = vpop.permute.xlu0 %416 }
0x1347   :  { %420 = vst.msk [vmem:[#allocation5 + $0x18] sm:$0xff] %vm137_vm6, %v417_v9 }
0x134e   :  { %v712_v12 = vld [vmem:[#allocation5 + $0x18] sm:$0xff] }
0x134f   :  { %2269 = vmatmul.msk.f32.gmra.mxu3 %vm137_vm6, %v712_v12 }
0x13b3   :  { %v995_v14 = vpop.permute.xlu1 %994 }
0x13b4   :  { %v997_v15 = vadd.f32 %v995_v14, %v987_v13 }
0x13b6   :  { %2433 = vtanh.f32 %v997_v15 }
0x13bc   :  { %v2434_v16 = vpop.eup %2433 }
0x13bd   :  { %1000 = vrot.lane.b32.xlu2 %v2434_v16, %s2550_s15 }
0x13d2   :  { %v775_v19 = vpop.f32.mrf.mxu3 }
0x13d3   :  { %v776_v20 = vadd.f32 %v2820_v10, %v775_v19 }
0x1417   :  { %v1001_v7 = vpop.permute.xlu2 %1000 }
0x1418   :  { %v2890_v17 = vmul.f32 %v1001_v7, %v984_v57 }
0x141a   :  { %1014 = vrot.lane.b32.xlu1 %v2890_v17, %s2551_s16 }
0x148c   :  { %v1015_v18 = vpop.permute.xlu1 %1014 }
0x148d   :  { %2279 = vmatmul.msk.f32.vlgmr.msra.gmra.mxu2 %vm137_vm6, %v1015_v18 }
0x148e   :  { %1318 = vmatpush.msra.mxu2 %v2781_v63 }
0x1490   :  { %1319 = vmatpush.msra.mxu2 %v2786_v0 }
0x1492   :  { %1320 = vmatpush.msra.mxu2 %v2793_v1 }
0x1494   :  { %1321 = vmatpush.msra.mxu2 %v2800_v2 }
0x1510   :  { %v1035_v21 = vpop.f32.mrf.mxu2 }
0x1511   :  { %v1038_v22 = vadd.f32 %v1035_v21, %v776_v20 }
0x1513   :  { %2435 = vtanh.f32 %v1038_v22  ;;  %v2280_v63 = vmul.f32 -1.442695, %v1038_v22 }
0x1515   :  { %2437 = vpow2.f32 %v2280_v63 }
0x1519   :  { %v2436_v24 = vpop.eup %2435 }
0x151a   :  { %1061 = vrot.lane.b32.xlu2 %v2436_v24, %s2550_s15 }
0x151b   :  { %v2438_v0 = vpop.eup %2437 }
0x151c   :  { %v1042_v26 = vadd.f32 1.0, %v2438_v0 }
0x151e   :  { %2439 = vrcp.f32 %v1042_v26  ;;  %v1054_v28 = vand.u32 2147483648, %v1042_v26  ;;  %vm1048_vm15 = vweird.f32 %v1042_v26  ;;  %v1052_v31 = vand.u32 2147483647, %v1042_v26 }
0x1520   :  { %v1055_v34 = vor.u32 1.1754944e-38, %v1054_v28  ;;  %vm1053_vm2 = vcmp.eq.f32.partialorder %v1052_v31, 8.507059e+37 }
0x1522   :  { %488 = vrot.lane.b32.xlu2 %v486_v25, %s2551_s16 }
0x1524   :  { %v2440_v1 = vpop.eup %2439 }
0x1525   :  { %v1044_v2 = vmul.f32 %v2440_v1, %v1042_v26  ;;  %vm1049_vm14 = vweird.f32 %v2440_v1 }
0x1526   :  { %vm1050_vm0 = vmor %vm1048_vm15, %vm1049_vm14 }
0x1527   :  { %v1045_v27 = vsub.f32 1.0, %v1044_v2 }
0x1529   :  { %v1046_v29 = vmul.f32 %v2440_v1, %v1045_v27 }
0x152b   :  { %v1047_v30 = vadd.f32 %v2440_v1, %v1046_v29 }
0x152d   :  { %v1051_v32 = vsel %vm1050_vm0, %v2440_v1, %v1047_v30  ;;  %v630_v1 = vmax.f32 %v2840_v3, 0.0 }
0x152e   :  { %v1056_v35 = vsel %vm1053_vm2, %v1055_v34, %v1051_v32 }
0x152f   :  { %v1059_v39 = vmul.f32 %v1056_v35, %v997_v15 }
0x1574   :  { %v1062_v23 = vpop.permute.xlu2 %1061 }
0x1575   :  { %v1064_v36 = vmul.f32 %v1062_v23, %v1056_v35 }
0x1577   :  { %1066 = vrot.lane.b32.xlu0 %v1064_v36, %s2551_s16 }
0x157c   :  { %v489_v37 = vpop.permute.xlu2 %488 }
0x157d   :  { %492 = vst.msk [vmem:[#allocation5 + $0x20] sm:$0xff] %vm137_vm6, %v489_v37 }
0x1584   :  { %v713_v38 = vld [vmem:[#allocation5 + $0x20] sm:$0xff] }
0x1585   :  { %2270 = vmatmul.msk.f32.gmra.mxu3 %vm137_vm6, %v713_v38 }
0x15e9   :  { %v1067_v33 = vpop.permute.xlu0 %1066 }
0x15ea   :  { %v1069_v41 = vadd.f32 %v1067_v33, %v1059_v39 }
0x15ec   :  { %2441 = vtanh.f32 %v1069_v41 }
0x15f2   :  { %v2442_v42 = vpop.eup %2441 }
0x15f3   :  { %1072 = vrot.lane.b32.xlu1 %v2442_v42, %s2550_s15 }
0x1608   :  { %v778_v46 = vpop.f32.mrf.mxu3 }
0x1609   :  { %v779_v47 = vadd.f32 %v2820_v10, %v778_v46 }
0x1665   :  { %v1073_v43 = vpop.permute.xlu1 %1072 }
0x1666   :  { %v2907_v44 = vmul.f32 %v1073_v43, %v1056_v35 }
0x1668   :  { %1086 = vrot.lane.b32.xlu0 %v2907_v44, %s2551_s16 }
0x16da   :  { %v1087_v45 = vpop.permute.xlu0 %1086 }
0x16db   :  { %2281 = vmatmul.msk.f32.vlgmr.msra.gmra.mxu1 %vm137_vm6, %v1087_v45 }
0x1758   :  { %v1107_v48 = vpop.f32.mrf.mxu1 }
0x1759   :  { %v1110_v49 = vadd.f32 %v1107_v48, %v779_v47 }
0x175b   :  { %2443 = vtanh.f32 %v1110_v49  ;;  %v2282_v61 = vmul.f32 -1.442695, %v1110_v49 }
0x175d   :  { %2445 = vpow2.f32 %v2282_v61 }
0x1761   :  { %v2444_v50 = vpop.eup %2443 }
0x1762   :  { %1133 = vrot.lane.b32.xlu1 %v2444_v50, %s2550_s15 }
0x1763   :  { %v2446_v52 = vpop.eup %2445 }
0x1764   :  { %v1114_v53 = vadd.f32 1.0, %v2446_v52 }
0x1766   :  { %2447 = vrcp.f32 %v1114_v53  ;;  %v1126_v56 = vand.u32 2147483648, %v1114_v53  ;;  %vm1120_vm4 = vweird.f32 %v1114_v53  ;;  %v1124_v57 = vand.u32 2147483647, %v1114_v53 }
0x1768   :  { %v1127_v9 = vor.u32 1.1754944e-38, %v1126_v56  ;;  %vm1125_vm1 = vcmp.eq.f32.partialorder %v1124_v57, 8.507059e+37 }
0x176a   :  { %560 = vrot.lane.b32.xlu1 %v558_v51, %s2551_s16 }
0x176c   :  { %v2448_v54 = vpop.eup %2447 }
0x176d   :  { %v1116_v55 = vmul.f32 %v2448_v54, %v1114_v53  ;;  %vm1121_vm3 = vweird.f32 %v2448_v54 }
0x176e   :  { %vm1122_vm5 = vmor %vm1120_vm4, %vm1121_vm3 }
0x176f   :  { %v1117_v59 = vsub.f32 1.0, %v1116_v55 }
0x1771   :  { %v1118_v60 = vmul.f32 %v2448_v54, %v1117_v59 }
0x1773   :  { %v1119_v4 = vadd.f32 %v2448_v54, %v1118_v60 }
0x1775   :  { %v1123_v8 = vsel %vm1122_vm5, %v2448_v54, %v1119_v4 }
0x1776   :  { %v1128_v12 = vsel %vm1125_vm1, %v1127_v9, %v1123_v8 }
0x1777   :  { %v1131_v16 = vmul.f32 %v1128_v12, %v1069_v41 }
0x17d4   :  { %v1134_v62 = vpop.permute.xlu1 %1133 }
0x17d5   :  { %v1136_v13 = vmul.f32 %v1134_v62, %v1128_v12 }
0x17d7   :  { %1138 = vrot.lane.b32.xlu2 %v1136_v13, %s2551_s16 }
0x17dc   :  { %v561_v14 = vpop.permute.xlu1 %560 }
0x17dd   :  { %564 = vst.msk [vmem:[#allocation5 + $0x28] sm:$0xff] %vm137_vm6, %v561_v14 }
0x17e4   :  { %v714_v15 = vld [vmem:[#allocation5 + $0x28] sm:$0xff] }
0x17e5   :  { %2271 = vmatmul.msk.f32.gmra.mxu3 %vm137_vm6, %v714_v15 }
0x1831   :  { %v1139_v7 = vpop.permute.xlu2 %1138 }
0x1832   :  { %v1141_v18 = vadd.f32 %v1139_v7, %v1131_v16  ;;  %v861_v16 = vmax.f32 %v2844_v5, 0.0  ;;  %v1382_v7 = vld [vmem:[%s3288_s7 + $0x18] sm:$0xff]  ;;  %v1379_v5 = vld [vmem:[%s3288_s7] sm:$0xff] }
0x1833   :  { %1423 = vmatpush.msra.mxu1 %v1382_v7 }
0x1834   :  { %2449 = vtanh.f32 %v1141_v18 }
0x183a   :  { %v2450_v19 = vpop.eup %2449 }
0x183b   :  { %1144 = vrot.lane.b32.xlu0 %v2450_v19, %s2550_s15  ;;  %v1380_v19 = vld [vmem:[%s3288_s7 + $0x8] sm:$0xff] }
0x1868   :  { %v781_v24 = vpop.f32.mrf.mxu3 }
0x1869   :  { %v782_v25 = vadd.f32 %v2820_v10, %v781_v24 }
0x18ad   :  { %v1145_v20 = vpop.permute.xlu0 %1144 }
0x18ae   :  { %v2920_v21 = vmul.f32 %v1145_v20, %v1128_v12 }
0x18b0   :  { %1158 = vrot.lane.b32.xlu2 %v2920_v21, %s2551_s16 }
0x190a   :  { %v1159_v22 = vpop.permute.xlu2 %1158 }
0x190b   :  { %2283 = vmatmul.msk.f32.vlgmr.msrb.gmra.mxu2 %vm137_vm6, %v1159_v22 }
0x198e   :  { %v1179_v63 = vpop.f32.mrf.mxu2 }
0x198f   :  { %v1182_v0 = vadd.f32 %v1179_v63, %v782_v25 }
0x1991   :  { %2451 = vtanh.f32 %v1182_v0  ;;  %v2284_v2 = vmul.f32 -1.442695, %v1182_v0 }
0x1993   :  { %2453 = vpow2.f32 %v2284_v2  ;;  %v2968_v2 = vld [vmem:[%s3290_s8 + $0x18] sm:$0xff] }
0x1994   :  { %1477 = vmatpush.msrb.mxu2 %v2968_v2  ;;  %1547 = vmatpush.msrb.mxu0 %v2968_v2 }
0x1997   :  { %v2452_v26 = vpop.eup %2451 }
0x1998   :  { %1205 = vrot.lane.b32.xlu0 %v2452_v26, %s2550_s15 }
0x1999   :  { %v2454_v27 = vpop.eup %2453 }
0x199a   :  { %v1186_v29 = vadd.f32 1.0, %v2454_v27  ;;  %v2973_v27 = vld [vmem:[%s3290_s8 + $0x10] sm:$0xff] }
0x199b   :  { %1478 = vmatpush.msrb.mxu2 %v2973_v27  ;;  %1548 = vmatpush.msrb.mxu0 %v2973_v27 }
0x199c   :  { %2455 = vrcp.f32 %v1186_v29  ;;  %v1198_v23 = vand.u32 2147483648, %v1186_v29  ;;  %vm1192_vm8 = vweird.f32 %v1186_v29  ;;  %v1196_v35 = vand.u32 2147483647, %v1186_v29 }
0x199e   :  { %v1199_v37 = vor.u32 1.1754944e-38, %v1198_v23  ;;  %vm1197_vm10 = vcmp.eq.f32.partialorder %v1196_v35, 8.507059e+37 }
0x19a0   :  { %632 = vrot.lane.b32.xlu0 %v630_v1, %s2551_s16 }
0x19a2   :  { %v2456_v30 = vpop.eup %2455 }
0x19a3   :  { %v1188_v28 = vmul.f32 %v2456_v30, %v1186_v29  ;;  %vm1193_vm7 = vweird.f32 %v2456_v30  ;;  %v2980_v29 = vld [vmem:[%s3290_s8 + $0x8] sm:$0xff] }
0x19a4   :  { %vm1194_vm9 = vmor %vm1192_vm8, %vm1193_vm7  ;;  %1479 = vmatpush.msrb.mxu2 %v2980_v29  ;;  %1549 = vmatpush.msrb.mxu0 %v2980_v29 }
0x19a5   :  { %v1189_v31 = vsub.f32 1.0, %v1188_v28 }
0x19a7   :  { %v1190_v32 = vmul.f32 %v2456_v30, %v1189_v31 }
0x19a9   :  { %v1191_v34 = vadd.f32 %v2456_v30, %v1190_v32  ;;  %v3000_v32 = vld [vmem:[%s3289_s9] ss:$0 sm:$0xff] }
0x19ab   :  { %v1195_v36 = vsel %vm1194_vm9, %v2456_v30, %v1191_v34  ;;  %v2987_v30 = vld [vmem:[%s3290_s8] sm:$0xff] }
0x19ac   :  { %v1200_v38 = vsel %vm1197_vm10, %v1199_v37, %v1195_v36  ;;  %1480 = vmatpush.msrb.mxu2 %v2987_v30  ;;  %1550 = vmatpush.msrb.mxu0 %v2987_v30 }
0x19ad   :  { %v1203_v42 = vmul.f32 %v1200_v38, %v1141_v18  ;;  %v1381_v18 = vld [vmem:[%s3288_s7 + $0x10] sm:$0xff] }
0x19ae   :  { %1424 = vmatpush.msra.mxu1 %v1381_v18 }
0x19b0   :  { %1425 = vmatpush.msra.mxu1 %v1380_v19 }
0x19b2   :  { %1426 = vmatpush.msra.mxu1 %v1379_v5 }
0x1a0a   :  { %v1206_v3 = vpop.permute.xlu0 %1205 }
0x1a0b   :  { %v1208_v39 = vmul.f32 %v1206_v3, %v1200_v38  ;;  %v932_v3 = vmax.f32 %v2873_v40, 0.0 }
0x1a0d   :  { %1210 = vrot.lane.b32.xlu1 %v1208_v39, %s2551_s16 }
0x1a12   :  { %v633_v33 = vpop.permute.xlu0 %632 }
0x1a13   :  { %636 = vst.msk [vmem:[#allocation5 + $0x30] sm:$0xff] %vm137_vm6, %v633_v33 }
0x1a1a   :  { %v715_v41 = vld [vmem:[#allocation5 + $0x30] sm:$0xff] }
0x1a1b   :  { %2272 = vmatmul.msk.f32.gmra.mxu3 %vm137_vm6, %v715_v41 }
0x1a7f   :  { %v1211_v43 = vpop.permute.xlu1 %1210 }
0x1a80   :  { %v1213_v45 = vadd.f32 %v1211_v43, %v1203_v42 }
0x1a82   :  { %2457 = vtanh.f32 %v1213_v45 }
0x1a88   :  { %v2458_v46 = vpop.eup %2457 }
0x1a89   :  { %1216 = vrot.lane.b32.xlu2 %v2458_v46, %s2550_s15 }
0x1a9e   :  { %v784_v50 = vpop.f32.mrf.mxu3 }
0x1a9f   :  { %v785_v51 = vadd.f32 %v2820_v10, %v784_v50 }
0x1ae3   :  { %v1217_v47 = vpop.permute.xlu2 %1216 }
0x1ae4   :  { %v2933_v48 = vmul.f32 %v1217_v47, %v1200_v38 }
0x1ae6   :  { %1230 = vrot.lane.b32.xlu1 %v2933_v48, %s2551_s16 }
0x1b58   :  { %v1231_v49 = vpop.permute.xlu1 %1230 }
0x1b59   :  { %2285 = vmatmul.msk.f32.vlgmr.msrb.gmra.mxu1 %vm137_vm6, %v1231_v49 }
0x1bd6   :  { %v1251_v61 = vpop.f32.mrf.mxu1 }
0x1bd7   :  { %v1254_v52 = vadd.f32 %v1251_v61, %v785_v51 }
0x1bd9   :  { %2459 = vtanh.f32 %v1254_v52  ;;  %v2286_v54 = vmul.f32 -1.442695, %v1254_v52 }
0x1bdb   :  { %2461 = vpow2.f32 %v2286_v54 }
0x1bdf   :  { %v2460_v53 = vpop.eup %2459 }
0x1be0   :  { %1277 = vrot.lane.b32.xlu2 %v2460_v53, %s2550_s15 }
0x1be1   :  { %v2462_v55 = vpop.eup %2461 }
0x1be2   :  { %v1258_v59 = vadd.f32 1.0, %v2462_v55 }
0x1be4   :  { %2463 = vrcp.f32 %v1258_v59  ;;  %v1270_v9 = vand.u32 2147483648, %v1258_v59  ;;  %vm1264_vm12 = vweird.f32 %v1258_v59  ;;  %v1268_v10 = vand.u32 2147483647, %v1258_v59 }
0x1be6   :  { %v1271_v12 = vor.u32 1.1754944e-38, %v1270_v9  ;;  %vm1269_vm14 = vcmp.eq.f32.partialorder %v1268_v10, 8.507059e+37 }
0x1bea   :  { %v2464_v60 = vpop.eup %2463 }
0x1beb   :  { %v1260_v4 = vmul.f32 %v2464_v60, %v1258_v59  ;;  %vm1265_vm11 = vweird.f32 %v2464_v60 }
0x1bec   :  { %vm1266_vm13 = vmor %vm1264_vm12, %vm1265_vm11 }
0x1bed   :  { %v1261_v56 = vsub.f32 1.0, %v1260_v4 }
0x1bef   :  { %v1262_v57 = vmul.f32 %v2464_v60, %v1261_v56 }
0x1bf1   :  { %v1263_v8 = vadd.f32 %v2464_v60, %v1262_v57 }
0x1bf3   :  { %v1267_v62 = vsel %vm1266_vm13, %v2464_v60, %v1263_v8  ;;  %v3015_v8 = vpop.f32.mrf.mxu0 }
0x1bf4   :  { %v1272_v14 = vsel %vm1269_vm14, %v1271_v12, %v1267_v62 }
0x1bf5   :  { %v1275_v20 = vmul.f32 %v1272_v14, %v1213_v45 }
0x1c3a   :  { %v1278_v13 = vpop.permute.xlu2 %1277 }
0x1c3b   :  { %v1280_v15 = vmul.f32 %v1278_v13, %v1272_v14 }
0x1c3d   :  { %1282 = vrot.lane.b32.xlu0 %v1280_v15, %s2551_s16 }
0x1c45   :  { %863 = vrot.lane.b32.xlu0 %v861_v16, %s2551_s16 }
0x1caf   :  { %v1283_v22 = vpop.permute.xlu0 %1282 }
0x1cb0   :  { %v2955_v24 = vadd.f32 %v1283_v22, %v1275_v20 }
0x1cb2   :  { %2465 = vtanh.f32 %v2955_v24 }
0x1cb7   :  { %v864_v25 = vpop.permute.xlu0 %863 }
0x1cb8   :  { %v2466_v63 = vpop.eup %2465  ;;  %866 = vst.msk [vmem:[#allocation6] sm:$0xff] %vm137_vm6, %v864_v25 }
0x1cb9   :  { %1288 = vrot.lane.b32.xlu1 %v2466_v63, %s2550_s15 }
0x1cbf   :  { %v1371_v0 = vld [vmem:[#allocation6] sm:$0xff] }
0x1cc0   :  { %2289 = vmatmul.msk.f32.vlgmr.msra.gmra.mxu1 %vm137_vm6, %v1371_v0 }
0x1d2b   :  { %v1289_v26 = vpop.permute.xlu1 %1288 }
0x1d2c   :  { %v2961_v1 = vmul.f32 %v1289_v26, %v1272_v14 }
0x1d2e   :  { %1302 = vrot.lane.b32.xlu2 %v2961_v1, %s2551_s16 }
0x1d3d   :  { %v1428_v34 = vpop.f32.mrf.mxu1 }
0x1d3e   :  { %v1429_v23 = vadd.f32 %v3000_v32, %v1428_v34 }
0x1d88   :  { %v1303_v28 = vpop.permute.xlu2 %1302 }
0x1d89   :  { %2287 = vmatmul.msk.f32.vlgmr.msra.gmra.mxu2 %vm137_vm6, %v1303_v28 }
0x1d91   :  { %1481 = vmatmul.f32.vlgmr.msrb.gmra.mxu2 %v2549_v6 }
0x1e0c   :  { %v2995_v31 = vpop.f32.mrf.mxu2 }
0x1e14   :  { %v1482_v35 = vpop.f32.mrf.mxu2 }
0x1e15   :  { %v1485_v36 = vadd.f32 %v1482_v35, %v1429_v23  ;;  %v1004_v23 = vmax.f32 %v2890_v17, 0.0 }
0x1e17   :  { %2467 = vtanh.f32 %v1485_v36  ;;  %v2297_v6 = vmul.f32 -1.442695, %v1485_v36 }
0x1e19   :  { %2469 = vpow2.f32 %v2297_v6 }
0x1e1d   :  { %v2468_v37 = vpop.eup %2467 }
0x1e1e   :  { %1508 = vrot.lane.b32.xlu1 %v2468_v37, %s2550_s15 }
0x1e1f   :  { %v2470_v38 = vpop.eup %2469 }
0x1e20   :  { %v1489_v39 = vadd.f32 1.0, %v2470_v38 }
0x1e22   :  { %2471 = vrcp.f32 %v1489_v39  ;;  %v1501_v46 = vand.u32 2147483648, %v1489_v39  ;;  %vm1495_vm0 = vweird.f32 %v1489_v39  ;;  %v1499_v47 = vand.u32 2147483647, %v1489_v39 }
0x1e24   :  { %v1502_v50 = vor.u32 1.1754944e-38, %v1501_v46  ;;  %vm1500_vm3 = vcmp.eq.f32.partialorder %v1499_v47, 8.507059e+37 }
0x1e26   :  { %934 = vrot.lane.b32.xlu1 %v932_v3, %s2551_s16 }
0x1e28   :  { %v2472_v33 = vpop.eup %2471 }
0x1e29   :  { %v1491_v41 = vmul.f32 %v2472_v33, %v1489_v39  ;;  %vm1496_vm15 = vweird.f32 %v2472_v33 }
0x1e2a   :  { %vm1497_vm2 = vmor %vm1495_vm0, %vm1496_vm15 }
0x1e2b   :  { %v1492_v42 = vsub.f32 1.0, %v1491_v41  ;;  %v2303_v41 = vld [vmem:[%s3291_s10 + $0x38] sm:$0xff] }
0x1e2c   :  { %1616 = vmatpush.msra.mxu2 %v2303_v41 }
0x1e2d   :  { %v1493_v43 = vmul.f32 %v2472_v33, %v1492_v42  ;;  %v2302_v42 = vld [vmem:[%s3291_s10 + $0x30] sm:$0xff] }
0x1e2e   :  { %1617 = vmatpush.msra.mxu2 %v2302_v42 }
0x1e2f   :  { %v1494_v45 = vadd.f32 %v2472_v33, %v1493_v43  ;;  %v2301_v43 = vld [vmem:[%s3291_s10 + $0x28] sm:$0xff] }
0x1e30   :  { %1618 = vmatpush.msra.mxu2 %v2301_v43 }
0x1e31   :  { %v1498_v49 = vsel %vm1497_vm2, %v2472_v33, %v1494_v45  ;;  %v2300_v45 = vld [vmem:[%s3291_s10 + $0x20] sm:$0xff] }
0x1e32   :  { %v1503_v51 = vsel %vm1500_vm3, %v1502_v50, %v1498_v49  ;;  %1619 = vmatpush.msra.mxu2 %v2300_v45 }
0x1e33   :  { %v1506_v54 = vmul.f32 0.0, %v1503_v51 }
0x1e34   :  { %1668 = vmatpush.msrb.mxu2 %v2968_v2 }
0x1e36   :  { %1669 = vmatpush.msrb.mxu2 %v2973_v27 }
0x1e38   :  { %1670 = vmatpush.msrb.mxu2 %v2980_v29 }
0x1e3a   :  { %1671 = vmatpush.msrb.mxu2 %v2987_v30 }
0x1e90   :  { %v1509_v40 = vpop.permute.xlu1 %1508 }
0x1e91   :  { %v1511_v61 = vmul.f32 %v1509_v40, %v1503_v51 }
0x1e93   :  { %1513 = vrot.lane.b32.xlu2 %v1511_v61, %s2551_s16 }
0x1e98   :  { %v935_v52 = vpop.permute.xlu1 %934 }
0x1e99   :  { %938 = vst.msk [vmem:[#allocation6 + $0x8] sm:$0xff] %vm137_vm6, %v935_v52 }
0x1ea0   :  { %v1372_v53 = vld [vmem:[#allocation6 + $0x8] sm:$0xff] }
0x1ea1   :  { %2290 = vmatmul.msk.f32.gmra.mxu1 %vm137_vm6, %v1372_v53  ;;  %v1076_v53 = vmax.f32 %v2907_v44, 0.0 }
0x1eed   :  { %v1514_v55 = vpop.permute.xlu2 %1513 }
0x1eee   :  { %v1516_v59 = vadd.f32 %v1514_v55, %v1506_v54 }
0x1ef0   :  { %2473 = vtanh.f32 %v1516_v59 }
0x1ef6   :  { %v2474_v60 = vpop.eup %2473 }
0x1ef7   :  { %1519 = vrot.lane.b32.xlu0 %v2474_v60, %s2550_s15 }
0x1f1e   :  { %v1431_v9 = vpop.f32.mrf.mxu1 }
0x1f1f   :  { %v1432_v10 = vadd.f32 %v3000_v32, %v1431_v9 }
0x1f69   :  { %v1520_v4 = vpop.permute.xlu0 %1519 }
0x1f6a   :  { %v3010_v56 = vmul.f32 %v1520_v4, %v1503_v51 }
0x1f6c   :  { %1531 = vrot.lane.b32.xlu2 %v3010_v56, %s2551_s16 }
0x1fc6   :  { %v1532_v57 = vpop.permute.xlu2 %1531 }
0x1fc7   :  { %2298 = vmatmul.msk.f32.vlgmr.msrb.gmra.mxu0 %vm137_vm6, %v1532_v57 }
0x2044   :  { %v1552_v62 = vpop.f32.mrf.mxu0 }
0x2045   :  { %v1555_v12 = vadd.f32 %v1552_v62, %v1432_v10 }
0x2047   :  { %2475 = vtanh.f32 %v1555_v12  ;;  %v2299_v14 = vmul.f32 -1.442695, %v1555_v12 }
0x2049   :  { %2477 = vpow2.f32 %v2299_v14 }
0x204d   :  { %v2476_v13 = vpop.eup %2475 }
0x204e   :  { %1578 = vrot.lane.b32.xlu0 %v2476_v13, %s2550_s15 }
0x204f   :  { %v2478_v15 = vpop.eup %2477 }
0x2050   :  { %v1559_v16 = vadd.f32 1.0, %v2478_v15 }
0x2052   :  { %2479 = vrcp.f32 %v1559_v16  ;;  %v1571_v22 = vand.u32 2147483648, %v1559_v16  ;;  %vm1565_vm5 = vweird.f32 %v1559_v16  ;;  %v1569_v25 = vand.u32 2147483647, %v1559_v16 }
0x2054   :  { %v1572_v0 = vor.u32 1.1754944e-38, %v1571_v22  ;;  %vm1570_vm7 = vcmp.eq.f32.partialorder %v1569_v25, 8.507059e+37 }
0x2058   :  { %v2480_v7 = vpop.eup %2479 }
0x2059   :  { %v1561_v18 = vmul.f32 %v2480_v7, %v1559_v16  ;;  %vm1566_vm4 = vweird.f32 %v2480_v7 }
0x205a   :  { %vm1567_vm1 = vmor %vm1565_vm5, %vm1566_vm4 }
0x205b   :  { %v1562_v19 = vsub.f32 1.0, %v1561_v18 }
0x205d   :  { %v1563_v5 = vmul.f32 %v2480_v7, %v1562_v19 }
0x205f   :  { %v1564_v20 = vadd.f32 %v2480_v7, %v1563_v5 }
0x2061   :  { %v1568_v63 = vsel %vm1567_vm1, %v2480_v7, %v1564_v20 }
0x2062   :  { %v1573_v28 = vsel %vm1570_vm7, %v1572_v0, %v1568_v63 }
0x2063   :  { %v1576_v35 = vmul.f32 %v1573_v28, %v1516_v59 }
0x20c0   :  { %v1579_v26 = vpop.permute.xlu0 %1578 }
0x20c1   :  { %v1581_v34 = vmul.f32 %v1579_v26, %v1573_v28 }
0x20c3   :  { %1583 = vrot.lane.b32.xlu1 %v1581_v34, %s2551_s16 }
0x20cb   :  { %1006 = vrot.lane.b32.xlu1 %v1004_v23, %s2551_s16 }
0x2135   :  { %v1584_v36 = vpop.permute.xlu1 %1583 }
0x2136   :  { %v3022_v37 = vadd.f32 %v1584_v36, %v1576_v35  ;;  %v1523_v36 = vmax.f32 %v3010_v56, 0.0  ;;  %v1524_v56 = vld [vmem:[%s3291_s10] sm:$0xff] }
0x2138   :  { %2481 = vtanh.f32 %v3022_v37 }
0x213d   :  { %v1007_v3 = vpop.permute.xlu1 %1006 }
0x213e   :  { %v2482_v6 = vpop.eup %2481  ;;  %1010 = vst.msk [vmem:[#allocation6 + $0x10] sm:$0xff] %vm137_vm6, %v1007_v3 }
0x213f   :  { %1589 = vrot.lane.b32.xlu2 %v2482_v6, %s2550_s15 }
0x2145   :  { %v1373_v38 = vld [vmem:[#allocation6 + $0x10] sm:$0xff] }
0x2146   :  { %2291 = vmatmul.msk.f32.gmra.mxu1 %vm137_vm6, %v1373_v38  ;;  %v1527_v38 = vld [vmem:[%s3291_s10 + $0x18] sm:$0xff] }
0x2147   :  { %1641 = vmatpush.msra.mxu0 %v1527_v38 }
0x2199   :  { %v1590_v39 = vpop.permute.xlu2 %1589 }
0x219a   :  { %v1592_v33 = vmul.f32 %v1590_v39, %v1573_v28  ;;  %v1526_v39 = vld [vmem:[%s3291_s10 + $0x10] sm:$0xff] }
0x219b   :  { %1642 = vmatpush.msra.mxu0 %v1526_v39 }
0x219c   :  { %v1593_v17 = vmax.f32 %v1592_v33, 0.0  ;;  %1652 = vrot.lane.b32.xlu2 %v1592_v33, %s2551_s16  ;;  %v1525_v33 = vld [vmem:[%s3291_s10 + $0x8] sm:$0xff] }
0x219d   :  { %1643 = vmatpush.msra.mxu0 %v1525_v33 }
0x219e   :  { %1600 = vrot.lane.b32.xlu0 %v1593_v17, %s2551_s16 }
0x219f   :  { %1644 = vmatpush.msra.mxu0 %v1524_v56 }
0x21c3   :  { %v1434_v50 = vpop.f32.mrf.mxu1 }
0x21c4   :  { %v1435_v40 = vadd.f32 %v3000_v32, %v1434_v50 }
0x21f6   :  { %v1653_v47 = vpop.permute.xlu2 %1652 }
0x2210   :  { %v1601_v46 = vpop.permute.xlu0 %1600 }
0x2211   :  { %2304 = vmatmul.msk.f32.vlgmr.msra.gmra.mxu2 %vm137_vm6, %v1601_v46 }
0x2212   :  { %1765 = vmatpush.msra.mxu2 %v2968_v2 }
0x2214   :  { %1766 = vmatpush.msra.mxu2 %v2973_v27 }
0x2216   :  { %1767 = vmatpush.msra.mxu2 %v2980_v29 }
0x2218   :  { %1768 = vmatpush.msra.mxu2 %v2987_v30 }
0x2219   :  { %2306 = vmatmul.msk.f32.vlgmr.msrb.gmra.mxu2 %vm137_vm6, %v1653_v47 }
0x2294   :  { %v3052_v49 = vpop.f32.mrf.mxu2 }
0x229c   :  { %v1673_v51 = vpop.f32.mrf.mxu2 }
0x229d   :  { %v1676_v61 = vadd.f32 %v1673_v51, %v1435_v40 }
0x229f   :  { %2483 = vtanh.f32 %v1676_v61  ;;  %v2307_v54 = vmul.f32 -1.442695, %v1676_v61 }
0x22a1   :  { %2485 = vpow2.f32 %v2307_v54 }
0x22a5   :  { %v2484_v52 = vpop.eup %2483 }
0x22a6   :  { %1699 = vrot.lane.b32.xlu0 %v2484_v52, %s2550_s15 }
0x22a7   :  { %v2486_v55 = vpop.eup %2485 }
0x22a8   :  { %v1680_v59 = vadd.f32 1.0, %v2486_v55 }
0x22aa   :  { %2487 = vrcp.f32 %v1680_v59  ;;  %v1692_v62 = vand.u32 2147483648, %v1680_v59  ;;  %vm1686_vm9 = vweird.f32 %v1680_v59  ;;  %v1690_v12 = vand.u32 2147483647, %v1680_v59 }
0x22ac   :  { %v1693_v14 = vor.u32 1.1754944e-38, %v1692_v62  ;;  %vm1691_vm11 = vcmp.eq.f32.partialorder %v1690_v12, 8.507059e+37 }
0x22ae   :  { %1078 = vrot.lane.b32.xlu0 %v1076_v53, %s2551_s16  ;;  %v2547_v53 = vld [vmem:[%s3284_s3] ss:$0 sm:$0xff] }
0x22af   :  { %v122_v54 = vadd.f32 %v2547_v53, %v3015_v8 }
0x22b0   :  { %v2488_v60 = vpop.eup %2487 }
0x22b1   :  { %v1682_v4 = vmul.f32 %v2488_v60, %v1680_v59  ;;  %vm1687_vm8 = vweird.f32 %v2488_v60  ;;  %v664_v55 = vadd.f32 %v2862_v11, %v122_v54 }
0x22b2   :  { %vm1688_vm10 = vmor %vm1686_vm9, %vm1687_vm8 }
0x22b3   :  { %v1683_v57 = vsub.f32 1.0, %v1682_v4  ;;  %v2265_v12 = vmul.f32 -1.442695, %v664_v55 }
0x22b5   :  { %v1684_v9 = vmul.f32 %v2488_v60, %v1683_v57 }
0x22b7   :  { %v1685_v10 = vadd.f32 %v2488_v60, %v1684_v9 }
0x22b9   :  { %v1689_v13 = vsel %vm1688_vm10, %v2488_v60, %v1685_v10  ;;  %v1148_v60 = vmax.f32 %v2920_v21, 0.0 }
0x22ba   :  { %v1694_v15 = vsel %vm1691_vm11, %v1693_v14, %v1689_v13  ;;  %v2311_v13 = vld [vmem:[%s3291_s10 + $0x58] sm:$0xff]  ;;  %v2310_v14 = vld [vmem:[%s3291_s10 + $0x50] sm:$0xff] }
0x22bb   :  { %v1697_v19 = vmul.f32 %v1694_v15, %v3022_v37  ;;  %1737 = vmatpush.msrb.mxu0 %v2311_v13  ;;  %v2317_v13 = vld [vmem:[%s3291_s10 + $0x70] sm:$0xff] }
0x22bd   :  { %1738 = vmatpush.msrb.mxu0 %v2310_v14  ;;  %v2316_v14 = vld [vmem:[%s3291_s10 + $0x68] sm:$0xff] }
0x2318   :  { %v1700_v44 = vpop.permute.xlu0 %1699 }
0x2319   :  { %v1702_v16 = vmul.f32 %v1700_v44, %v1694_v15  ;;  %v2309_v44 = vld [vmem:[%s3291_s10 + $0x48] sm:$0xff] }
0x231a   :  { %1739 = vmatpush.msrb.mxu0 %v2309_v44  ;;  %v2315_v44 = vld [vmem:[%s3291_s10 + $0x60] sm:$0xff] }
0x231b   :  { %1704 = vrot.lane.b32.xlu1 %v1702_v16, %s2551_s16  ;;  %v2308_v16 = vld [vmem:[%s3291_s10 + $0x40] sm:$0xff] }
0x231c   :  { %1740 = vmatpush.msrb.mxu0 %v2308_v16 }
0x2320   :  { %v1079_v7 = vpop.permute.xlu0 %1078 }
0x2321   :  { %1082 = vst.msk [vmem:[#allocation6 + $0x18] sm:$0xff] %vm137_vm6, %v1079_v7 }
0x2328   :  { %v1374_v18 = vld [vmem:[#allocation6 + $0x18] sm:$0xff] }
0x2329   :  { %2292 = vmatmul.msk.f32.gmra.mxu1 %vm137_vm6, %v1374_v18 }
0x238d   :  { %v1705_v5 = vpop.permute.xlu1 %1704 }
0x238e   :  { %v1707_v20 = vadd.f32 %v1705_v5, %v1697_v19 }
0x2390   :  { %2489 = vtanh.f32 %v1707_v20 }
0x2396   :  { %v2490_v22 = vpop.eup %2489 }
0x2397   :  { %1710 = vrot.lane.b32.xlu2 %v2490_v22, %s2550_s15 }
0x23a6   :  { %v1437_v26 = vpop.f32.mrf.mxu1 }
0x23a7   :  { %v1438_v28 = vadd.f32 %v3000_v32, %v1437_v26 }
0x23f1   :  { %v1711_v25 = vpop.permute.xlu2 %1710 }
0x23f2   :  { %v3063_v63 = vmul.f32 %v1711_v25, %v1694_v15 }
0x23f4   :  { %1749 = vrot.lane.b32.xlu1 %v3063_v63, %s2551_s16  ;;  %v1714_v11 = vmax.f32 %v3063_v63, 0.0 }
0x2466   :  { %v1750_v0 = vpop.permute.xlu1 %1749 }
0x2467   :  { %2313 = vmatmul.msk.f32.vlgmr.msra.gmra.mxu2 %vm137_vm6, %v1750_v0 }
0x24ea   :  { %v1770_v34 = vpop.f32.mrf.mxu2 }
0x24eb   :  { %v1773_v23 = vadd.f32 %v1770_v34, %v1438_v28 }
0x24ed   :  { %2491 = vtanh.f32 %v1773_v23  ;;  %v2314_v37 = vmul.f32 -1.442695, %v1773_v23 }
0x24ef   :  { %2493 = vpow2.f32 %v2314_v37 }
0x24f3   :  { %v2492_v35 = vpop.eup %2491 }
0x24f4   :  { %1796 = vrot.lane.b32.xlu2 %v2492_v35, %s2550_s15 }
0x24f5   :  { %v2494_v3 = vpop.eup %2493 }
0x24f6   :  { %v1777_v6 = vadd.f32 1.0, %v2494_v3 }
0x24f8   :  { %2495 = vrcp.f32 %v1777_v6  ;;  %v1789_v46 = vand.u32 2147483648, %v1777_v6  ;;  %vm1783_vm13 = vweird.f32 %v1777_v6  ;;  %v1787_v47 = vand.u32 2147483647, %v1777_v6 }
0x24f9   :  { %2497 = vtanh.f32 %v664_v55 }
0x24fa   :  { %v1790_v40 = vor.u32 1.1754944e-38, %v1789_v46  ;;  %vm1788_vm15 = vcmp.eq.f32.partialorder %v1787_v47, 8.507059e+37 }
0x24fc   :  { %1625 = vrot.lane.b32.xlu2 %v1523_v36, %s2551_s16 }
0x24fe   :  { %v2496_v17 = vpop.eup %2495 }
0x24ff   :  { %v1779_v41 = vmul.f32 %v2496_v17, %v1777_v6  ;;  %vm1784_vm12 = vweird.f32 %v2496_v17  ;;  %v2498_v4 = vpop.eup %2497 }
0x2500   :  { %vm1785_vm14 = vmor %vm1783_vm13, %vm1784_vm12 }
0x2501   :  { %v1780_v42 = vsub.f32 1.0, %v1779_v41 }
0x2503   :  { %v1781_v43 = vmul.f32 %v2496_v17, %v1780_v42 }
0x2505   :  { %v1782_v45 = vadd.f32 %v2496_v17, %v1781_v43 }
0x2507   :  { %v1786_v50 = vsel %vm1785_vm14, %v2496_v17, %v1782_v45 }
0x2508   :  { %v1791_v61 = vsel %vm1788_vm15, %v1790_v40, %v1786_v50 }
0x2509   :  { %v1794_v57 = vmul.f32 %v1791_v61, %v1707_v20 }
0x254e   :  { %v1797_v51 = vpop.permute.xlu2 %1796 }
0x254f   :  { %v1799_v52 = vmul.f32 %v1797_v51, %v1791_v61 }
0x2551   :  { %1801 = vrot.lane.b32.xlu0 %v1799_v52, %s2551_s16 }
0x2556   :  { %v1626_v59 = vpop.permute.xlu2 %1625 }
0x2557   :  { %2305 = vmatmul.msk.f32.vlgmr.msra.gmra.mxu0 %vm137_vm6, %v1626_v59 }
0x2558   :  { %1862 = vmatpush.msra.mxu0 %v2968_v2 }
0x2559   :  { %1150 = vrot.lane.b32.xlu0 %v1148_v60, %s2551_s16 }
0x255a   :  { %1863 = vmatpush.msra.mxu0 %v2973_v27 }
0x255c   :  { %1864 = vmatpush.msra.mxu0 %v2980_v29 }
0x255e   :  { %1865 = vmatpush.msra.mxu0 %v2987_v30 }
0x2561   :  { %687 = vrot.lane.b32.xlu0 %v2498_v4, %s2550_s15 }
0x25c3   :  { %v1802_v9 = vpop.permute.xlu0 %1801 }
0x25c4   :  { %v3094_v10 = vadd.f32 %v1802_v9, %v1794_v57 }
0x25c6   :  { %2499 = vtanh.f32 %v3094_v10 }
0x25c7   :  { %2501 = vpow2.f32 %v2265_v12  ;;  %v2318_v12 = vld [vmem:[%s3291_s10 + $0x78] sm:$0xff] }
0x25c8   :  { %1834 = vmatpush.msra.mxu3 %v2318_v12 }
0x25ca   :  { %1835 = vmatpush.msra.mxu3 %v2317_v13 }
0x25cb   :  { %v1151_v8 = vpop.permute.xlu0 %1150 }
0x25cc   :  { %v2500_v62 = vpop.eup %2499  ;;  %1154 = vst.msk [vmem:[#allocation6 + $0x20] sm:$0xff] %vm137_vm6, %v1151_v8  ;;  %1836 = vmatpush.msra.mxu3 %v2316_v14 }
0x25cd   :  { %1807 = vrot.lane.b32.xlu1 %v2500_v62, %s2550_s15  ;;  %v2502_v15 = vpop.eup %2501 }
0x25ce   :  { %v668_v7 = vadd.f32 1.0, %v2502_v15  ;;  %1837 = vmatpush.msra.mxu3 %v2315_v44 }
0x25d0   :  { %2503 = vrcp.f32 %v668_v7  ;;  %v680_v0 = vand.u32 2147483648, %v668_v7  ;;  %vm674_vm2 = vweird.f32 %v668_v7  ;;  %v678_v26 = vand.u32 2147483647, %v668_v7  ;;  %1959 = vmatpush.msrb.mxu3 %v2968_v2 }
0x25d2   :  { %v681_v34 = vor.u32 1.1754944e-38, %v680_v0  ;;  %vm679_vm4 = vcmp.eq.f32.partialorder %v678_v26, 8.507059e+37  ;;  %1960 = vmatpush.msrb.mxu3 %v2973_v27 }
0x25d3   :  { %v1375_v21 = vld [vmem:[#allocation6 + $0x20] sm:$0xff]  ;;  %v688_v23 = vpop.permute.xlu0 %687 }
0x25d4   :  { %2293 = vmatmul.msk.f32.gmra.mxu1 %vm137_vm6, %v1375_v21  ;;  %v3122_v6 = vpop.f32.mrf.mxu0  ;;  %1961 = vmatpush.msrb.mxu3 %v2980_v29 }
0x25d5   :  { %1721 = vrot.lane.b32.xlu1 %v1714_v11, %s2551_s16 }
0x25d6   :  { %v2504_v18 = vpop.eup %2503  ;;  %1962 = vmatpush.msrb.mxu3 %v2987_v30 }
0x25d7   :  { %v670_v19 = vmul.f32 %v2504_v18, %v668_v7  ;;  %vm675_vm0 = vweird.f32 %v2504_v18 }
0x25d8   :  { %vm676_vm3 = vmor %vm674_vm2, %vm675_vm0 }
0x25d9   :  { %v671_v5 = vsub.f32 1.0, %v670_v19 }
0x25db   :  { %v672_v20 = vmul.f32 %v2504_v18, %v671_v5  ;;  %v1220_v5 = vmax.f32 %v2933_v48, 0.0 }
0x25dd   :  { %v673_v25 = vadd.f32 %v2504_v18, %v672_v20 }
0x25df   :  { %v677_v28 = vsel %vm676_vm3, %v2504_v18, %v673_v25 }
0x25e0   :  { %v682_v35 = vsel %vm679_vm4, %v681_v34, %v677_v28 }
0x25e1   :  { %v690_v37 = vmul.f32 %v688_v23, %v682_v35  ;;  %v685_v42 = vmul.f32 %v682_v35, %v2835_v58 }
0x263f   :  { %v1808_v22 = vpop.permute.xlu1 %1807 }
0x2640   :  { %v1810_v63 = vmul.f32 %v1808_v22, %v1791_v61 }
0x2642   :  { %1846 = vrot.lane.b32.xlu2 %v1810_v63, %s2551_s16  ;;  %v1811_v47 = vmax.f32 %v1810_v63, 0.0 }
0x2647   :  { %v1722_v36 = vpop.permute.xlu1 %1721 }
0x2648   :  { %2312 = vmatmul.msk.f32.vlgmr.msrb.gmra.mxu0 %vm137_vm6, %v1722_v36 }
0x264a   :  { %692 = vrot.lane.b32.xlu2 %v690_v37, %s2551_s16 }
0x2651   :  { %v1440_v39 = vpop.f32.mrf.mxu1 }
0x2652   :  { %v1441_v33 = vadd.f32 %v3000_v32, %v1440_v39 }
0x269c   :  { %v1847_v3 = vpop.permute.xlu2 %1846 }
0x269d   :  { %2320 = vmatmul.msk.f32.vlgmr.msra.gmra.mxu0 %vm137_vm6, %v1847_v3  ;;  %v2548_v3 = vld [vmem:[%s3286_s6] ss:$0 sm:$0xff] }
0x26a4   :  { %v693_v41 = vpop.permute.xlu2 %692 }
0x26a5   :  { %v695_v43 = vadd.f32 %v693_v41, %v685_v42 }
0x26c5   :  { %v3124_v38 = vpop.f32.mrf.mxu0 }
0x271a   :  { %v1867_v56 = vpop.f32.mrf.mxu0 }
0x271b   :  { %v1870_v17 = vadd.f32 %v1867_v56, %v1441_v33 }
0x271d   :  { %2505 = vtanh.f32 %v1870_v17  ;;  %v2321_v50 = vmul.f32 -1.442695, %v1870_v17 }
0x271e   :  { %2507 = vtanh.f32 %v695_v43 }
0x271f   :  { %2509 = vpow2.f32 %v2321_v50 }
0x2723   :  { %v2506_v45 = vpop.eup %2505 }
0x2724   :  { %1893 = vrot.lane.b32.xlu1 %v2506_v45, %s2550_s15  ;;  %v2508_v46 = vpop.eup %2507  ;;  %v2325_v45 = vld [vmem:[%s3291_s10 + $0x98] sm:$0xff] }
0x2725   :  { %v2510_v40 = vpop.eup %2509  ;;  %1931 = vmatpush.msrb.mxu2 %v2325_v45 }
0x2726   :  { %v1874_v51 = vadd.f32 1.0, %v2510_v40 }
0x2728   :  { %2511 = vrcp.f32 %v1874_v51  ;;  %v1886_v55 = vand.u32 2147483648, %v1874_v51  ;;  %vm1880_vm1 = vweird.f32 %v1874_v51  ;;  %v1884_v59 = vand.u32 2147483647, %v1874_v51 }
0x272a   :  { %v1887_v4 = vor.u32 1.1754944e-38, %v1886_v55  ;;  %vm1885_vm8 = vcmp.eq.f32.partialorder %v1884_v59, 8.507059e+37 }
0x272c   :  { %698 = vrot.lane.b32.xlu1 %v2508_v46, %s2550_s15  ;;  %v2323_v46 = vld [vmem:[%s3291_s10 + $0x88] sm:$0xff] }
0x272e   :  { %v2512_v61 = vpop.eup %2511 }
0x272f   :  { %v1876_v52 = vmul.f32 %v2512_v61, %v1874_v51  ;;  %vm1881_vm5 = vweird.f32 %v2512_v61 }
0x2730   :  { %vm1882_vm7 = vmor %vm1880_vm1, %vm1881_vm5 }
0x2731   :  { %v1877_v53 = vsub.f32 1.0, %v1876_v52 }
0x2733   :  { %v1878_v58 = vmul.f32 %v2512_v61, %v1877_v53 }
0x2734   :  { %1818 = vrot.lane.b32.xlu1 %v1811_v47, %s2551_s16  ;;  %v2322_v47 = vld [vmem:[%s3291_s10 + $0x80] sm:$0xff] }
0x2735   :  { %v1879_v54 = vadd.f32 %v2512_v61, %v1878_v58 }
0x2737   :  { %v1883_v60 = vsel %vm1882_vm7, %v2512_v61, %v1879_v54 }
0x2738   :  { %v1888_v9 = vsel %vm1885_vm8, %v1887_v4, %v1883_v60 }
0x2739   :  { %v1891_v15 = vmul.f32 %v1888_v9, %v3094_v10 }
0x2796   :  { %v1894_v57 = vpop.permute.xlu1 %1893 }
0x2797   :  { %v1896_v8 = vmul.f32 %v1894_v57, %v1888_v9 }
0x2799   :  { %1898 = vrot.lane.b32.xlu0 %v1896_v8, %s2551_s16 }
0x279e   :  { %v699_v62 = vpop.permute.xlu1 %698 }
0x279f   :  { %v701_v11 = vmul.f32 %v699_v62, %v682_v35 }
0x27a1   :  { %v702_v21 = vmax.f32 %v701_v11, 0.0 }
0x27a3   :  { %704 = vrot.lane.b32.xlu0 %v702_v21, %s2551_s16 }
0x27a6   :  { %v1819_v20 = vpop.permute.xlu1 %1818 }
0x280b   :  { %v1899_v16 = vpop.permute.xlu0 %1898 }
0x280c   :  { %v3149_v7 = vadd.f32 %v1899_v16, %v1891_v15 }
0x280e   :  { %2513 = vtanh.f32 %v3149_v7 }
0x2814   :  { %v2514_v18 = vpop.eup %2513 }
0x2815   :  { %1904 = vrot.lane.b32.xlu2 %v2514_v18, %s2550_s15  ;;  %v705_v19 = vpop.permute.xlu0 %704 }
0x2816   :  { %708 = vst.msk [vmem:[#allocation5 + $0x38] sm:$0xff] %vm137_vm6, %v705_v19 }
0x281d   :  { %1222 = vrot.lane.b32.xlu2 %v1220_v5, %s2551_s16  ;;  %v716_v10 = vld [vmem:[#allocation5 + $0x38] sm:$0xff] }
0x281e   :  { %2273 = vmatmul.msk.f32.gmra.mxu3 %vm137_vm6, %v716_v10 }
0x2826   :  { %2319 = vmatmul.msk.f32.vlgmr.msra.gmra.mxu3 %vm137_vm6, %v1819_v20 }
0x286f   :  { %v1905_v22 = vpop.permute.xlu2 %1904 }
0x2870   :  { %v1907_v25 = vmul.f32 %v1905_v22, %v1888_v9  ;;  %v1292_v9 = vmax.f32 %v2961_v1, 0.0 }
0x2872   :  { %1943 = vrot.lane.b32.xlu0 %v1907_v25, %s2551_s16  ;;  %v1908_v56 = vmax.f32 %v1907_v25, 0.0 }
0x2877   :  { %v1223_v63 = vpop.permute.xlu2 %1222 }
0x2878   :  { %1226 = vst.msk [vmem:[#allocation6 + $0x28] sm:$0xff] %vm137_vm6, %v1223_v63 }
0x287f   :  { %v1376_v0 = vld [vmem:[#allocation6 + $0x28] sm:$0xff] }
0x2880   :  { %2294 = vmatmul.msk.f32.gmra.mxu1 %vm137_vm6, %v1376_v0 }
0x28a1   :  { %v787_v48 = vpop.f32.mrf.mxu3 }
0x28a2   :  { %v788_v39 = vadd.f32 %v2548_v3, %v787_v48 }
0x28a4   :  { %v1326_v33 = vadd.f32 %v2995_v31, %v788_v39  ;;  %v2324_v31 = vld [vmem:[%s3291_s10 + $0x90] sm:$0xff] }
0x28a5   :  { %1932 = vmatpush.msrb.mxu2 %v2324_v31 }
0x28a6   :  { %v2288_v1 = vmul.f32 -1.442695, %v1326_v33 }
0x28a7   :  { %1933 = vmatpush.msrb.mxu2 %v2323_v46 }
0x28a9   :  { %v3163_v28 = vpop.f32.mrf.mxu3  ;;  %1934 = vmatpush.msrb.mxu2 %v2322_v47  ;;  %v2331_v47 = vld [vmem:[%s3291_s10 + $0xb0] sm:$0xff] }
0x28ab   :  { %2056 = vmatpush.msra.mxu2 %v2968_v2 }
0x28ad   :  { %2057 = vmatpush.msra.mxu2 %v2973_v27 }
0x28af   :  { %2058 = vmatpush.msra.mxu2 %v2980_v29 }
0x28b1   :  { %2059 = vmatpush.msra.mxu2 %v2987_v30 }
0x28e4   :  { %v1944_v26 = vpop.permute.xlu0 %1943 }
0x28e5   :  { %2327 = vmatmul.msk.f32.vlgmr.msrb.gmra.mxu3 %vm137_vm6, %v1944_v26 }
0x28fd   :  { %v1443_v34 = vpop.f32.mrf.mxu1 }
0x28fe   :  { %v1444_v23 = vadd.f32 %v3000_v32, %v1443_v34 }
0x2968   :  { %v1964_v35 = vpop.f32.mrf.mxu3 }
0x2969   :  { %v1967_v36 = vadd.f32 %v1964_v35, %v1444_v23 }
0x296b   :  { %2515 = vtanh.f32 %v1967_v36  ;;  %v2328_v41 = vmul.f32 -1.442695, %v1967_v36 }
0x296c   :  { %2517 = vtanh.f32 %v1326_v33 }
0x296d   :  { %2519 = vpow2.f32 %v2328_v41 }
0x2971   :  { %v2516_v37 = vpop.eup %2515 }
0x2972   :  { %1990 = vrot.lane.b32.xlu1 %v2516_v37, %s2550_s15  ;;  %v2518_v17 = vpop.eup %2517 }
0x2973   :  { %v2520_v42 = vpop.eup %2519 }
0x2974   :  { %v1971_v43 = vadd.f32 1.0, %v2520_v42 }
0x2976   :  { %2521 = vrcp.f32 %v1971_v43  ;;  %v1983_v53 = vand.u32 2147483648, %v1971_v43  ;;  %vm1977_vm10 = vweird.f32 %v1971_v43  ;;  %v1981_v58 = vand.u32 2147483647, %v1971_v43 }
0x2978   :  { %v1984_v55 = vor.u32 1.1754944e-38, %v1983_v53  ;;  %vm1982_vm12 = vcmp.eq.f32.partialorder %v1981_v58, 8.507059e+37 }
0x297a   :  { %1915 = vrot.lane.b32.xlu1 %v1908_v56, %s2551_s16 }
0x297c   :  { %v2522_v50 = vpop.eup %2521 }
0x297d   :  { %v1973_v40 = vmul.f32 %v2522_v50, %v1971_v43  ;;  %vm1978_vm9 = vweird.f32 %v2522_v50 }
0x297e   :  { %vm1979_vm11 = vmor %vm1977_vm10, %vm1978_vm9 }
0x297f   :  { %v1974_v51 = vsub.f32 1.0, %v1973_v40  ;;  %v2330_v40 = vld [vmem:[%s3291_s10 + $0xa8] sm:$0xff] }
0x2981   :  { %v1975_v61 = vmul.f32 %v2522_v50, %v1974_v51  ;;  %v2329_v51 = vld [vmem:[%s3291_s10 + $0xa0] sm:$0xff] }
0x2982   :  { %1349 = vrot.lane.b32.xlu1 %v2518_v17, %s2550_s15 }
0x2983   :  { %v1976_v52 = vadd.f32 %v2522_v50, %v1975_v61 }
0x2985   :  { %v1980_v54 = vsel %vm1979_vm11, %v2522_v50, %v1976_v52 }
0x2986   :  { %v1985_v60 = vsel %vm1982_vm12, %v1984_v55, %v1980_v54 }
0x2987   :  { %v1988_v8 = vmul.f32 %v1985_v60, %v3149_v7 }
0x29e4   :  { %v1991_v59 = vpop.permute.xlu1 %1990 }
0x29e5   :  { %v1993_v4 = vmul.f32 %v1991_v59, %v1985_v60 }
0x29e7   :  { %1995 = vrot.lane.b32.xlu2 %v1993_v4, %s2551_s16 }
0x29ec   :  { %v1916_v57 = vpop.permute.xlu1 %1915 }
0x29ed   :  { %2326 = vmatmul.msk.f32.vlgmr.msrb.gmra.mxu2 %vm137_vm6, %v1916_v57 }
0x29ef   :  { %1294 = vrot.lane.b32.xlu2 %v1292_v9, %s2551_s16 }
0x29f4   :  { %v1350_v0 = vpop.permute.xlu1 %1349 }
0x2a41   :  { %v1996_v62 = vpop.permute.xlu2 %1995 }
0x2a42   :  { %v3194_v11 = vadd.f32 %v1996_v62, %v1988_v8 }
0x2a44   :  { %2523 = vtanh.f32 %v3194_v11 }
0x2a45   :  { %2525 = vpow2.f32 %v2288_v1 }
0x2a49   :  { %v1295_v21 = vpop.permute.xlu2 %1294 }
0x2a4a   :  { %v2524_v12 = vpop.eup %2523  ;;  %1298 = vst.msk [vmem:[#allocation6 + $0x30] sm:$0xff] %vm137_vm6, %v1295_v21 }
0x2a4b   :  { %2001 = vrot.lane.b32.xlu0 %v2524_v12, %s2550_s15  ;;  %v2526_v14 = vpop.eup %2525 }
0x2a4c   :  { %v1330_v44 = vadd.f32 1.0, %v2526_v14 }
0x2a4e   :  { %2527 = vrcp.f32 %v1330_v44  ;;  %v1342_v20 = vand.u32 2147483648, %v1330_v44  ;;  %vm1336_vm14 = vweird.f32 %v1330_v44  ;;  %v1340_v22 = vand.u32 2147483647, %v1330_v44 }
0x2a50   :  { %v1343_v63 = vor.u32 1.1754944e-38, %v1342_v20  ;;  %vm1341_vm0 = vcmp.eq.f32.partialorder %v1340_v22, 8.507059e+37 }
0x2a51   :  { %v1377_v13 = vld [vmem:[#allocation6 + $0x30] sm:$0xff] }
0x2a52   :  { %2295 = vmatmul.msk.f32.gmra.mxu1 %vm137_vm6, %v1377_v13 }
0x2a54   :  { %v2528_v15 = vpop.eup %2527 }
0x2a55   :  { %v1332_v16 = vmul.f32 %v2528_v15, %v1330_v44  ;;  %vm1337_vm13 = vweird.f32 %v2528_v15 }
0x2a56   :  { %vm1338_vm15 = vmor %vm1336_vm14, %vm1337_vm13 }
0x2a57   :  { %v1333_v7 = vsub.f32 1.0, %v1332_v16 }
0x2a59   :  { %v1334_v18 = vmul.f32 %v2528_v15, %v1333_v7 }
0x2a5b   :  { %v1335_v5 = vadd.f32 %v2528_v15, %v1334_v18 }
0x2a5d   :  { %v1339_v25 = vsel %vm1338_vm15, %v2528_v15, %v1335_v5 }
0x2a5e   :  { %v1344_v26 = vsel %vm1341_vm0, %v1343_v63, %v1339_v25  ;;  %v2339_v25 = vld [vmem:[%s3291_s10 + $0xd8] sm:$0xff]  ;;  %v2337_v63 = vld [vmem:[%s3291_s10 + $0xc8] sm:$0xff] }
0x2a5f   :  { %v1352_v48 = vmul.f32 %v1350_v0, %v1344_v26  ;;  %v1347_v33 = vmul.f32 %v1344_v26, %v2955_v24  ;;  %v2332_v24 = vld [vmem:[%s3291_s10 + $0xb8] sm:$0xff]  ;;  %2125 = vmatpush.msra.mxu3 %v2339_v25  ;;  %v2336_v0 = vld [vmem:[%s3291_s10 + $0xc0] sm:$0xff] }
0x2a60   :  { %2028 = vmatpush.msrb.mxu0 %v2332_v24 }
0x2a62   :  { %2029 = vmatpush.msrb.mxu0 %v2331_v47  ;;  %v2345_v47 = vld [vmem:[%s3291_s10 + $0xf0] sm:$0xff] }
0x2a64   :  { %2030 = vmatpush.msrb.mxu0 %v2330_v40  ;;  %v2343_v40 = vld [vmem:[%s3291_s10 + $0xe0] sm:$0xff] }
0x2a66   :  { %2031 = vmatpush.msrb.mxu0 %v2329_v51 }
0x2a68   :  { %2153 = vmatpush.msra.mxu0 %v2968_v2 }
0x2a6a   :  { %2154 = vmatpush.msra.mxu0 %v2973_v27 }
0x2a6c   :  { %2155 = vmatpush.msra.mxu0 %v2980_v29 }
0x2a6e   :  { %2156 = vmatpush.msra.mxu0 %v2987_v30 }
0x2a70   :  { %v3203_v23 = vpop.f32.mrf.mxu2 }
0x2abd   :  { %v2002_v19 = vpop.permute.xlu0 %2001 }
0x2abe   :  { %v2004_v10 = vmul.f32 %v2002_v19, %v1985_v60 }
0x2ac0   :  { %2040 = vrot.lane.b32.xlu0 %v2004_v10, %s2551_s16  ;;  %v2005_v42 = vmax.f32 %v2004_v10, 0.0 }
0x2ac8   :  { %1354 = vrot.lane.b32.xlu0 %v1352_v48, %s2551_s16 }
0x2acf   :  { %v1446_v35 = vpop.f32.mrf.mxu1 }
0x2ad0   :  { %v1447_v36 = vadd.f32 %v3000_v32, %v1446_v35 }
0x2b32   :  { %v2041_v34 = vpop.permute.xlu0 %2040 }
0x2b33   :  { %2334 = vmatmul.msk.f32.vlgmr.msra.gmra.mxu2 %vm137_vm6, %v2041_v34 }
0x2b3a   :  { %v1355_v39 = vpop.permute.xlu0 %1354 }
0x2b3b   :  { %v1357_v56 = vadd.f32 %v1355_v39, %v1347_v33 }
0x2bb6   :  { %v2061_v37 = vpop.f32.mrf.mxu2 }
0x2bb7   :  { %v2064_v3 = vadd.f32 %v2061_v37, %v1447_v36 }
0x2bb9   :  { %2529 = vtanh.f32 %v2064_v3  ;;  %v2335_v43 = vmul.f32 -1.442695, %v2064_v3 }
0x2bba   :  { %2531 = vtanh.f32 %v1357_v56 }
0x2bbb   :  { %2533 = vpow2.f32 %v2335_v43 }
0x2bbf   :  { %v2530_v17 = vpop.eup %2529 }
0x2bc0   :  { %2087 = vrot.lane.b32.xlu2 %v2530_v17, %s2550_s15  ;;  %v2532_v41 = vpop.eup %2531 }
0x2bc1   :  { %v2534_v45 = vpop.eup %2533 }
0x2bc2   :  { %v2068_v31 = vadd.f32 1.0, %v2534_v45 }
0x2bc4   :  { %2535 = vrcp.f32 %v2068_v31  ;;  %v2080_v58 = vand.u32 2147483648, %v2068_v31  ;;  %vm2074_vm3 = vweird.f32 %v2068_v31  ;;  %v2078_v54 = vand.u32 2147483647, %v2068_v31 }
0x2bc6   :  { %v2081_v59 = vor.u32 1.1754944e-38, %v2080_v58  ;;  %vm2079_vm5 = vcmp.eq.f32.partialorder %v2078_v54, 8.507059e+37  ;;  %v1647_v58 = vadd.f32 %v3122_v6, %v3052_v49 }
0x2bc8   :  { %1360 = vrot.lane.b32.xlu2 %v2532_v41, %s2550_s15  ;;  %v1745_v54 = vadd.f32 %v3124_v38, %v1647_v58 }
0x2bca   :  { %v2536_v46 = vpop.eup %2535 }
0x2bcb   :  { %v2070_v50 = vmul.f32 %v2536_v46, %v2068_v31  ;;  %vm2075_vm2 = vweird.f32 %v2536_v46 }
0x2bcc   :  { %vm2076_vm4 = vmor %vm2074_vm3, %vm2075_vm2 }
0x2bcd   :  { %v2071_v61 = vsub.f32 1.0, %v2070_v50  ;;  %v2344_v50 = vld [vmem:[%s3291_s10 + $0xe8] sm:$0xff] }
0x2bcf   :  { %v2072_v52 = vmul.f32 %v2536_v46, %v2071_v61 }
0x2bd0   :  { %2012 = vrot.lane.b32.xlu2 %v2005_v42, %s2551_s16 }
0x2bd1   :  { %v2073_v53 = vadd.f32 %v2536_v46, %v2072_v52 }
0x2bd3   :  { %v2077_v55 = vsel %vm2076_vm4, %v2536_v46, %v2073_v53  ;;  %v2346_v46 = vld [vmem:[%s3291_s10 + $0xf8] sm:$0xff] }
0x2bd4   :  { %v2082_v4 = vsel %vm2079_vm5, %v2081_v59, %v2077_v55  ;;  %2222 = vmatpush.msrb.mxu2 %v2346_v46  ;;  %v1842_v55 = vadd.f32 %v3163_v28, %v1745_v54 }
0x2bd5   :  { %v2085_v30 = vmul.f32 %v2082_v4, %v3194_v11 }
0x2bd6   :  { %2223 = vmatpush.msrb.mxu2 %v2345_v47  ;;  %v1939_v59 = vadd.f32 %v3203_v23, %v1842_v55 }
0x2bd8   :  { %2224 = vmatpush.msrb.mxu2 %v2344_v50 }
0x2bda   :  { %2225 = vmatpush.msrb.mxu2 %v2343_v40 }
0x2c1a   :  { %v2088_v60 = vpop.permute.xlu2 %2087 }
0x2c1b   :  { %v2090_v57 = vmul.f32 %v2088_v60, %v2082_v4 }
0x2c1d   :  { %2092 = vrot.lane.b32.xlu1 %v2090_v57, %s2551_s16 }
0x2c22   :  { %v1361_v2 = vpop.permute.xlu2 %1360 }
0x2c23   :  { %v1363_v27 = vmul.f32 %v1361_v2, %v1344_v26  ;;  %v2354_v2 = vld [vmem:[%s3292_s11] ss:$0 sm:$0xff] }
0x2c25   :  { %v1364_v9 = vmax.f32 %v1363_v27, 0.0 }
0x2c27   :  { %1366 = vrot.lane.b32.xlu1 %v1364_v9, %s2551_s16 }
0x2c2a   :  { %v2013_v29 = vpop.permute.xlu2 %2012 }
0x2c2b   :  { %2333 = vmatmul.msk.f32.vlgmr.msrb.gmra.mxu0 %vm137_vm6, %v2013_v29 }
0x2c8f   :  { %v2093_v8 = vpop.permute.xlu1 %2092 }
0x2c90   :  { %v2095_v62 = vadd.f32 %v2093_v8, %v2085_v30 }
0x2c92   :  { %2537 = vtanh.f32 %v2095_v62 }
0x2c98   :  { %v2538_v21 = vpop.eup %2537 }
0x2c99   :  { %2098 = vrot.lane.b32.xlu0 %v2538_v21, %s2550_s15  ;;  %v1367_v12 = vpop.permute.xlu1 %1366 }
0x2c9a   :  { %1370 = vst.msk [vmem:[#allocation6 + $0x38] sm:$0xff] %vm137_vm6, %v1367_v12 }
0x2ca1   :  { %v1378_v13 = vld [vmem:[#allocation6 + $0x38] sm:$0xff] }
0x2ca2   :  { %2296 = vmatmul.msk.f32.gmra.mxu1 %vm137_vm6, %v1378_v13 }
0x2ca8   :  { %v3235_v11 = vpop.f32.mrf.mxu0 }
0x2d0b   :  { %v2099_v1 = vpop.permute.xlu0 %2098 }
0x2d0c   :  { %v2101_v14 = vmul.f32 %v2099_v1, %v2082_v4  ;;  %v2036_v4 = vadd.f32 %v3235_v11, %v1939_v59 }
0x2d0e   :  { %2137 = vrot.lane.b32.xlu0 %v2101_v14, %s2551_s16  ;;  %v2102_v5 = vmax.f32 %v2101_v14, 0.0 }
0x2d1f   :  { %v1449_v15 = vpop.f32.mrf.mxu1 }
0x2d20   :  { %v1450_v16 = vadd.f32 %v3000_v32, %v1449_v15  ;;  %v2338_v32 = vld [vmem:[%s3291_s10 + $0xd0] sm:$0xff] }
0x2d21   :  { %2126 = vmatpush.msra.mxu3 %v2338_v32 }
0x2d23   :  { %2127 = vmatpush.msra.mxu3 %v2337_v63 }
0x2d25   :  { %2128 = vmatpush.msra.mxu3 %v2336_v0 }
0x2d80   :  { %v2138_v44 = vpop.permute.xlu0 %2137 }
0x2d81   :  { %2341 = vmatmul.msk.f32.vlgmr.msra.gmra.mxu0 %vm137_vm6, %v2138_v44 }
0x2dfe   :  { %v2158_v7 = vpop.f32.mrf.mxu0 }
0x2dff   :  { %v2161_v18 = vadd.f32 %v2158_v7, %v1450_v16 }
0x2e01   :  { %2539 = vtanh.f32 %v2161_v18  ;;  %v2342_v10 = vmul.f32 -1.442695, %v2161_v18 }
0x2e03   :  { %2541 = vpow2.f32 %v2342_v10 }
0x2e07   :  { %v2540_v19 = vpop.eup %2539 }
0x2e08   :  { %2184 = vrot.lane.b32.xlu1 %v2540_v19, %s2550_s15 }
0x2e09   :  { %v2542_v20 = vpop.eup %2541 }
0x2e0a   :  { %v2165_v22 = vadd.f32 1.0, %v2542_v20 }
0x2e0c   :  { %2543 = vrcp.f32 %v2165_v22  ;;  %v2177_v37 = vand.u32 2147483648, %v2165_v22  ;;  %vm2171_vm7 = vweird.f32 %v2165_v22  ;;  %v2175_v3 = vand.u32 2147483647, %v2165_v22 }
0x2e0e   :  { %v2178_v33 = vor.u32 1.1754944e-38, %v2177_v37  ;;  %vm2176_vm9 = vcmp.eq.f32.partialorder %v2175_v3, 8.507059e+37 }
0x2e10   :  { %2109 = vrot.lane.b32.xlu1 %v2102_v5, %s2551_s16 }
0x2e12   :  { %v2544_v26 = vpop.eup %2543 }
0x2e13   :  { %v2167_v48 = vmul.f32 %v2544_v26, %v2165_v22  ;;  %vm2172_vm1 = vweird.f32 %v2544_v26 }
0x2e14   :  { %vm2173_vm8 = vmor %vm2171_vm7, %vm2172_vm1 }
0x2e15   :  { %v2168_v34 = vsub.f32 1.0, %v2167_v48 }
0x2e17   :  { %v2169_v35 = vmul.f32 %v2544_v26, %v2168_v34 }
0x2e19   :  { %v2170_v36 = vadd.f32 %v2544_v26, %v2169_v35 }
0x2e1b   :  { %v2174_v39 = vsel %vm2173_vm8, %v2544_v26, %v2170_v36 }
0x2e1c   :  { %v2179_v17 = vsel %vm2176_vm9, %v2178_v33, %v2174_v39 }
0x2e1d   :  { %v2182_v43 = vmul.f32 %v2179_v17, %v2095_v62 }
0x2e7a   :  { %v2185_v56 = vpop.permute.xlu1 %2184 }
0x2e7b   :  { %v2187_v41 = vmul.f32 %v2185_v56, %v2179_v17 }
0x2e7d   :  { %2189 = vrot.lane.b32.xlu2 %v2187_v41, %s2551_s16 }
0x2e82   :  { %v2110_v42 = vpop.permute.xlu1 %2109 }
0x2e83   :  { %2340 = vmatmul.msk.f32.vlgmr.msra.gmra.mxu3 %vm137_vm6, %v2110_v42 }
0x2ed7   :  { %v2190_v45 = vpop.permute.xlu2 %2189 }
0x2ed8   :  { %v2192_v31 = vadd.f32 %v2190_v45, %v2182_v43 }
0x2eda   :  { %2545 = vtanh.f32 %v2192_v31 }
0x2ee0   :  { %v2546_v24 = vpop.eup %2545 }
0x2ee1   :  { %2195 = vrot.lane.b32.xlu0 %v2546_v24, %s2550_s15 }
0x2f06   :  { %v2130_v60 = vpop.f32.mrf.mxu3 }
0x2f07   :  { %v2133_v57 = vadd.f32 %v2130_v60, %v2036_v4 }
0x2f53   :  { %v2196_v51 = vpop.permute.xlu0 %2195 }
0x2f54   :  { %v2198_v61 = vmul.f32 %v2196_v51, %v2179_v17 }
0x2f56   :  { %v2199_v52 = vmax.f32 %v2198_v61, 0.0 }
0x2f58   :  { %2206 = vrot.lane.b32.xlu2 %v2199_v52, %s2551_s16 }
0x2fb2   :  { %v2207_v53 = vpop.permute.xlu2 %2206 }
0x2fb3   :  { %2347 = vmatmul.msk.f32.vlgmr.msrb.gmra.mxu2 %vm137_vm6, %v2207_v53  ;;  %vm2236_vm6 = vcmask 72704  }
0x3036   :  { %v2227_v27 = vpop.f32.mrf.mxu2 }
0x3037   :  { %v2230_v9 = vadd.f32 %v2227_v27, %v2133_v57 }
0x3039   :  { %v2235_v29 = vadd.f32 %v2354_v2, %v2230_v9 }
0x303b   :  { %2237 = vst.msk [vmem:[%s3293_s12] sm:$0xff] %vm2236_vm6, %v2235_v29 }

</bundles_post_ra>
